<compile_context>
chip_gen: v7x
topology: tpu7x:2x2x1
jax: 0.10.0
libtpu: 0.0.40
codegen_flags: <defaults>
</compile_context>

<pallas_src>
import jax
import jax.numpy as jnp
from jax.experimental import pallas as pl
from jax.experimental.pallas import tpu as pltpu

H_VALID = 75      # PyTorch hidden size
I_VALID = 225     # PyTorch input size of the first LSTM
N_VALID = 100     # LSTM batch (the 100 columns of the 75x100 map)

HPAD = 128        # hidden padded -> lane-dense 128 / gate-fused 512
IPAD = 256        # first-layer input features padded
NPAD = 128        # rows padded so they split evenly across cores
NCORES = 2        # grid split of the independent rows ("parallel" axis)
NBLK = NPAD // NCORES
H4 = 4 * HPAD


def _sig(z):
    # sigmoid via EUP exp + approx reciprocal (keeps the VPU divide slot free)
    return pl.reciprocal(1.0 + jnp.exp(-z), approx=True)


# ---------------------------------------------------------------------------
# One kernel = full 3-layer LSTM stack for a block of NBLK independent rows.
# ---------------------------------------------------------------------------
def _light_stack_kernel(x_ref,
                        wx0_ref, wh0_ref, b0_ref,
                        wx1_ref, wh1_ref, b1_ref,
                        wx2_ref, wh2_ref, b2_ref,
                        out_ref,
                        act_sc, xp_sc, h_sc, c_sc):
    T = x_ref.shape[0]          # time axis == batch B of the NCHW input
    H = HPAD

    def layer(src_ref, src_is_bf16, wx_ref, wh_ref, b_ref, is_last):
        # ---- hoisted input projection: one gate-fused (NBLK, 4H) matmul per
        #      step, fully independent of the recurrence -> pipelines freely.
        @pl.loop(0, T)
        def _(t):
            xt = src_ref[t]
            if not src_is_bf16:
                xt = xt.astype(jnp.bfloat16)
            xp_sc[t] = (jnp.dot(xt, wx_ref[...],
                                preferred_element_type=jnp.float32)
                        + b_ref[...])

        # ---- sequential recurrence: only h @ Wh + gate math per step. ----
        h_sc[...] = jnp.zeros_like(h_sc)
        c_sc[...] = jnp.zeros_like(c_sc)

        @pl.loop(0, T)
        def _(t):
            z = xp_sc[t] + jnp.dot(h_sc[...].astype(jnp.bfloat16), wh_ref[...],
                                   preferred_element_type=jnp.float32)
            i_g = _sig(z[:, 0 * H:1 * H])
            f_g = _sig(z[:, 1 * H:2 * H])
            g_g = jnp.tanh(z[:, 2 * H:3 * H])
            o_g = _sig(z[:, 3 * H:4 * H])
            c_new = f_g * c_sc[...] + i_g * g_g
            h_new = o_g * jnp.tanh(c_new)
            c_sc[...] = c_new
            h_sc[...] = h_new
            if is_last:
                out_ref[t] = _sig(h_new)      # fused final nn.Sigmoid
            else:
                act_sc[t] = h_new

    layer(x_ref, True, wx0_ref, wh0_ref, b0_ref, False)    # self.layers: LSTM(225, 75)
    layer(act_sc, False, wx1_ref, wh1_ref, b1_ref, False)  # self.lstm layer 0
    layer(act_sc, False, wx2_ref, wh2_ref, b2_ref, True)   # self.lstm layer 1


# ---------------------------------------------------------------------------
# Wrapper == light_point_net.forward
# ---------------------------------------------------------------------------
@jax.jit
def light_point_net_forward(x, kparams):
    """x: (B, 3, 75, 100) -> (B, 3, 75, 100)."""
    B = x.shape[0]
    T = B
    # x.reshape(-1, 225, 100).permute(0, 2, 1)  ->  (T=B, N=100, I=225)
    xl = x.reshape(B, I_VALID, N_VALID).transpose(0, 2, 1)
    # pad rows 100->128, features 225->256; bf16 MXU operand
    xl = jnp.pad(xl, ((0, 0), (0, NPAD - N_VALID),
                      (0, IPAD - I_VALID))).astype(jnp.bfloat16)

    def row_spec(shape):
        return pl.BlockSpec(shape, lambda c: (0, c, 0))

    def w_spec(shape):
        return pl.BlockSpec(shape, lambda c: (0, 0))

    sig_h = pl.pallas_call(
        _light_stack_kernel,
        out_shape=jax.ShapeDtypeStruct((T, NPAD, HPAD), jnp.float32),
        grid_spec=pltpu.PrefetchScalarGridSpec(
            num_scalar_prefetch=0,
            grid=(NCORES,),
            in_specs=[
                row_spec((T, NBLK, IPAD)),                                 # x
                w_spec((IPAD, H4)), w_spec((HPAD, H4)), w_spec((1, H4)),   # layer 0
                w_spec((HPAD, H4)), w_spec((HPAD, H4)), w_spec((1, H4)),   # layer 1
                w_spec((HPAD, H4)), w_spec((HPAD, H4)), w_spec((1, H4)),   # layer 2
            ],
            out_specs=row_spec((T, NBLK, HPAD)),
            scratch_shapes=[
                pltpu.VMEM((T, NBLK, HPAD), jnp.float32),   # inter-layer activations
                pltpu.VMEM((T, NBLK, H4), jnp.float32),     # hoisted input projections
                pltpu.VMEM((NBLK, HPAD), jnp.float32),      # h
                pltpu.VMEM((NBLK, HPAD), jnp.float32),      # c
            ],
        ),
        compiler_params=pltpu.CompilerParams(
            dimension_semantics=("parallel",)),
    )(xl, *kparams["l0"], *kparams["s0"], *kparams["s1"])

    # valid region, then the module's permute -> reshape -> expand (layout glue)
    sig = sig_h[:, :N_VALID, :H_VALID]                       # (B, 100, 75)
    sig = sig.transpose(0, 2, 1).reshape(B, 1, H_VALID, N_VALID)
    return jnp.broadcast_to(sig, (B, 3, H_VALID, N_VALID))


# ---------------------------------------------------------------------------
# Parameters (PyTorch default LSTM init U(-1/sqrt(H), 1/sqrt(H)); gate order
# i, f, g, o fused along the last axis).  `raw` = exact f32 params for the
# reference; `kern` = padded, bf16 (weights) / f32 (bias) params for the kernel.
# ---------------------------------------------------------------------------
def _init_lstm_raw(key, in_dim, hidden):
    bound = 1.0 / (hidden ** 0.5)
    k1, k2, k3, k4 = jax.random.split(key, 4)
    wx = jax.random.uniform(k1, (in_dim, 4 * hidden), jnp.float32, -bound, bound)
    wh = jax.random.uniform(k2, (hidden, 4 * hidden), jnp.float32, -bound, bound)
    b_ih = jax.random.uniform(k3, (1, 4 * hidden), jnp.float32, -bound, bound)
    b_hh = jax.random.uniform(k4, (1, 4 * hidden), jnp.float32, -bound, bound)
    return wx, wh, b_ih + b_hh


def _pad_gate_cols(m, rows_to, hidden):
    """(R, 4*hidden) -> (rows_to, 4*HPAD), zero-padded per gate block so the
    padded hidden lanes stay exactly zero through the recurrence."""
    rows = m.shape[0]
    m4 = m.reshape(rows, 4, hidden)
    out = jnp.zeros((rows_to, 4, HPAD), m.dtype).at[:rows, :, :hidden].set(m4)
    return out.reshape(rows_to, 4 * HPAD)


def _pad_lstm(wx, wh, b, ipad):
    hidden = wh.shape[0]
    return (_pad_gate_cols(wx, ipad, hidden).astype(jnp.bfloat16),
            _pad_gate_cols(wh, HPAD, hidden).astype(jnp.bfloat16),
            _pad_gate_cols(b, 1, hidden))            # bias stays f32


def init_params(key):
    ks = jax.random.split(key, 3)
    raw = {
        "l0": _init_lstm_raw(ks[0], I_VALID, H_VALID),   # self.layers: LSTM(225, 75, 1)
        "s0": _init_lstm_raw(ks[1], H_VALID, H_VALID),   # self.lstm layer 0
        "s1": _init_lstm_raw(ks[2], H_VALID, H_VALID),   # self.lstm layer 1
    }
    kern = {
        "l0": _pad_lstm(*raw["l0"], IPAD),
        "s0": _pad_lstm(*raw["s0"], HPAD),
        "s1": _pad_lstm(*raw["s1"], HPAD),
    }
    return raw, kern


# ---------------------------------------------------------------------------
# Pure-JAX f32 reference (matches PyTorch semantics exactly)
# ---------------------------------------------------------------------------
def _lstm_layer_ref(x, wx, wh, b):
    H = wh.shape[0]
    N = x.shape[1]

    def step(carry, x_t):
        h, c = carry
        z = (jnp.dot(x_t, wx, precision=jax.lax.Precision.HIGHEST)
             + jnp.dot(h, wh, precision=jax.lax.Precision.HIGHEST) + b)
        i = jax.nn.sigmoid(z[:, 0 * H:1 * H])
        f = jax.nn.sigmoid(z[:, 1 * H:2 * H])
        g = jnp.tanh(z[:, 2 * H:3 * H])
        o = jax.nn.sigmoid(z[:, 3 * H:4 * H])
        c = f * c + i * g
        h = o * jnp.tanh(c)
        return (h, c), h

    init = (jnp.zeros((N, H), jnp.float32), jnp.zeros((N, H), jnp.float32))
    _, ys = jax.lax.scan(step, init, x)
    return ys


def light_point_net_ref(x, raw):
    B = x.shape[0]
    xl = x.reshape(B, I_VALID, N_VALID).transpose(0, 2, 1)
    h = _lstm_layer_ref(xl, *raw["l0"])
    h = _lstm_layer_ref(h, *raw["s0"])
    h = _lstm_layer_ref(h, *raw["s1"])
    sig = jax.nn.sigmoid(h)
    sig = sig.transpose(0, 2, 1).reshape(B, 1, H_VALID, N_VALID)
    return jnp.broadcast_to(sig, (B, 3, H_VALID, N_VALID))


if __name__ == "__main__":
    key = jax.random.PRNGKey(0)
    kx, kp = jax.random.split(key)
    B = 2
    x = jax.random.normal(kx, (B, 3, 75, 100), jnp.float32)
    raw_params, kern_params = init_params(kp)

    out = jax.block_until_ready(light_point_net_forward(x, kern_params))
    assert out.shape == (B, 3, 75, 100)

    # Loose tolerance absorbs bf16-MXU + approx-reciprocal rounding.
    ref = light_point_net_ref(x, raw_params)
    max_err = float(jnp.max(jnp.abs(out - ref)))
    assert max_err < 5e-2, f"output mismatch, max abs err = {max_err}"

    print("KERNEL_OK")
</pallas_src>

<mosaic_0001>
module attributes {stable_mosaic.version = 11 : i64} {
  func.func @_light_stack_kernel(%arg0: i32, %arg1: memref<2x64x256xbf16, #tpu.memory_space<vmem>>, %arg2: memref<256x512xbf16, #tpu.memory_space<vmem>>, %arg3: memref<128x512xbf16, #tpu.memory_space<vmem>>, %arg4: memref<1x512xf32, #tpu.memory_space<vmem>>, %arg5: memref<128x512xbf16, #tpu.memory_space<vmem>>, %arg6: memref<128x512xbf16, #tpu.memory_space<vmem>>, %arg7: memref<1x512xf32, #tpu.memory_space<vmem>>, %arg8: memref<128x512xbf16, #tpu.memory_space<vmem>>, %arg9: memref<128x512xbf16, #tpu.memory_space<vmem>>, %arg10: memref<1x512xf32, #tpu.memory_space<vmem>>, %arg11: memref<2x64x128xf32, #tpu.memory_space<vmem>>, %arg12: memref<2x64x128xf32, #tpu.memory_space<vmem>>, %arg13: memref<2x64x512xf32, #tpu.memory_space<vmem>>, %arg14: memref<64x128xf32, #tpu.memory_space<vmem>>, %arg15: memref<64x128xf32, #tpu.memory_space<vmem>>) attributes {dimension_semantics = [#tpu.dimension_semantics<parallel>], iteration_bounds = array<i64: 2>, scalar_prefetch = 0 : i64, scratch_operands = 4 : i64, tpu.core_type = #tpu.core_type<tc>, window_params = [{transform_indices = @transform_0, window_bounds = array<i64: 2, 64, 256>}, {pipeline_mode = #tpu.pipeline_mode<synchronous>, transform_indices = @transform_1, window_bounds = array<i64: 256, 512>}, {pipeline_mode = #tpu.pipeline_mode<synchronous>, transform_indices = @transform_2, window_bounds = array<i64: 128, 512>}, {pipeline_mode = #tpu.pipeline_mode<synchronous>, transform_indices = @transform_3, window_bounds = array<i64: 1, 512>}, {pipeline_mode = #tpu.pipeline_mode<synchronous>, transform_indices = @transform_4, window_bounds = array<i64: 128, 512>}, {pipeline_mode = #tpu.pipeline_mode<synchronous>, transform_indices = @transform_5, window_bounds = array<i64: 128, 512>}, {pipeline_mode = #tpu.pipeline_mode<synchronous>, transform_indices = @transform_6, window_bounds = array<i64: 1, 512>}, {pipeline_mode = #tpu.pipeline_mode<synchronous>, transform_indices = @transform_7, window_bounds = array<i64: 128, 512>}, {pipeline_mode = #tpu.pipeline_mode<synchronous>, transform_indices = @transform_8, window_bounds = array<i64: 128, 512>}, {pipeline_mode = #tpu.pipeline_mode<synchronous>, transform_indices = @transform_9, window_bounds = array<i64: 1, 512>}, {transform_indices = @transform_10, window_bounds = array<i64: 2, 64, 128>}]} {
    %c0_i32 = arith.constant 0 : i32
    %c2_i32 = arith.constant 2 : i32
    %0 = arith.addi %c0_i32, %c2_i32 : i32
    %c1_i32 = arith.constant 1 : i32
    scf.for %arg16 = %c0_i32 to %0 step %c1_i32  : i32 {
      %c1_i32_37 = arith.constant 1 : i32
      %18 = arith.muli %arg16, %c1_i32_37 : i32
      %c0_i32_38 = arith.constant 0 : i32
      %19 = arith.addi %c0_i32_38, %18 : i32
      %20 = arith.index_cast %19 : i32 to index
      %c0_39 = arith.constant 0 : index
      %c0_40 = arith.constant 0 : index
      %21 = vector.load %arg1[%20, %c0_39, %c0_40] : memref<2x64x256xbf16, #tpu.memory_space<vmem>>, vector<1x64x256xbf16>
      %22 = vector.shape_cast %21 : vector<1x64x256xbf16> to vector<64x256xbf16>
      %c0_41 = arith.constant 0 : index
      %c0_42 = arith.constant 0 : index
      %23 = vector.load %arg2[%c0_41, %c0_42] : memref<256x512xbf16, #tpu.memory_space<vmem>>, vector<256x512xbf16>
      %cst_43 = arith.constant dense<0.000000e+00> : vector<64x512xf32>
      %24 = tpu.matmul %22, %23, %cst_43 {dimension_numbers = #tpu.dot_dimension_numbers<[1], [0], [0], [1], [0, 0, 1, 1], [], []>} : vector<64x256xbf16>, vector<256x512xbf16>, vector<64x512xf32> -> vector<64x512xf32>
      %c0_44 = arith.constant 0 : index
      %c0_45 = arith.constant 0 : index
      %25 = vector.load %arg4[%c0_44, %c0_45] : memref<1x512xf32, #tpu.memory_space<vmem>>, vector<1x512xf32>
      %26 = vector.broadcast %25 : vector<1x512xf32> to vector<64x512xf32>
      %27 = arith.addf %24, %26 : vector<64x512xf32>
      %28 = arith.index_cast %19 : i32 to index
      %c0_46 = arith.constant 0 : index
      %c0_47 = arith.constant 0 : index
      %29 = vector.load %arg13[%28, %c0_46, %c0_47] : memref<2x64x512xf32, #tpu.memory_space<vmem>>, vector<1x64x512xf32>
      %30 = vector.shape_cast %29 : vector<1x64x512xf32> to vector<64x512xf32>
      %31 = vector.shape_cast %27 : vector<64x512xf32> to vector<1x64x512xf32>
      tpu.vector_store %arg13[%28, %c0_46, %c0_47], %31 {strides = array<i32>} : memref<2x64x512xf32, #tpu.memory_space<vmem>>, vector<1x64x512xf32>,
    }
    %c2_i32_0 = arith.constant 2 : i32
    %cst = arith.constant 0.000000e+00 : f32
    %1 = vector.broadcast %cst : f32 to vector<64x128xf32>
    %c0 = arith.constant 0 : index
    %c0_1 = arith.constant 0 : index
    %2 = vector.load %arg14[%c0, %c0_1] : memref<64x128xf32, #tpu.memory_space<vmem>>, vector<64x128xf32>
    tpu.vector_store %arg14[%c0, %c0_1], %1 {strides = array<i32>} : memref<64x128xf32, #tpu.memory_space<vmem>>, vector<64x128xf32>,
    %cst_2 = arith.constant 0.000000e+00 : f32
    %3 = vector.broadcast %cst_2 : f32 to vector<64x128xf32>
    %c0_3 = arith.constant 0 : index
    %c0_4 = arith.constant 0 : index
    %4 = vector.load %arg15[%c0_3, %c0_4] : memref<64x128xf32, #tpu.memory_space<vmem>>, vector<64x128xf32>
    tpu.vector_store %arg15[%c0_3, %c0_4], %3 {strides = array<i32>} : memref<64x128xf32, #tpu.memory_space<vmem>>, vector<64x128xf32>,
    %c0_i32_5 = arith.constant 0 : i32
    %c2_i32_6 = arith.constant 2 : i32
    %5 = arith.addi %c0_i32_5, %c2_i32_6 : i32
    %c1_i32_7 = arith.constant 1 : i32
    scf.for %arg16 = %c0_i32_5 to %5 step %c1_i32_7  : i32 {
      %c1_i32_37 = arith.constant 1 : i32
      %18 = arith.muli %arg16, %c1_i32_37 : i32
      %c0_i32_38 = arith.constant 0 : i32
      %19 = arith.addi %c0_i32_38, %18 : i32
      %20 = arith.index_cast %19 : i32 to index
      %c0_39 = arith.constant 0 : index
      %c0_40 = arith.constant 0 : index
      %21 = vector.load %arg13[%20, %c0_39, %c0_40] : memref<2x64x512xf32, #tpu.memory_space<vmem>>, vector<1x64x512xf32>
      %22 = vector.shape_cast %21 : vector<1x64x512xf32> to vector<64x512xf32>
      %c0_41 = arith.constant 0 : index
      %c0_42 = arith.constant 0 : index
      %23 = vector.load %arg14[%c0_41, %c0_42] : memref<64x128xf32, #tpu.memory_space<vmem>>, vector<64x128xf32>
      %24 = arith.truncf %23 : vector<64x128xf32> to vector<64x128xbf16>
      %c0_43 = arith.constant 0 : index
      %c0_44 = arith.constant 0 : index
      %25 = vector.load %arg3[%c0_43, %c0_44] : memref<128x512xbf16, #tpu.memory_space<vmem>>, vector<128x512xbf16>
      %cst_45 = arith.constant dense<0.000000e+00> : vector<64x512xf32>
      %26 = tpu.matmul %24, %25, %cst_45 {dimension_numbers = #tpu.dot_dimension_numbers<[1], [0], [0], [1], [0, 0, 1, 1], [], []>} : vector<64x128xbf16>, vector<128x512xbf16>, vector<64x512xf32> -> vector<64x512xf32>
      %27 = arith.addf %22, %26 : vector<64x512xf32>
      %28 = vector.extract_strided_slice %27 {offsets = [0, 0], sizes = [64, 128], strides = [1, 1]} : vector<64x512xf32> to vector<64x128xf32>
      %cst_46 = arith.constant 0.000000e+00 : f32
      %29 = vector.broadcast %cst_46 : f32 to vector<64x128xf32>
      %30 = arith.subf %29, %28 : vector<64x128xf32>
      %31 = math.exp %30 : vector<64x128xf32>
      %cst_47 = arith.constant 1.000000e+00 : f32
      %32 = vector.broadcast %cst_47 : f32 to vector<64x128xf32>
      %33 = arith.addf %32, %31 : vector<64x128xf32>
      %34 = tpu.reciprocal %33 {approx = true} : vector<64x128xf32> -> vector<64x128xf32>
      %35 = vector.extract_strided_slice %27 {offsets = [0, 128], sizes = [64, 128], strides = [1, 1]} : vector<64x512xf32> to vector<64x128xf32>
      %cst_48 = arith.constant 0.000000e+00 : f32
      %36 = vector.broadcast %cst_48 : f32 to vector<64x128xf32>
      %37 = arith.subf %36, %35 : vector<64x128xf32>
      %38 = math.exp %37 : vector<64x128xf32>
      %cst_49 = arith.constant 1.000000e+00 : f32
      %39 = vector.broadcast %cst_49 : f32 to vector<64x128xf32>
      %40 = arith.addf %39, %38 : vector<64x128xf32>
      %41 = tpu.reciprocal %40 {approx = true} : vector<64x128xf32> -> vector<64x128xf32>
      %42 = vector.extract_strided_slice %27 {offsets = [0, 256], sizes = [64, 128], strides = [1, 1]} : vector<64x512xf32> to vector<64x128xf32>
      %43 = math.tanh %42 : vector<64x128xf32>
      %44 = vector.extract_strided_slice %27 {offsets = [0, 384], sizes = [64, 128], strides = [1, 1]} : vector<64x512xf32> to vector<64x128xf32>
      %cst_50 = arith.constant 0.000000e+00 : f32
      %45 = vector.broadcast %cst_50 : f32 to vector<64x128xf32>
      %46 = arith.subf %45, %44 : vector<64x128xf32>
      %47 = math.exp %46 : vector<64x128xf32>
      %cst_51 = arith.constant 1.000000e+00 : f32
      %48 = vector.broadcast %cst_51 : f32 to vector<64x128xf32>
      %49 = arith.addf %48, %47 : vector<64x128xf32>
      %50 = tpu.reciprocal %49 {approx = true} : vector<64x128xf32> -> vector<64x128xf32>
      %c0_52 = arith.constant 0 : index
      %c0_53 = arith.constant 0 : index
      %51 = vector.load %arg15[%c0_52, %c0_53] : memref<64x128xf32, #tpu.memory_space<vmem>>, vector<64x128xf32>
      %52 = arith.mulf %41, %51 : vector<64x128xf32>
      %53 = arith.mulf %34, %43 : vector<64x128xf32>
      %54 = arith.addf %52, %53 : vector<64x128xf32>
      %55 = math.tanh %54 : vector<64x128xf32>
      %56 = arith.mulf %50, %55 : vector<64x128xf32>
      %c0_54 = arith.constant 0 : index
      %c0_55 = arith.constant 0 : index
      %57 = vector.load %arg15[%c0_54, %c0_55] : memref<64x128xf32, #tpu.memory_space<vmem>>, vector<64x128xf32>
      tpu.vector_store %arg15[%c0_54, %c0_55], %54 {strides = array<i32>} : memref<64x128xf32, #tpu.memory_space<vmem>>, vector<64x128xf32>,
      %c0_56 = arith.constant 0 : index
      %c0_57 = arith.constant 0 : index
      %58 = vector.load %arg14[%c0_56, %c0_57] : memref<64x128xf32, #tpu.memory_space<vmem>>, vector<64x128xf32>
      tpu.vector_store %arg14[%c0_56, %c0_57], %56 {strides = array<i32>} : memref<64x128xf32, #tpu.memory_space<vmem>>, vector<64x128xf32>,
      %59 = arith.index_cast %19 : i32 to index
      %c0_58 = arith.constant 0 : index
      %c0_59 = arith.constant 0 : index
      %60 = vector.load %arg12[%59, %c0_58, %c0_59] : memref<2x64x128xf32, #tpu.memory_space<vmem>>, vector<1x64x128xf32>
      %61 = vector.shape_cast %60 : vector<1x64x128xf32> to vector<64x128xf32>
      %62 = vector.shape_cast %56 : vector<64x128xf32> to vector<1x64x128xf32>
      tpu.vector_store %arg12[%59, %c0_58, %c0_59], %62 {strides = array<i32>} : memref<2x64x128xf32, #tpu.memory_space<vmem>>, vector<1x64x128xf32>,
    }
    %c2_i32_8 = arith.constant 2 : i32
    %c0_i32_9 = arith.constant 0 : i32
    %c2_i32_10 = arith.constant 2 : i32
    %6 = arith.addi %c0_i32_9, %c2_i32_10 : i32
    %c1_i32_11 = arith.constant 1 : i32
    scf.for %arg16 = %c0_i32_9 to %6 step %c1_i32_11  : i32 {
      %c1_i32_37 = arith.constant 1 : i32
      %18 = arith.muli %arg16, %c1_i32_37 : i32
      %c0_i32_38 = arith.constant 0 : i32
      %19 = arith.addi %c0_i32_38, %18 : i32
      %20 = arith.index_cast %19 : i32 to index
      %c0_39 = arith.constant 0 : index
      %c0_40 = arith.constant 0 : index
      %21 = vector.load %arg12[%20, %c0_39, %c0_40] : memref<2x64x128xf32, #tpu.memory_space<vmem>>, vector<1x64x128xf32>
      %22 = vector.shape_cast %21 : vector<1x64x128xf32> to vector<64x128xf32>
      %23 = arith.truncf %22 : vector<64x128xf32> to vector<64x128xbf16>
      %c0_41 = arith.constant 0 : index
      %c0_42 = arith.constant 0 : index
      %24 = vector.load %arg5[%c0_41, %c0_42] : memref<128x512xbf16, #tpu.memory_space<vmem>>, vector<128x512xbf16>
      %cst_43 = arith.constant dense<0.000000e+00> : vector<64x512xf32>
      %25 = tpu.matmul %23, %24, %cst_43 {dimension_numbers = #tpu.dot_dimension_numbers<[1], [0], [0], [1], [0, 0, 1, 1], [], []>} : vector<64x128xbf16>, vector<128x512xbf16>, vector<64x512xf32> -> vector<64x512xf32>
      %c0_44 = arith.constant 0 : index
      %c0_45 = arith.constant 0 : index
      %26 = vector.load %arg7[%c0_44, %c0_45] : memref<1x512xf32, #tpu.memory_space<vmem>>, vector<1x512xf32>
      %27 = vector.broadcast %26 : vector<1x512xf32> to vector<64x512xf32>
      %28 = arith.addf %25, %27 : vector<64x512xf32>
      %29 = arith.index_cast %19 : i32 to index
      %c0_46 = arith.constant 0 : index
      %c0_47 = arith.constant 0 : index
      %30 = vector.load %arg13[%29, %c0_46, %c0_47] : memref<2x64x512xf32, #tpu.memory_space<vmem>>, vector<1x64x512xf32>
      %31 = vector.shape_cast %30 : vector<1x64x512xf32> to vector<64x512xf32>
      %32 = vector.shape_cast %28 : vector<64x512xf32> to vector<1x64x512xf32>
      tpu.vector_store %arg13[%29, %c0_46, %c0_47], %32 {strides = array<i32>} : memref<2x64x512xf32, #tpu.memory_space<vmem>>, vector<1x64x512xf32>,
    }
    %c2_i32_12 = arith.constant 2 : i32
    %cst_13 = arith.constant 0.000000e+00 : f32
    %7 = vector.broadcast %cst_13 : f32 to vector<64x128xf32>
    %c0_14 = arith.constant 0 : index
    %c0_15 = arith.constant 0 : index
    %8 = vector.load %arg14[%c0_14, %c0_15] : memref<64x128xf32, #tpu.memory_space<vmem>>, vector<64x128xf32>
    tpu.vector_store %arg14[%c0_14, %c0_15], %7 {strides = array<i32>} : memref<64x128xf32, #tpu.memory_space<vmem>>, vector<64x128xf32>,
    %cst_16 = arith.constant 0.000000e+00 : f32
    %9 = vector.broadcast %cst_16 : f32 to vector<64x128xf32>
    %c0_17 = arith.constant 0 : index
    %c0_18 = arith.constant 0 : index
    %10 = vector.load %arg15[%c0_17, %c0_18] : memref<64x128xf32, #tpu.memory_space<vmem>>, vector<64x128xf32>
    tpu.vector_store %arg15[%c0_17, %c0_18], %9 {strides = array<i32>} : memref<64x128xf32, #tpu.memory_space<vmem>>, vector<64x128xf32>,
    %c0_i32_19 = arith.constant 0 : i32
    %c2_i32_20 = arith.constant 2 : i32
    %11 = arith.addi %c0_i32_19, %c2_i32_20 : i32
    %c1_i32_21 = arith.constant 1 : i32
    scf.for %arg16 = %c0_i32_19 to %11 step %c1_i32_21  : i32 {
      %c1_i32_37 = arith.constant 1 : i32
      %18 = arith.muli %arg16, %c1_i32_37 : i32
      %c0_i32_38 = arith.constant 0 : i32
      %19 = arith.addi %c0_i32_38, %18 : i32
      %20 = arith.index_cast %19 : i32 to index
      %c0_39 = arith.constant 0 : index
      %c0_40 = arith.constant 0 : index
      %21 = vector.load %arg13[%20, %c0_39, %c0_40] : memref<2x64x512xf32, #tpu.memory_space<vmem>>, vector<1x64x512xf32>
      %22 = vector.shape_cast %21 : vector<1x64x512xf32> to vector<64x512xf32>
      %c0_41 = arith.constant 0 : index
      %c0_42 = arith.constant 0 : index
      %23 = vector.load %arg14[%c0_41, %c0_42] : memref<64x128xf32, #tpu.memory_space<vmem>>, vector<64x128xf32>
      %24 = arith.truncf %23 : vector<64x128xf32> to vector<64x128xbf16>
      %c0_43 = arith.constant 0 : index
      %c0_44 = arith.constant 0 : index
      %25 = vector.load %arg6[%c0_43, %c0_44] : memref<128x512xbf16, #tpu.memory_space<vmem>>, vector<128x512xbf16>
      %cst_45 = arith.constant dense<0.000000e+00> : vector<64x512xf32>
      %26 = tpu.matmul %24, %25, %cst_45 {dimension_numbers = #tpu.dot_dimension_numbers<[1], [0], [0], [1], [0, 0, 1, 1], [], []>} : vector<64x128xbf16>, vector<128x512xbf16>, vector<64x512xf32> -> vector<64x512xf32>
      %27 = arith.addf %22, %26 : vector<64x512xf32>
      %28 = vector.extract_strided_slice %27 {offsets = [0, 0], sizes = [64, 128], strides = [1, 1]} : vector<64x512xf32> to vector<64x128xf32>
      %cst_46 = arith.constant 0.000000e+00 : f32
      %29 = vector.broadcast %cst_46 : f32 to vector<64x128xf32>
      %30 = arith.subf %29, %28 : vector<64x128xf32>
      %31 = math.exp %30 : vector<64x128xf32>
      %cst_47 = arith.constant 1.000000e+00 : f32
      %32 = vector.broadcast %cst_47 : f32 to vector<64x128xf32>
      %33 = arith.addf %32, %31 : vector<64x128xf32>
      %34 = tpu.reciprocal %33 {approx = true} : vector<64x128xf32> -> vector<64x128xf32>
      %35 = vector.extract_strided_slice %27 {offsets = [0, 128], sizes = [64, 128], strides = [1, 1]} : vector<64x512xf32> to vector<64x128xf32>
      %cst_48 = arith.constant 0.000000e+00 : f32
      %36 = vector.broadcast %cst_48 : f32 to vector<64x128xf32>
      %37 = arith.subf %36, %35 : vector<64x128xf32>
      %38 = math.exp %37 : vector<64x128xf32>
      %cst_49 = arith.constant 1.000000e+00 : f32
      %39 = vector.broadcast %cst_49 : f32 to vector<64x128xf32>
      %40 = arith.addf %39, %38 : vector<64x128xf32>
      %41 = tpu.reciprocal %40 {approx = true} : vector<64x128xf32> -> vector<64x128xf32>
      %42 = vector.extract_strided_slice %27 {offsets = [0, 256], sizes = [64, 128], strides = [1, 1]} : vector<64x512xf32> to vector<64x128xf32>
      %43 = math.tanh %42 : vector<64x128xf32>
      %44 = vector.extract_strided_slice %27 {offsets = [0, 384], sizes = [64, 128], strides = [1, 1]} : vector<64x512xf32> to vector<64x128xf32>
      %cst_50 = arith.constant 0.000000e+00 : f32
      %45 = vector.broadcast %cst_50 : f32 to vector<64x128xf32>
      %46 = arith.subf %45, %44 : vector<64x128xf32>
      %47 = math.exp %46 : vector<64x128xf32>
      %cst_51 = arith.constant 1.000000e+00 : f32
      %48 = vector.broadcast %cst_51 : f32 to vector<64x128xf32>
      %49 = arith.addf %48, %47 : vector<64x128xf32>
      %50 = tpu.reciprocal %49 {approx = true} : vector<64x128xf32> -> vector<64x128xf32>
      %c0_52 = arith.constant 0 : index
      %c0_53 = arith.constant 0 : index
      %51 = vector.load %arg15[%c0_52, %c0_53] : memref<64x128xf32, #tpu.memory_space<vmem>>, vector<64x128xf32>
      %52 = arith.mulf %41, %51 : vector<64x128xf32>
      %53 = arith.mulf %34, %43 : vector<64x128xf32>
      %54 = arith.addf %52, %53 : vector<64x128xf32>
      %55 = math.tanh %54 : vector<64x128xf32>
      %56 = arith.mulf %50, %55 : vector<64x128xf32>
      %c0_54 = arith.constant 0 : index
      %c0_55 = arith.constant 0 : index
      %57 = vector.load %arg15[%c0_54, %c0_55] : memref<64x128xf32, #tpu.memory_space<vmem>>, vector<64x128xf32>
      tpu.vector_store %arg15[%c0_54, %c0_55], %54 {strides = array<i32>} : memref<64x128xf32, #tpu.memory_space<vmem>>, vector<64x128xf32>,
      %c0_56 = arith.constant 0 : index
      %c0_57 = arith.constant 0 : index
      %58 = vector.load %arg14[%c0_56, %c0_57] : memref<64x128xf32, #tpu.memory_space<vmem>>, vector<64x128xf32>
      tpu.vector_store %arg14[%c0_56, %c0_57], %56 {strides = array<i32>} : memref<64x128xf32, #tpu.memory_space<vmem>>, vector<64x128xf32>,
      %59 = arith.index_cast %19 : i32 to index
      %c0_58 = arith.constant 0 : index
      %c0_59 = arith.constant 0 : index
      %60 = vector.load %arg12[%59, %c0_58, %c0_59] : memref<2x64x128xf32, #tpu.memory_space<vmem>>, vector<1x64x128xf32>
      %61 = vector.shape_cast %60 : vector<1x64x128xf32> to vector<64x128xf32>
      %62 = vector.shape_cast %56 : vector<64x128xf32> to vector<1x64x128xf32>
      tpu.vector_store %arg12[%59, %c0_58, %c0_59], %62 {strides = array<i32>} : memref<2x64x128xf32, #tpu.memory_space<vmem>>, vector<1x64x128xf32>,
    }
    %c2_i32_22 = arith.constant 2 : i32
    %c0_i32_23 = arith.constant 0 : i32
    %c2_i32_24 = arith.constant 2 : i32
    %12 = arith.addi %c0_i32_23, %c2_i32_24 : i32
    %c1_i32_25 = arith.constant 1 : i32
    scf.for %arg16 = %c0_i32_23 to %12 step %c1_i32_25  : i32 {
      %c1_i32_37 = arith.constant 1 : i32
      %18 = arith.muli %arg16, %c1_i32_37 : i32
      %c0_i32_38 = arith.constant 0 : i32
      %19 = arith.addi %c0_i32_38, %18 : i32
      %20 = arith.index_cast %19 : i32 to index
      %c0_39 = arith.constant 0 : index
      %c0_40 = arith.constant 0 : index
      %21 = vector.load %arg12[%20, %c0_39, %c0_40] : memref<2x64x128xf32, #tpu.memory_space<vmem>>, vector<1x64x128xf32>
      %22 = vector.shape_cast %21 : vector<1x64x128xf32> to vector<64x128xf32>
      %23 = arith.truncf %22 : vector<64x128xf32> to vector<64x128xbf16>
      %c0_41 = arith.constant 0 : index
      %c0_42 = arith.constant 0 : index
      %24 = vector.load %arg8[%c0_41, %c0_42] : memref<128x512xbf16, #tpu.memory_space<vmem>>, vector<128x512xbf16>
      %cst_43 = arith.constant dense<0.000000e+00> : vector<64x512xf32>
      %25 = tpu.matmul %23, %24, %cst_43 {dimension_numbers = #tpu.dot_dimension_numbers<[1], [0], [0], [1], [0, 0, 1, 1], [], []>} : vector<64x128xbf16>, vector<128x512xbf16>, vector<64x512xf32> -> vector<64x512xf32>
      %c0_44 = arith.constant 0 : index
      %c0_45 = arith.constant 0 : index
      %26 = vector.load %arg10[%c0_44, %c0_45] : memref<1x512xf32, #tpu.memory_space<vmem>>, vector<1x512xf32>
      %27 = vector.broadcast %26 : vector<1x512xf32> to vector<64x512xf32>
      %28 = arith.addf %25, %27 : vector<64x512xf32>
      %29 = arith.index_cast %19 : i32 to index
      %c0_46 = arith.constant 0 : index
      %c0_47 = arith.constant 0 : index
      %30 = vector.load %arg13[%29, %c0_46, %c0_47] : memref<2x64x512xf32, #tpu.memory_space<vmem>>, vector<1x64x512xf32>
      %31 = vector.shape_cast %30 : vector<1x64x512xf32> to vector<64x512xf32>
      %32 = vector.shape_cast %28 : vector<64x512xf32> to vector<1x64x512xf32>
      tpu.vector_store %arg13[%29, %c0_46, %c0_47], %32 {strides = array<i32>} : memref<2x64x512xf32, #tpu.memory_space<vmem>>, vector<1x64x512xf32>,
    }
    %c2_i32_26 = arith.constant 2 : i32
    %cst_27 = arith.constant 0.000000e+00 : f32
    %13 = vector.broadcast %cst_27 : f32 to vector<64x128xf32>
    %c0_28 = arith.constant 0 : index
    %c0_29 = arith.constant 0 : index
    %14 = vector.load %arg14[%c0_28, %c0_29] : memref<64x128xf32, #tpu.memory_space<vmem>>, vector<64x128xf32>
    tpu.vector_store %arg14[%c0_28, %c0_29], %13 {strides = array<i32>} : memref<64x128xf32, #tpu.memory_space<vmem>>, vector<64x128xf32>,
    %cst_30 = arith.constant 0.000000e+00 : f32
    %15 = vector.broadcast %cst_30 : f32 to vector<64x128xf32>
    %c0_31 = arith.constant 0 : index
    %c0_32 = arith.constant 0 : index
    %16 = vector.load %arg15[%c0_31, %c0_32] : memref<64x128xf32, #tpu.memory_space<vmem>>, vector<64x128xf32>
    tpu.vector_store %arg15[%c0_31, %c0_32], %15 {strides = array<i32>} : memref<64x128xf32, #tpu.memory_space<vmem>>, vector<64x128xf32>,
    %c0_i32_33 = arith.constant 0 : i32
    %c2_i32_34 = arith.constant 2 : i32
    %17 = arith.addi %c0_i32_33, %c2_i32_34 : i32
    %c1_i32_35 = arith.constant 1 : i32
    scf.for %arg16 = %c0_i32_33 to %17 step %c1_i32_35  : i32 {
      %c1_i32_37 = arith.constant 1 : i32
      %18 = arith.muli %arg16, %c1_i32_37 : i32
      %c0_i32_38 = arith.constant 0 : i32
      %19 = arith.addi %c0_i32_38, %18 : i32
      %20 = arith.index_cast %19 : i32 to index
      %c0_39 = arith.constant 0 : index
      %c0_40 = arith.constant 0 : index
      %21 = vector.load %arg13[%20, %c0_39, %c0_40] : memref<2x64x512xf32, #tpu.memory_space<vmem>>, vector<1x64x512xf32>
      %22 = vector.shape_cast %21 : vector<1x64x512xf32> to vector<64x512xf32>
      %c0_41 = arith.constant 0 : index
      %c0_42 = arith.constant 0 : index
      %23 = vector.load %arg14[%c0_41, %c0_42] : memref<64x128xf32, #tpu.memory_space<vmem>>, vector<64x128xf32>
      %24 = arith.truncf %23 : vector<64x128xf32> to vector<64x128xbf16>
      %c0_43 = arith.constant 0 : index
      %c0_44 = arith.constant 0 : index
      %25 = vector.load %arg9[%c0_43, %c0_44] : memref<128x512xbf16, #tpu.memory_space<vmem>>, vector<128x512xbf16>
      %cst_45 = arith.constant dense<0.000000e+00> : vector<64x512xf32>
      %26 = tpu.matmul %24, %25, %cst_45 {dimension_numbers = #tpu.dot_dimension_numbers<[1], [0], [0], [1], [0, 0, 1, 1], [], []>} : vector<64x128xbf16>, vector<128x512xbf16>, vector<64x512xf32> -> vector<64x512xf32>
      %27 = arith.addf %22, %26 : vector<64x512xf32>
      %28 = vector.extract_strided_slice %27 {offsets = [0, 0], sizes = [64, 128], strides = [1, 1]} : vector<64x512xf32> to vector<64x128xf32>
      %cst_46 = arith.constant 0.000000e+00 : f32
      %29 = vector.broadcast %cst_46 : f32 to vector<64x128xf32>
      %30 = arith.subf %29, %28 : vector<64x128xf32>
      %31 = math.exp %30 : vector<64x128xf32>
      %cst_47 = arith.constant 1.000000e+00 : f32
      %32 = vector.broadcast %cst_47 : f32 to vector<64x128xf32>
      %33 = arith.addf %32, %31 : vector<64x128xf32>
      %34 = tpu.reciprocal %33 {approx = true} : vector<64x128xf32> -> vector<64x128xf32>
      %35 = vector.extract_strided_slice %27 {offsets = [0, 128], sizes = [64, 128], strides = [1, 1]} : vector<64x512xf32> to vector<64x128xf32>
      %cst_48 = arith.constant 0.000000e+00 : f32
      %36 = vector.broadcast %cst_48 : f32 to vector<64x128xf32>
      %37 = arith.subf %36, %35 : vector<64x128xf32>
      %38 = math.exp %37 : vector<64x128xf32>
      %cst_49 = arith.constant 1.000000e+00 : f32
      %39 = vector.broadcast %cst_49 : f32 to vector<64x128xf32>
      %40 = arith.addf %39, %38 : vector<64x128xf32>
      %41 = tpu.reciprocal %40 {approx = true} : vector<64x128xf32> -> vector<64x128xf32>
      %42 = vector.extract_strided_slice %27 {offsets = [0, 256], sizes = [64, 128], strides = [1, 1]} : vector<64x512xf32> to vector<64x128xf32>
      %43 = math.tanh %42 : vector<64x128xf32>
      %44 = vector.extract_strided_slice %27 {offsets = [0, 384], sizes = [64, 128], strides = [1, 1]} : vector<64x512xf32> to vector<64x128xf32>
      %cst_50 = arith.constant 0.000000e+00 : f32
      %45 = vector.broadcast %cst_50 : f32 to vector<64x128xf32>
      %46 = arith.subf %45, %44 : vector<64x128xf32>
      %47 = math.exp %46 : vector<64x128xf32>
      %cst_51 = arith.constant 1.000000e+00 : f32
      %48 = vector.broadcast %cst_51 : f32 to vector<64x128xf32>
      %49 = arith.addf %48, %47 : vector<64x128xf32>
      %50 = tpu.reciprocal %49 {approx = true} : vector<64x128xf32> -> vector<64x128xf32>
      %c0_52 = arith.constant 0 : index
      %c0_53 = arith.constant 0 : index
      %51 = vector.load %arg15[%c0_52, %c0_53] : memref<64x128xf32, #tpu.memory_space<vmem>>, vector<64x128xf32>
      %52 = arith.mulf %41, %51 : vector<64x128xf32>
      %53 = arith.mulf %34, %43 : vector<64x128xf32>
      %54 = arith.addf %52, %53 : vector<64x128xf32>
      %55 = math.tanh %54 : vector<64x128xf32>
      %56 = arith.mulf %50, %55 : vector<64x128xf32>
      %c0_54 = arith.constant 0 : index
      %c0_55 = arith.constant 0 : index
      %57 = vector.load %arg15[%c0_54, %c0_55] : memref<64x128xf32, #tpu.memory_space<vmem>>, vector<64x128xf32>
      tpu.vector_store %arg15[%c0_54, %c0_55], %54 {strides = array<i32>} : memref<64x128xf32, #tpu.memory_space<vmem>>, vector<64x128xf32>,
      %c0_56 = arith.constant 0 : index
      %c0_57 = arith.constant 0 : index
      %58 = vector.load %arg14[%c0_56, %c0_57] : memref<64x128xf32, #tpu.memory_space<vmem>>, vector<64x128xf32>
      tpu.vector_store %arg14[%c0_56, %c0_57], %56 {strides = array<i32>} : memref<64x128xf32, #tpu.memory_space<vmem>>, vector<64x128xf32>,
      %cst_58 = arith.constant 0.000000e+00 : f32
      %59 = vector.broadcast %cst_58 : f32 to vector<64x128xf32>
      %60 = arith.subf %59, %56 : vector<64x128xf32>
      %61 = math.exp %60 : vector<64x128xf32>
      %cst_59 = arith.constant 1.000000e+00 : f32
      %62 = vector.broadcast %cst_59 : f32 to vector<64x128xf32>
      %63 = arith.addf %62, %61 : vector<64x128xf32>
      %64 = tpu.reciprocal %63 {approx = true} : vector<64x128xf32> -> vector<64x128xf32>
      %65 = arith.index_cast %19 : i32 to index
      %c0_60 = arith.constant 0 : index
      %c0_61 = arith.constant 0 : index
      %66 = vector.load %arg11[%65, %c0_60, %c0_61] : memref<2x64x128xf32, #tpu.memory_space<vmem>>, vector<1x64x128xf32>
      %67 = vector.shape_cast %66 : vector<1x64x128xf32> to vector<64x128xf32>
      %68 = vector.shape_cast %64 : vector<64x128xf32> to vector<1x64x128xf32>
      tpu.vector_store %arg11[%65, %c0_60, %c0_61], %68 {strides = array<i32>} : memref<2x64x128xf32, #tpu.memory_space<vmem>>, vector<1x64x128xf32>,
    }
    %c2_i32_36 = arith.constant 2 : i32
    return
  }
  func.func @transform_0(%arg0: i32) -> (i32, i32, i32) {
    %c0_i32 = arith.constant 0 : i32
    %c0_i32_0 = arith.constant 0 : i32
    %c0_i32_1 = arith.constant 0 : i32
    return %c0_i32, %arg0, %c0_i32_0 : i32, i32, i32
  }
  func.func @transform_1(%arg0: i32) -> (i32, i32) {
    %c0_i32 = arith.constant 0 : i32
    %c0_i32_0 = arith.constant 0 : i32
    %c0_i32_1 = arith.constant 0 : i32
    return %c0_i32, %c0_i32_0 : i32, i32
  }
  func.func @transform_2(%arg0: i32) -> (i32, i32) {
    %c0_i32 = arith.constant 0 : i32
    %c0_i32_0 = arith.constant 0 : i32
    %c0_i32_1 = arith.constant 0 : i32
    return %c0_i32, %c0_i32_0 : i32, i32
  }
  func.func @transform_3(%arg0: i32) -> (i32, i32) {
    %c0_i32 = arith.constant 0 : i32
    %c0_i32_0 = arith.constant 0 : i32
    %c0_i32_1 = arith.constant 0 : i32
    return %c0_i32, %c0_i32_0 : i32, i32
  }
  func.func @transform_4(%arg0: i32) -> (i32, i32) {
    %c0_i32 = arith.constant 0 : i32
    %c0_i32_0 = arith.constant 0 : i32
    %c0_i32_1 = arith.constant 0 : i32
    return %c0_i32, %c0_i32_0 : i32, i32
  }
  func.func @transform_5(%arg0: i32) -> (i32, i32) {
    %c0_i32 = arith.constant 0 : i32
    %c0_i32_0 = arith.constant 0 : i32
    %c0_i32_1 = arith.constant 0 : i32
    return %c0_i32, %c0_i32_0 : i32, i32
  }
  func.func @transform_6(%arg0: i32) -> (i32, i32) {
    %c0_i32 = arith.constant 0 : i32
    %c0_i32_0 = arith.constant 0 : i32
    %c0_i32_1 = arith.constant 0 : i32
    return %c0_i32, %c0_i32_0 : i32, i32
  }
  func.func @transform_7(%arg0: i32) -> (i32, i32) {
    %c0_i32 = arith.constant 0 : i32
    %c0_i32_0 = arith.constant 0 : i32
    %c0_i32_1 = arith.constant 0 : i32
    return %c0_i32, %c0_i32_0 : i32, i32
  }
  func.func @transform_8(%arg0: i32) -> (i32, i32) {
    %c0_i32 = arith.constant 0 : i32
    %c0_i32_0 = arith.constant 0 : i32
    %c0_i32_1 = arith.constant 0 : i32
    return %c0_i32, %c0_i32_0 : i32, i32
  }
  func.func @transform_9(%arg0: i32) -> (i32, i32) {
    %c0_i32 = arith.constant 0 : i32
    %c0_i32_0 = arith.constant 0 : i32
    %c0_i32_1 = arith.constant 0 : i32
    return %c0_i32, %c0_i32_0 : i32, i32
  }
  func.func @transform_10(%arg0: i32) -> (i32, i32, i32) {
    %c0_i32 = arith.constant 0 : i32
    %c0_i32_0 = arith.constant 0 : i32
    %c0_i32_1 = arith.constant 0 : i32
    return %c0_i32, %arg0, %c0_i32_0 : i32, i32, i32
  }
}

</mosaic_0001>

<bundles_post_ra>
// kernel: light_point_net_forward.1
= control target key start
LH: loop header
LB: loop body
LE: loop exit
PB: predicated region body
PF: predicated region fallthrough
CT: control target
= control target key end

     0   :  { %15 = vsyncpa [#allocation8], 0  ;;  %s5431_s13 = smov 0   ;;  %s5433_s14 = smov 0   ;;  %s6804_s0 = inlined_call_operand.vmem [shape: bf16[2,128,256], index: 0, kind: input, shape index: {}]   ;;  %s6805_s1 = inlined_call_operand.vmem [shape: bf16[256,512], index: 1, kind: input, shape index: {}]   ;;  %s6806_s2 = inlined_call_operand.vmem [shape: bf16[128,512], index: 2, kind: input, shape index: {}]   ;;  %s6807_s3 = inlined_call_operand.vmem [shape: f32[1,512], index: 3, kind: input, shape index: {}]   ;;  %s6808_s4 = inlined_call_operand.vmem [shape: bf16[128,512], index: 4, kind: input, shape index: {}]   ;;  %s6809_s5 = inlined_call_operand.vmem [shape: bf16[128,512], index: 5, kind: input, shape index: {}]   ;;  %s6810_s6 = inlined_call_operand.vmem [shape: f32[1,512], index: 6, kind: input, shape index: {}]   ;;  %s6811_s7 = inlined_call_operand.vmem [shape: bf16[128,512], index: 7, kind: input, shape index: {}]   ;;  %s6812_s8 = inlined_call_operand.hbm [shape: bf16[128,512], index: 8, kind: input, shape index: {}]   ;;  %s6813_s9 = inlined_call_operand.vmem [shape: f32[1,512], index: 9, kind: input, shape index: {}]   ;;  %s6814_s10 = inlined_call_operand.vmem [shape: f32[2,128,128], index: 10, kind: output, shape index: {}]  }
   0x1   :  { %s5435_s15 = smov 0  }
   0x2 LB: > { %s5447_s16 = sadd.s32 4294967295, %s5341_s15   ;;  %s5450_s17 = sadd.s32 1, %s5341_s15   ;;  %s5341_s15 = sphi %s5435_s15, %s6830_s15   ;;  %s5337_s14 = sphi %s5433_s14, %s6829_s14   ;;  %s5333_s13 = sphi %s5431_s13, %s6828_s13  }
   0x3   : > { %s25_s18 = ssub.s32 %s5341_s15, %s5450_s17  ;;  %s28_s19 = sadd.s32 1, %s5337_s14 }
   0x4   : > { %p26_p0 = scmp.eq.s32.totalorder %s25_s18, 0  ;;  %p35_p1 = scmp.ne.s32.totalorder %s5337_s14, %s5333_s13 }
   0x5   : > { %p36_p2 = scmp.eq.s32.totalorder %s5341_s15, 0  ;;  %p254_p3 = scmp.eq.s32.totalorder %s5447_s16, 1 }
   0x6   : > { %s5460_s20 = scalar_select %p26_p0, %s5337_s14, %s28_s19  }
   0x7   : > { %p5462_p4 = por %p36_p2, %p35_p1  ;;  %p5466_p5 = por %p254_p3, %p35_p1 }
   0x8   : > { %6817 = sst [smem:[#allocation11_spill]] %s5460_s20  ;;  %p4131_p6 = scmp.ge.s32.totalorder %s5341_s15, 1 }
   0x9   : > { %s6818_s21 = scalar_select %p5462_p4, 1, 0 }
   0xa   : > { %s6819_s22 = scalar_select %p5466_p5, 1, 0 }
   0xb   : > { %p267_p7 = scmp.lt.s32.totalorder %s5341_s15, 3  ;;  %p6815_p8 = scmp.eq.s32.totalorder %s5447_s16, 0 }
   0xc   : > { %s5367_s24 = smov [#allocation7]   ;;  %s5263_s29 = scalar_lea.hbm %s6812_s8, 4096 }
   0xd   : > { %p5473_p9 = pnand %p4131_p6, %p267_p7  ;;  %s300_s25 = sshll.u32 %s5367_s24, 4  ;;  %s301_s25 = int_to_ptr.vmem [resolvable:$true] %s300_s25 }
   0xe   : > { %p5264_p12 = scmp.ne.s32.totalorder %s6812_s8, %s5263_s29  ;;  %p5270_p2 = scmp.lt.u32.totalorder %s5263_s29, %s6812_s8 }
   0xf   : > { %s6820_s23 = scalar_select %p5473_p9, 1, 0 }
  0x10   : > { %p4412_p10 = pneg %p5473_p9 }
  0x12   : > { %p5481_p11 = pnand %p6815_p8, %p4412_p10 }
  0x14   : > { %p5265_p13 = pneg %p5481_p11 }
  0x16   : > { %p5266_p0 = pnand %p5265_p13, %p5264_p12 }
  0x18   : > { %p5267_p1 = pneg %p5266_p0 }
  0x1a   : > { %p5272_p3 = pnand %p5270_p2, %p5267_p1 }
  0x1c   : > { %5275 = shalt.err (!%p5272_p3)
}
  0x1d   : > { %s5276_s19 = scalar_lea.vmem %s301_s25, 4096  ;;  %p5284_p8 = scmp.lt.s32.totalorder %s301_s25, %s301_s25 }
  0x1e   : > { %p5277_p6 = scmp.ne.s32.totalorder %s301_s25, %s5276_s19  ;;  %p5285_p5 = scmp.lt.s32.totalorder %s5276_s19, %s5276_s19 }
  0x20   : > { %p5279_p7 = pnand %p5277_p6, %p5265_p13  ;;  %p5286_p9 = por %p5285_p5, %p5284_p8 }
  0x22   : > { %p5280_p10 = pneg %p5279_p7 }
  0x24   : > { %p5287_p4 = pnand %p5286_p9, %p5280_p10 }
  0x26   : > { %5290 = shalt.err (!%p5287_p4)
}
  0x27   : > { %s5368_s24 = smov 256   ;;  %s5369_s27 = smov 16  }
  0x28   : > { %4415 = dma.hbm_to_vmem [thread:$0]  (!%p5481_p11), %s6812_s8, 4096, %s301_s25, [#allocation8], %s5368_s24, %s5368_s24, %s5369_s27  }
  0x29   : > { %p4133_p12 = scmp.ge.s32.totalorder %s5341_s15, 2 }
  0x2a   : > { %p6822_p0 = scmp.ne.s32.totalorder (!%p4133_p12), %s6818_s21, 0 }
  0x2b   : > { %313 = sbr.rel (%p4133_p12) target bundleno = 62 (0x3e), region = 52 }
  0x32   : > { %316 = sbr.rel (!%p6822_p0) target bundleno = 62 (0x3e), region = 56  ;;  %s318_s29 = sand.u32 (%p6822_p0), 1, %s5337_s14  }
  0x33   : > { %s4399_s11 = sshll.u32 (%p6822_p0), %s5341_s15, 6  ;;  %s4134_s12 = sshll.u32 (%p6822_p0), %s318_s29, 7 }
  0x34   : > { %s5509_s20 = scalar_lea.vmem (%p6822_p0), %s6804_s0, %s4399_s11  ;;  %s320_s21 = scalar_lea.vmem (%p6822_p0), [#allocation6], %s4134_s12 }
  0x35   : > { %v382_v0 = vld [vmem:[%s5509_s20] sm:$0xff] (%p6822_p0)  ;;  %v384_v1 = vld [vmem:[%s5509_s20 + $0x8] sm:$0xff] (%p6822_p0)  ;;  %v386_v2 = vld [vmem:[%s5509_s20 + $0x10] sm:$0xff] (%p6822_p0) }
  0x36   : > { %383 = vst [vmem:[%s320_s21] sm:$0xff] (%p6822_p0), %v382_v0  ;;  %385 = vst [vmem:[%s320_s21 + $0x8] sm:$0xff] (%p6822_p0), %v384_v1  ;;  %v388_v3 = vld [vmem:[%s5509_s20 + $0x18] sm:$0xff] (%p6822_p0)  ;;  %v390_v4 = vld [vmem:[%s5509_s20 + $0x20] sm:$0xff] (%p6822_p0) }
  0x37   : > { %387 = vst [vmem:[%s320_s21 + $0x10] sm:$0xff] (%p6822_p0), %v386_v2  ;;  %v392_v5 = vld [vmem:[%s5509_s20 + $0x28] sm:$0xff] (%p6822_p0)  ;;  %389 = vst [vmem:[%s320_s21 + $0x18] sm:$0xff] (%p6822_p0), %v388_v3  ;;  %v394_v6 = vld [vmem:[%s5509_s20 + $0x30] sm:$0xff] (%p6822_p0) }
  0x38   : > { %391 = vst [vmem:[%s320_s21 + $0x20] sm:$0xff] (%p6822_p0), %v390_v4  ;;  %393 = vst [vmem:[%s320_s21 + $0x28] sm:$0xff] (%p6822_p0), %v392_v5  ;;  %v396_v7 = vld [vmem:[%s5509_s20 + $0x38] sm:$0xff] (%p6822_p0)  ;;  %v398_v8 = vld [vmem:[%s5509_s20 + $0x80] sm:$0xff] (%p6822_p0) }
  0x39   : > { %395 = vst [vmem:[%s320_s21 + $0x30] sm:$0xff] %v394_v6  ;;  %397 = vst [vmem:[%s320_s21 + $0x38] sm:$0xff] %v396_v7  ;;  %v400_v9 = vld [vmem:[%s5509_s20 + $0x88] sm:$0xff]  ;;  %v402_v10 = vld [vmem:[%s5509_s20 + $0x90] sm:$0xff] }
  0x3a   : > { %399 = vst [vmem:[%s320_s21 + $0x40] sm:$0xff] %v398_v8  ;;  %v404_v11 = vld [vmem:[%s5509_s20 + $0x98] sm:$0xff]  ;;  %401 = vst [vmem:[%s320_s21 + $0x48] sm:$0xff] %v400_v9  ;;  %v406_v12 = vld [vmem:[%s5509_s20 + $0xa0] sm:$0xff] }
  0x3b   : > { %403 = vst [vmem:[%s320_s21 + $0x50] sm:$0xff] %v402_v10  ;;  %405 = vst [vmem:[%s320_s21 + $0x58] sm:$0xff] %v404_v11  ;;  %v408_v13 = vld [vmem:[%s5509_s20 + $0xa8] sm:$0xff]  ;;  %v410_v14 = vld [vmem:[%s5509_s20 + $0xb0] sm:$0xff] }
  0x3c   : > { %407 = vst [vmem:[%s320_s21 + $0x60] sm:$0xff] %v406_v12  ;;  %409 = vst [vmem:[%s320_s21 + $0x68] sm:$0xff] %v408_v13  ;;  %v412_v15 = vld [vmem:[%s5509_s20 + $0xb8] sm:$0xff] }
  0x3d   : > { %411 = vst [vmem:[%s320_s21 + $0x70] sm:$0xff] %v410_v14  ;;  %413 = vst [vmem:[%s320_s21 + $0x78] sm:$0xff] %v412_v15 }
  0x3e PF: > { %p6823_p4 = scmp.ne.s32.totalorder %s6820_s23, 0 }
  0x3f   : > { %s425_s15 = sand.u32 (!%p6823_p4), 1, %s5333_s13   ;;  %p6824_p5 = scmp.eq.s32.totalorder (!%p6823_p4), %s5447_s16, 0 }
  0x40   : > { %422 = sbr.rel (%p6823_p4) target bundleno = 2002 (0x7d2), region = 94  ;;  %s5530_s25 = sshll.u32 (!%p6823_p4), %s425_s15, 7 }
  0x41   : > { %s427_s26 = scalar_lea.vmem (!%p6823_p4), [#allocation6], %s5530_s25 }
  0x47   : > { %5328 = dma.done.wait (%p6824_p5), [#allocation8], 4096   ;;  %p6825_p8 = pmov %p6824_p5 }
  0x48   : > { %s5538_s20 = scalar_lea.vmem [#allocation9], %s5530_s25  ;;  %s5540_s24 = smov 0  }
  0x49   : > { %5330 = vsyncadd (%p6825_p8), [#allocation8], 4294963200 }
  0x4a LB: >> { %v4499_v16 = vld [vmem:[%s6805_s1 + $0x4] ss:$16 sps:$4 sm:$0xff]   ;;  %v4501_v17 = vld [vmem:[%s6805_s1 + $0xc] ss:$16 sps:$4 sm:$0xff]   ;;  %v4503_v18 = vld [vmem:[%s6805_s1] ss:$16 sps:$4 sm:$0xff]   ;;  %s5345_s24 = sphi %s5540_s24, %s473_s24  }
  0x4b   : >> { %931 = vmatprep.subr.bf16.mxu0 %v4499_v16  ;;  %v4504_v19 = vld [vmem:[%s6805_s1 + $0x8] ss:$16 sps:$4 sm:$0xff]   ;;  %1004 = vmatprep.subr.bf16.mxu1 %v4501_v17  ;;  %v4505_v20 = vld [vmem:[%s6805_s1 + $0x24] ss:$16 sps:$4 sm:$0xff]   ;;  %v4507_v21 = vld [vmem:[%s6805_s1 + $0x2c] ss:$16 sps:$4 sm:$0xff]  }
  0x4c   : >> { %932 = vmatpush1.bf16.msra.mxu0 %v4503_v18  ;;  %1005 = vmatpush1.bf16.msra.mxu1 %v4504_v19  ;;  %v4509_v22 = vld [vmem:[%s6805_s1 + $0x20] ss:$16 sps:$4 sm:$0xff]   ;;  %v4510_v23 = vld [vmem:[%s6805_s1 + $0x28] ss:$16 sps:$4 sm:$0xff]   ;;  %v4511_v24 = vld [vmem:[%s6805_s1 + $0x44] ss:$16 sps:$4 sm:$0xff]  }
  0x4d   : >> { %933 = vmatprep.subr.bf16.mxu0 %v4505_v20  ;;  %1006 = vmatprep.subr.bf16.mxu1 %v4507_v21  ;;  %v4513_v25 = vld [vmem:[%s6805_s1 + $0x4c] ss:$16 sps:$4 sm:$0xff]   ;;  %v4515_v26 = vld [vmem:[%s6805_s1 + $0x40] ss:$16 sps:$4 sm:$0xff]   ;;  %v4516_v27 = vld [vmem:[%s6805_s1 + $0x48] ss:$16 sps:$4 sm:$0xff]  }
  0x4e   : >> { %v4517_v28 = vld [vmem:[%s6805_s1 + $0x64] ss:$16 sps:$4 sm:$0xff]   ;;  %v4519_v29 = vld [vmem:[%s6805_s1 + $0x6c] ss:$16 sps:$4 sm:$0xff]   ;;  %v4521_v30 = vld [vmem:[%s6805_s1 + $0x60] ss:$16 sps:$4 sm:$0xff]  }
  0x4f   : >> { %v4522_v31 = vld [vmem:[%s6805_s1 + $0x68] ss:$16 sps:$4 sm:$0xff]   ;;  %v4523_v32 = vld [vmem:[%s6805_s1 + $0x84] ss:$16 sps:$4 sm:$0xff]   ;;  %v4525_v33 = vld [vmem:[%s6805_s1 + $0x8c] ss:$16 sps:$4 sm:$0xff]  }
  0x50   : >> { %934 = vmatpush1.bf16.msra.mxu0 %v4509_v22  ;;  %1007 = vmatpush1.bf16.msra.mxu1 %v4510_v23  ;;  %v4527_v34 = vld [vmem:[%s6805_s1 + $0x80] ss:$16 sps:$4 sm:$0xff]   ;;  %v4528_v35 = vld [vmem:[%s6805_s1 + $0x88] ss:$16 sps:$4 sm:$0xff]   ;;  %v4529_v36 = vld [vmem:[%s6805_s1 + $0xa4] ss:$16 sps:$4 sm:$0xff]  }
  0x51   : >> { %935 = vmatprep.subr.bf16.mxu0 %v4511_v24  ;;  %1008 = vmatprep.subr.bf16.mxu1 %v4513_v25  ;;  %v4531_v37 = vld [vmem:[%s6805_s1 + $0xac] ss:$16 sps:$4 sm:$0xff]   ;;  %v4533_v38 = vld [vmem:[%s6805_s1 + $0xa0] ss:$16 sps:$4 sm:$0xff]   ;;  %v4534_v39 = vld [vmem:[%s6805_s1 + $0xa8] ss:$16 sps:$4 sm:$0xff]   ;;  %v551_v24 = vlaneseq }
  0x52   : >> { %v4535_v40 = vld [vmem:[%s6805_s1 + $0xc4] ss:$16 sps:$4 sm:$0xff]   ;;  %v4537_v41 = vld [vmem:[%s6805_s1 + $0xcc] ss:$16 sps:$4 sm:$0xff]   ;;  %v4539_v42 = vld [vmem:[%s6805_s1 + $0xc0] ss:$16 sps:$4 sm:$0xff]  }
  0x53   : >> { %v4540_v43 = vld [vmem:[%s6805_s1 + $0xc8] ss:$16 sps:$4 sm:$0xff]   ;;  %v4541_v44 = vld [vmem:[%s6805_s1 + $0xe4] ss:$16 sps:$4 sm:$0xff]   ;;  %v4543_v45 = vld [vmem:[%s6805_s1 + $0xec] ss:$16 sps:$4 sm:$0xff]  }
  0x54   : >> { %936 = vmatpush1.bf16.msra.mxu0 %v4515_v26  ;;  %1009 = vmatpush1.bf16.msra.mxu1 %v4516_v27  ;;  %v4545_v46 = vld [vmem:[%s6805_s1 + $0xe0] ss:$16 sps:$4 sm:$0xff]   ;;  %v4546_v47 = vld [vmem:[%s6805_s1 + $0xe8] ss:$16 sps:$4 sm:$0xff]   ;;  %v4547_v48 = vld [vmem:[%s6805_s1 + $0x104] ss:$16 sps:$4 sm:$0xff]  }
  0x55   : >> { %937 = vmatprep.subr.bf16.mxu0 %v4517_v28  ;;  %1010 = vmatprep.subr.bf16.mxu1 %v4519_v29  ;;  %v4549_v49 = vld [vmem:[%s6805_s1 + $0x10c] ss:$16 sps:$4 sm:$0xff]   ;;  %v4551_v50 = vld [vmem:[%s6805_s1 + $0x100] ss:$16 sps:$4 sm:$0xff]   ;;  %v4552_v51 = vld [vmem:[%s6805_s1 + $0x108] ss:$16 sps:$4 sm:$0xff]  }
  0x56   : >> { %v4553_v52 = vld [vmem:[%s6805_s1 + $0x124] ss:$16 sps:$4 sm:$0xff]   ;;  %v4555_v53 = vld [vmem:[%s6805_s1 + $0x12c] ss:$16 sps:$4 sm:$0xff]   ;;  %v4557_v54 = vld [vmem:[%s6805_s1 + $0x120] ss:$16 sps:$4 sm:$0xff]  }
  0x57   : >> { %v4558_v55 = vld [vmem:[%s6805_s1 + $0x128] ss:$16 sps:$4 sm:$0xff]   ;;  %v4559_v56 = vld [vmem:[%s6805_s1 + $0x144] ss:$16 sps:$4 sm:$0xff]   ;;  %v4561_v57 = vld [vmem:[%s6805_s1 + $0x14c] ss:$16 sps:$4 sm:$0xff]  }
  0x58   : >> { %938 = vmatpush1.bf16.msra.mxu0 %v4521_v30  ;;  %1011 = vmatpush1.bf16.msra.mxu1 %v4522_v31  ;;  %s4400_s13 = sshll.u32 %s5345_s24, 6  ;;  %v4563_v58 = vld [vmem:[%s6805_s1 + $0x140] ss:$16 sps:$4 sm:$0xff]   ;;  %v4564_v59 = vld [vmem:[%s6805_s1 + $0x148] ss:$16 sps:$4 sm:$0xff]   ;;  %v552_v25 = vshrl.u32 %v551_v24, 7 }
  0x59   : >> { %939 = vmatprep.subr.bf16.mxu0 %v4523_v32  ;;  %1012 = vmatprep.subr.bf16.mxu1 %v4525_v33  ;;  %v4565_v60 = vld [vmem:[%s6805_s1 + $0x164] ss:$16 sps:$4 sm:$0xff]   ;;  %s5683_s12 = scalar_lea.vmem %s427_s26, %s4400_s13 [#allocation6]  ;;  %v4567_v61 = vld [vmem:[%s6805_s1 + $0x16c] ss:$16 sps:$4 sm:$0xff]   ;;  %v4569_v62 = vld [vmem:[%s6805_s1 + $0x160] ss:$16 sps:$4 sm:$0xff]  }
  0x5a   : >> { %v4570_v63 = vld [vmem:[%s6805_s1 + $0x168] ss:$16 sps:$4 sm:$0xff]   ;;  %v4597_v0 = vld [vmem:[%s5683_s12 + $0x4] ss:$8 sps:$4 sm:$0xff]   ;;  %v4575_v3 = vld [vmem:[%s6805_s1 + $0x180] ss:$16 sps:$4 sm:$0xff]  }
  0x5b   : >> { %v4571_v1 = vld [vmem:[%s6805_s1 + $0x184] ss:$16 sps:$4 sm:$0xff]   ;;  %v4573_v2 = vld [vmem:[%s6805_s1 + $0x18c] ss:$16 sps:$4 sm:$0xff]   ;;  %963 = vmatprep.mubr.bf16.mxu0 %v4597_v0  ;;  %1036 = vmatprep.mubr.bf16.mxu1 %v4597_v0  ;;  %v4576_v4 = vld [vmem:[%s6805_s1 + $0x188] ss:$16 sps:$4 sm:$0xff]  }
  0x5c   : >> { %940 = vmatpush1.bf16.msra.mxu0 %v4527_v34  ;;  %1013 = vmatpush1.bf16.msra.mxu1 %v4528_v35  ;;  %v4577_v5 = vld [vmem:[%s6805_s1 + $0x1a4] ss:$16 sps:$4 sm:$0xff]   ;;  %v4579_v6 = vld [vmem:[%s6805_s1 + $0x1ac] ss:$16 sps:$4 sm:$0xff]   ;;  %v4581_v7 = vld [vmem:[%s6805_s1 + $0x1a0] ss:$16 sps:$4 sm:$0xff]  }
  0x5d   : >> { %941 = vmatprep.subr.bf16.mxu0 %v4529_v36  ;;  %1014 = vmatprep.subr.bf16.mxu1 %v4531_v37  ;;  %v4582_v8 = vld [vmem:[%s6805_s1 + $0x1a8] ss:$16 sps:$4 sm:$0xff]   ;;  %v4583_v9 = vld [vmem:[%s6805_s1 + $0x1c4] ss:$16 sps:$4 sm:$0xff]   ;;  %v4585_v10 = vld [vmem:[%s6805_s1 + $0x1cc] ss:$16 sps:$4 sm:$0xff]  }
  0x5e   : >> { %v4587_v11 = vld [vmem:[%s6805_s1 + $0x1c0] ss:$16 sps:$4 sm:$0xff]   ;;  %v4588_v12 = vld [vmem:[%s6805_s1 + $0x1c8] ss:$16 sps:$4 sm:$0xff]   ;;  %v4589_v13 = vld [vmem:[%s6805_s1 + $0x1e4] ss:$16 sps:$4 sm:$0xff]  }
  0x5f   : >> { %v4591_v14 = vld [vmem:[%s6805_s1 + $0x1ec] ss:$16 sps:$4 sm:$0xff]   ;;  %v4593_v15 = vld [vmem:[%s6805_s1 + $0x1e0] ss:$16 sps:$4 sm:$0xff]   ;;  %v4594_v16 = vld [vmem:[%s6805_s1 + $0x1e8] ss:$16 sps:$4 sm:$0xff]  }
  0x60   : >> { %942 = vmatpush1.bf16.msra.mxu0 %v4533_v38  ;;  %1015 = vmatpush1.bf16.msra.mxu1 %v4534_v39  ;;  %v4595_v17 = vld [vmem:[%s5683_s12] ss:$8 sps:$4 sm:$0xff]   ;;  %v4598_v18 = vld [vmem:[%s5683_s12 + $0x14] ss:$8 sps:$4 sm:$0xff]   ;;  %v4600_v19 = vld [vmem:[%s5683_s12 + $0x10] ss:$8 sps:$4 sm:$0xff]  }
  0x61   : >> { %943 = vmatprep.subr.bf16.mxu0 %v4535_v40  ;;  %1016 = vmatprep.subr.bf16.mxu1 %v4537_v41  ;;  %v4601_v20 = vld [vmem:[%s5683_s12 + $0x24] ss:$8 sps:$4 sm:$0xff]   ;;  %v4603_v21 = vld [vmem:[%s5683_s12 + $0x20] ss:$8 sps:$4 sm:$0xff]   ;;  %v4604_v22 = vld [vmem:[%s5683_s12 + $0x34] ss:$8 sps:$4 sm:$0xff]  }
  0x62   : >> { %v4606_v23 = vld [vmem:[%s5683_s12 + $0x30] ss:$8 sps:$4 sm:$0xff]   ;;  %v5750_v26 = vsub.s32 0, %v552_v25  ;;  %v5752_v27 = vsub.s32 2, %v552_v25  ;;  %v549_v28 = vld [vmem:[%s6807_s3] sm:$0xf] }
  0x63   : >> { %v5757_v29 = vsub.s32 1, %v552_v25  ;;  %v5759_v30 = vsub.s32 3, %v552_v25  ;;  %s4401_s28 = sshll.u32 %s5345_s24, 8  ;;  %s473_s24 = sadd.s32 1, %s5345_s24  }
  0x64   : >> { %944 = vmatpush1.bf16.msra.mxu0 %v4539_v42  ;;  %1017 = vmatpush1.bf16.msra.mxu1 %v4540_v43  ;;  %v5763_v31 = vrot.slane %v549_v28, %v5750_v26  ;;  %v5766_v32 = vrot.slane %v549_v28, %v5752_v27  ;;  %s5778_s12 = scalar_lea.vmem [#allocation3], %s4401_s28  ;;  %p470_p9 = scmp.ge.s32.totalorder %s473_s24, 2  }
  0x65   : >> { %945 = vmatprep.subr.bf16.mxu0 %v4541_v44  ;;  %1018 = vmatprep.subr.bf16.mxu1 %v4543_v45  ;;  %v5769_v33 = vrot.slane %v549_v28, %v5757_v29  ;;  %v5772_v34 = vrot.slane %v549_v28, %v5759_v30  ;;  %s5859_s25 = smov (%p470_p9), 0  }
  0x68   : >> { %946 = vmatpush1.bf16.msra.mxu0 %v4545_v46  ;;  %1019 = vmatpush1.bf16.msra.mxu1 %v4546_v47 }
  0x69   : >> { %947 = vmatprep.subr.bf16.mxu0 %v4547_v48  ;;  %1020 = vmatprep.subr.bf16.mxu1 %v4549_v49 }
  0x6c   : >> { %948 = vmatpush1.bf16.msra.mxu0 %v4551_v50  ;;  %1021 = vmatpush1.bf16.msra.mxu1 %v4552_v51 }
  0x6d   : >> { %949 = vmatprep.subr.bf16.mxu0 %v4553_v52  ;;  %1022 = vmatprep.subr.bf16.mxu1 %v4555_v53 }
  0x70   : >> { %950 = vmatpush1.bf16.msra.mxu0 %v4557_v54  ;;  %1023 = vmatpush1.bf16.msra.mxu1 %v4558_v55 }
  0x71   : >> { %951 = vmatprep.subr.bf16.mxu0 %v4559_v56  ;;  %1024 = vmatprep.subr.bf16.mxu1 %v4561_v57 }
  0x74   : >> { %952 = vmatpush1.bf16.msra.mxu0 %v4563_v58  ;;  %1025 = vmatpush1.bf16.msra.mxu1 %v4564_v59 }
  0x75   : >> { %953 = vmatprep.subr.bf16.mxu0 %v4565_v60  ;;  %1026 = vmatprep.subr.bf16.mxu1 %v4567_v61 }
  0x78   : >> { %954 = vmatpush1.bf16.msra.mxu0 %v4569_v62  ;;  %1027 = vmatpush1.bf16.msra.mxu1 %v4570_v63 }
  0x79   : >> { %955 = vmatprep.subr.bf16.mxu0 %v4571_v1  ;;  %1028 = vmatprep.subr.bf16.mxu1 %v4573_v2 }
  0x7c   : >> { %956 = vmatpush1.bf16.msra.mxu0 %v4575_v3  ;;  %1029 = vmatpush1.bf16.msra.mxu1 %v4576_v4 }
  0x7d   : >> { %957 = vmatprep.subr.bf16.mxu0 %v4577_v5  ;;  %1030 = vmatprep.subr.bf16.mxu1 %v4579_v6 }
  0x80   : >> { %958 = vmatpush1.bf16.msra.mxu0 %v4581_v7  ;;  %1031 = vmatpush1.bf16.msra.mxu1 %v4582_v8 }
  0x81   : >> { %959 = vmatprep.subr.bf16.mxu0 %v4583_v9  ;;  %1032 = vmatprep.subr.bf16.mxu1 %v4585_v10 }
  0x84   : >> { %960 = vmatpush1.bf16.msra.mxu0 %v4587_v11  ;;  %1033 = vmatpush1.bf16.msra.mxu1 %v4588_v12 }
  0x85   : >> { %961 = vmatprep.subr.bf16.mxu0 %v4589_v13  ;;  %1034 = vmatprep.subr.bf16.mxu1 %v4591_v14 }
  0x88   : >> { %962 = vmatpush1.bf16.msra.mxu0 %v4593_v15  ;;  %1035 = vmatpush1.bf16.msra.mxu1 %v4594_v16 }
  0x8b   : >> { %964 = vmatmul.mubr.bf16.vlgmr.msra.gmra.mrb[0].mxu0 %v4595_v17  ;;  %1037 = vmatmul.mubr.bf16.vlgmr.msra.gmra.mrb[0].mxu1 %v4595_v17 }
  0x8c   : >> { %973 = vmatprep.mubr.bf16.mxu0 %v4598_v18  ;;  %1046 = vmatprep.mubr.bf16.mxu1 %v4598_v18 }
  0x93   : >> { %974 = vmatmul.mubr.bf16.gmra.mrb[4].mxu0 %v4600_v19  ;;  %1047 = vmatmul.mubr.bf16.gmra.mrb[4].mxu1 %v4600_v19 }
  0x94   : >> { %983 = vmatprep.mubr.bf16.mxu0 %v4601_v20  ;;  %1056 = vmatprep.mubr.bf16.mxu1 %v4601_v20 }
  0x9b   : >> { %984 = vmatmul.mubr.bf16.gmra.mrb[8].mxu0 %v4603_v21  ;;  %1057 = vmatmul.mubr.bf16.gmra.mrb[8].mxu1 %v4603_v21 }
  0x9c   : >> { %993 = vmatprep.mubr.bf16.mxu0 %v4604_v22  ;;  %1066 = vmatprep.mubr.bf16.mxu1 %v4604_v22 }
  0xa3   : >> { %994 = vmatmul.mubr.bf16.gmra.mrb[12].mxu0 %v4606_v23  ;;  %1067 = vmatmul.mubr.bf16.gmra.mrb[12].mxu1 %v4606_v23 }
 0x15e   : >> { %v965_v35 = vpop.f32.mrb[0].mxu0  ;;  %v1038_v36 = vpop.f32.mrb[0].mxu1 }
 0x15f   : >> { %v966_v37 = vadd.f32 %v965_v35, %v5763_v31  ;;  %v1039_v38 = vadd.f32 %v1038_v36, %v5766_v32  ;;  %v967_v39 = vpop.f32.mrb[1].mxu0  ;;  %v1040_v40 = vpop.f32.mrb[1].mxu1 }
 0x160   : >> { %v968_v41 = vadd.f32 %v967_v39, %v5769_v33  ;;  %v1041_v42 = vadd.f32 %v1040_v40, %v5772_v34  ;;  %v969_v43 = vpop.f32.mrb[2].mxu0  ;;  %v1042_v44 = vpop.f32.mrb[2].mxu1 }
 0x161   : >> { %1080 = vst [vmem:[%s5778_s12] sm:$0xff] %v966_v37  ;;  %1082 = vst [vmem:[%s5778_s12 + $0x10] sm:$0xff] %v1039_v38  ;;  %v970_v45 = vadd.f32 %v969_v43, %v5763_v31  ;;  %v1043_v46 = vadd.f32 %v1042_v44, %v5766_v32  ;;  %v971_v47 = vpop.f32.mrb[3].mxu0  ;;  %v1044_v48 = vpop.f32.mrb[3].mxu1 }
 0x162   : >> { %1081 = vst [vmem:[%s5778_s12 + $0x8] sm:$0xff] %v968_v41  ;;  %1083 = vst [vmem:[%s5778_s12 + $0x18] sm:$0xff] %v1041_v42  ;;  %v972_v49 = vadd.f32 %v971_v47, %v5769_v33  ;;  %v1045_v50 = vadd.f32 %v1044_v48, %v5772_v34 }
 0x163   : >> { %1084 = vst [vmem:[%s5778_s12 + $0x20] sm:$0xff] %v970_v45  ;;  %1086 = vst [vmem:[%s5778_s12 + $0x30] sm:$0xff] %v1043_v46 }
 0x164   : >> { %1085 = vst [vmem:[%s5778_s12 + $0x28] sm:$0xff] %v972_v49  ;;  %1087 = vst [vmem:[%s5778_s12 + $0x38] sm:$0xff] %v1045_v50 }
 0x166   : >> { %v975_v51 = vpop.f32.mrb[4].mxu0  ;;  %v1048_v52 = vpop.f32.mrb[4].mxu1 }
 0x167   : >> { %v976_v53 = vadd.f32 %v975_v51, %v5763_v31  ;;  %v1049_v54 = vadd.f32 %v1048_v52, %v5766_v32  ;;  %v977_v55 = vpop.f32.mrb[5].mxu0  ;;  %v1050_v56 = vpop.f32.mrb[5].mxu1 }
 0x168   : >> { %v978_v57 = vadd.f32 %v977_v55, %v5769_v33  ;;  %v1051_v58 = vadd.f32 %v1050_v56, %v5772_v34  ;;  %v979_v59 = vpop.f32.mrb[6].mxu0  ;;  %v1052_v60 = vpop.f32.mrb[6].mxu1 }
 0x169   : >> { %1088 = vst [vmem:[%s5778_s12 + $0x40] sm:$0xff] %v976_v53  ;;  %1090 = vst [vmem:[%s5778_s12 + $0x50] sm:$0xff] %v1049_v54  ;;  %v980_v61 = vadd.f32 %v979_v59, %v5763_v31  ;;  %v1053_v62 = vadd.f32 %v1052_v60, %v5766_v32  ;;  %v981_v63 = vpop.f32.mrb[7].mxu0  ;;  %v1054_v0 = vpop.f32.mrb[7].mxu1 }
 0x16a   : >> { %1089 = vst [vmem:[%s5778_s12 + $0x48] sm:$0xff] %v978_v57  ;;  %1091 = vst [vmem:[%s5778_s12 + $0x58] sm:$0xff] %v1051_v58  ;;  %v982_v1 = vadd.f32 %v981_v63, %v5769_v33  ;;  %v1055_v2 = vadd.f32 %v1054_v0, %v5772_v34 }
 0x16b   : >> { %1092 = vst [vmem:[%s5778_s12 + $0x60] sm:$0xff] %v980_v61  ;;  %1094 = vst [vmem:[%s5778_s12 + $0x70] sm:$0xff] %v1053_v62 }
 0x16c   : >> { %1093 = vst [vmem:[%s5778_s12 + $0x68] sm:$0xff] %v982_v1  ;;  %1095 = vst [vmem:[%s5778_s12 + $0x78] sm:$0xff] %v1055_v2 }
 0x16e   : >> { %v985_v3 = vpop.f32.mrb[8].mxu0  ;;  %v1058_v4 = vpop.f32.mrb[8].mxu1 }
 0x16f   : >> { %v986_v5 = vadd.f32 %v985_v3, %v5763_v31  ;;  %v1059_v6 = vadd.f32 %v1058_v4, %v5766_v32  ;;  %v987_v7 = vpop.f32.mrb[9].mxu0  ;;  %v1060_v8 = vpop.f32.mrb[9].mxu1 }
 0x170   : >> { %v988_v9 = vadd.f32 %v987_v7, %v5769_v33  ;;  %v1061_v10 = vadd.f32 %v1060_v8, %v5772_v34  ;;  %v989_v11 = vpop.f32.mrb[10].mxu0  ;;  %v1062_v12 = vpop.f32.mrb[10].mxu1 }
 0x171   : >> { %1096 = vst [vmem:[%s5778_s12 + $0x80] sm:$0xff] %v986_v5  ;;  %1098 = vst [vmem:[%s5778_s12 + $0x90] sm:$0xff] %v1059_v6  ;;  %v990_v13 = vadd.f32 %v989_v11, %v5763_v31  ;;  %v1063_v14 = vadd.f32 %v1062_v12, %v5766_v32  ;;  %v991_v15 = vpop.f32.mrb[11].mxu0  ;;  %v1064_v16 = vpop.f32.mrb[11].mxu1 }
 0x172   : >> { %1097 = vst [vmem:[%s5778_s12 + $0x88] sm:$0xff] %v988_v9  ;;  %1099 = vst [vmem:[%s5778_s12 + $0x98] sm:$0xff] %v1061_v10  ;;  %v992_v17 = vadd.f32 %v991_v15, %v5769_v33  ;;  %v1065_v18 = vadd.f32 %v1064_v16, %v5772_v34 }
 0x173   : >> { %1100 = vst [vmem:[%s5778_s12 + $0xa0] sm:$0xff] %v990_v13  ;;  %1102 = vst [vmem:[%s5778_s12 + $0xb0] sm:$0xff] %v1063_v14 }
 0x174   : >> { %1101 = vst [vmem:[%s5778_s12 + $0xa8] sm:$0xff] %v992_v17  ;;  %1103 = vst [vmem:[%s5778_s12 + $0xb8] sm:$0xff] %v1065_v18 }
 0x176   : >> { %v995_v19 = vpop.f32.mrb[12].mxu0  ;;  %v1068_v20 = vpop.f32.mrb[12].mxu1  ;;  %472 = sbr.rel (!%p470_p9) target bundleno = 74 (0x4a), region = 230 }
 0x177   : >> { %v996_v21 = vadd.f32 %v995_v19, %v5763_v31  ;;  %v1069_v22 = vadd.f32 %v1068_v20, %v5766_v32  ;;  %v997_v23 = vpop.f32.mrb[13].mxu0  ;;  %v1070_v24 = vpop.f32.mrb[13].mxu1 }
 0x178   : >> { %v998_v25 = vadd.f32 %v997_v23, %v5769_v33  ;;  %v1071_v28 = vadd.f32 %v1070_v24, %v5772_v34  ;;  %v999_v35 = vpop.f32.mrb[14].mxu0  ;;  %v1072_v36 = vpop.f32.mrb[14].mxu1 }
 0x179   : >> { %1104 = vst [vmem:[%s5778_s12 + $0xc0] sm:$0xff] %v996_v21  ;;  %1106 = vst [vmem:[%s5778_s12 + $0xd0] sm:$0xff] %v1069_v22  ;;  %v1000_v37 = vadd.f32 %v999_v35, %v5763_v31  ;;  %v1073_v38 = vadd.f32 %v1072_v36, %v5766_v32  ;;  %v1001_v39 = vpop.f32.mrb[15].mxu0  ;;  %v1074_v40 = vpop.f32.mrb[15].mxu1  ;;  %v5370_v31 = vmov (%p470_p9), 0.0  }
 0x17a   : >> { %1105 = vst [vmem:[%s5778_s12 + $0xc8] sm:$0xff] %v998_v25  ;;  %1107 = vst [vmem:[%s5778_s12 + $0xd8] sm:$0xff] %v1071_v28  ;;  %v1002_v41 = vadd.f32 %v1001_v39, %v5769_v33  ;;  %v1075_v42 = vadd.f32 %v1074_v40, %v5772_v34 }
 0x17b   : >> { %1108 = vst [vmem:[%s5778_s12 + $0xe0] sm:$0xff] %v1000_v37  ;;  %1110 = vst [vmem:[%s5778_s12 + $0xf0] sm:$0xff] %v1073_v38 }
 0x17c   : >> { %1109 = vst [vmem:[%s5778_s12 + $0xe8] sm:$0xff] %v1002_v41  ;;  %1111 = vst [vmem:[%s5778_s12 + $0xf8] sm:$0xff] %v1075_v42 }
 0x17d   : > { %1112 = vst [vmem:[#allocation4] sm:$0xff] %v5370_v31  ;;  %1113 = vst [vmem:[#allocation4 + $0x8] sm:$0xff] %v5370_v31 }
 0x17e   : > { %1114 = vst [vmem:[#allocation4 + $0x10] sm:$0xff] %v5370_v31  ;;  %1115 = vst [vmem:[#allocation4 + $0x18] sm:$0xff] %v5370_v31 }
 0x17f   : > { %1116 = vst [vmem:[#allocation4 + $0x20] sm:$0xff] %v5370_v31  ;;  %1117 = vst [vmem:[#allocation4 + $0x28] sm:$0xff] %v5370_v31 }
 0x180   : > { %1118 = vst [vmem:[#allocation4 + $0x30] sm:$0xff] %v5370_v31  ;;  %1119 = vst [vmem:[#allocation4 + $0x38] sm:$0xff] %v5370_v31 }
 0x181   : > { %1120 = vst [vmem:[#allocation5] sm:$0xff] %v5370_v31  ;;  %1121 = vst [vmem:[#allocation5 + $0x8] sm:$0xff] %v5370_v31 }
 0x182   : > { %1122 = vst [vmem:[#allocation5 + $0x10] sm:$0xff] %v5370_v31  ;;  %1123 = vst [vmem:[#allocation5 + $0x18] sm:$0xff] %v5370_v31 }
 0x183   : > { %1124 = vst [vmem:[#allocation5 + $0x20] sm:$0xff] %v5370_v31  ;;  %1125 = vst [vmem:[#allocation5 + $0x28] sm:$0xff] %v5370_v31 }
 0x184   : > { %1126 = vst [vmem:[#allocation5 + $0x30] sm:$0xff] %v5370_v31  ;;  %1127 = vst [vmem:[#allocation5 + $0x38] sm:$0xff] %v5370_v31 }
 0x185 LB: >> { %v4607_v32 = vld [vmem:[%s6806_s2 + $0x4] ss:$16 sps:$4 sm:$0xff]   ;;  %v4609_v33 = vld [vmem:[%s6806_s2] ss:$16 sps:$4 sm:$0xff]   ;;  %v5371_v34 = vmov 0   ;;  %v1170_v7 = vld [vmem:[#allocation4 + $0x8] sm:$0xff]  ;;  %s5349_s25 = sphi %s5859_s25, %s1133_s25  }
 0x186   : >> { %1405 = vmatprep.mubr.bf16.mxu0 %v5371_v34  ;;  %1478 = vmatprep.mubr.bf16.mxu1 %v5371_v34  ;;  %v4610_v43 = vld [vmem:[%s6806_s2 + $0x24] ss:$16 sps:$4 sm:$0xff]   ;;  %v4612_v44 = vld [vmem:[%s6806_s2 + $0x20] ss:$16 sps:$4 sm:$0xff]   ;;  %v4618_v46 = vld [vmem:[%s6806_s2 + $0xc] ss:$16 sps:$4 sm:$0xff]  }
 0x187   : >> { %1373 = vmatprep.subr.bf16.mxu0 %v4607_v32  ;;  %v4613_v45 = vld [vmem:[%s6806_s2 + $0x44] ss:$16 sps:$4 sm:$0xff]   ;;  %v4621_v47 = vld [vmem:[%s6806_s2 + $0x8] ss:$16 sps:$4 sm:$0xff]   ;;  %v4615_v48 = vld [vmem:[%s6806_s2 + $0x40] ss:$16 sps:$4 sm:$0xff]   ;;  %1446 = vmatprep.subr.bf16.mxu1 %v4618_v46 }
 0x188   : >> { %1374 = vmatpush1.bf16.msra.mxu0 %v4609_v33  ;;  %v4616_v49 = vld [vmem:[%s6806_s2 + $0x64] ss:$16 sps:$4 sm:$0xff]   ;;  %1447 = vmatpush1.bf16.msra.mxu1 %v4621_v47  ;;  %v4624_v50 = vld [vmem:[%s6806_s2 + $0x2c] ss:$16 sps:$4 sm:$0xff]   ;;  %v4627_v51 = vld [vmem:[%s6806_s2 + $0x28] ss:$16 sps:$4 sm:$0xff]  }
 0x189   : >> { %1375 = vmatprep.subr.bf16.mxu0 %v4610_v43  ;;  %1448 = vmatprep.subr.bf16.mxu1 %v4624_v50  ;;  %v4620_v52 = vld [vmem:[%s6806_s2 + $0x60] ss:$16 sps:$4 sm:$0xff]   ;;  %v4622_v53 = vld [vmem:[%s6806_s2 + $0x84] ss:$16 sps:$4 sm:$0xff]   ;;  %v4630_v54 = vld [vmem:[%s6806_s2 + $0x4c] ss:$16 sps:$4 sm:$0xff]  }
 0x18a   : >> { %v4633_v55 = vld [vmem:[%s6806_s2 + $0x48] ss:$16 sps:$4 sm:$0xff]   ;;  %v4636_v56 = vld [vmem:[%s6806_s2 + $0x6c] ss:$16 sps:$4 sm:$0xff]   ;;  %v4626_v57 = vld [vmem:[%s6806_s2 + $0x80] ss:$16 sps:$4 sm:$0xff]  }
 0x18b   : >> { %v4628_v58 = vld [vmem:[%s6806_s2 + $0xa4] ss:$16 sps:$4 sm:$0xff]   ;;  %v4639_v59 = vld [vmem:[%s6806_s2 + $0x68] ss:$16 sps:$4 sm:$0xff]   ;;  %v4642_v60 = vld [vmem:[%s6806_s2 + $0x8c] ss:$16 sps:$4 sm:$0xff]  }
 0x18c   : >> { %1376 = vmatpush1.bf16.msra.mxu0 %v4612_v44  ;;  %1449 = vmatpush1.bf16.msra.mxu1 %v4627_v51  ;;  %v4632_v61 = vld [vmem:[%s6806_s2 + $0xa0] ss:$16 sps:$4 sm:$0xff]   ;;  %v4634_v62 = vld [vmem:[%s6806_s2 + $0xc4] ss:$16 sps:$4 sm:$0xff]   ;;  %v4645_v63 = vld [vmem:[%s6806_s2 + $0x88] ss:$16 sps:$4 sm:$0xff]  }
 0x18d   : >> { %1377 = vmatprep.subr.bf16.mxu0 %v4613_v45  ;;  %1450 = vmatprep.subr.bf16.mxu1 %v4630_v54  ;;  %v4646_v0 = vld [vmem:[%s6806_s2 + $0xac] ss:$16 sps:$4 sm:$0xff]   ;;  %v4638_v1 = vld [vmem:[%s6806_s2 + $0xc0] ss:$16 sps:$4 sm:$0xff]   ;;  %v4640_v2 = vld [vmem:[%s6806_s2 + $0xe4] ss:$16 sps:$4 sm:$0xff]  }
 0x18e   : >> { %v4648_v3 = vld [vmem:[%s6806_s2 + $0xa8] ss:$16 sps:$4 sm:$0xff]   ;;  %v4649_v4 = vld [vmem:[%s6806_s2 + $0xcc] ss:$16 sps:$4 sm:$0xff]   ;;  %v4644_v5 = vld [vmem:[%s6806_s2 + $0xe0] ss:$16 sps:$4 sm:$0xff]  }
 0x18f   : >> { %v1169_v6 = vld [vmem:[#allocation4] sm:$0xff]  ;;  %v4651_v8 = vld [vmem:[%s6806_s2 + $0xc8] ss:$16 sps:$4 sm:$0xff]   ;;  %v4652_v9 = vld [vmem:[%s6806_s2 + $0xec] ss:$16 sps:$4 sm:$0xff]   ;;  %s4402_s15 = sshll.u32 %s5349_s25, 8 }
 0x190   : >> { %1378 = vmatpush1.bf16.msra.mxu0 %v4615_v48  ;;  %1451 = vmatpush1.bf16.msra.mxu1 %v4633_v55  ;;  %v1177_v10 = vpack.c.bf16 %v1170_v7, %v1169_v6  ;;  %v4654_v11 = vld [vmem:[%s6806_s2 + $0xe8] ss:$16 sps:$4 sm:$0xff]   ;;  %v1171_v12 = vld [vmem:[#allocation4 + $0x10] sm:$0xff]  ;;  %v1173_v15 = vld [vmem:[#allocation4 + $0x20] sm:$0xff]  ;;  %s5969_s23 = scalar_lea.vmem [#allocation3], %s4402_s15  ;;  %s4252_s27 = sshll.u32 %s5349_s25, 6 }
 0x191   : >> { %1379 = vmatprep.subr.bf16.mxu0 %v4616_v49  ;;  %1452 = vmatprep.subr.bf16.mxu1 %v4636_v56  ;;  %v1172_v13 = vld [vmem:[#allocation4 + $0x18] sm:$0xff]  ;;  %v1174_v16 = vld [vmem:[#allocation4 + $0x28] sm:$0xff]  ;;  %v1175_v18 = vld [vmem:[#allocation4 + $0x30] sm:$0xff]  ;;  %s6036_s13 = scalar_lea.vmem [#allocation2], %s4252_s27  ;;  %s1133_s25 = sadd.s32 1, %s5349_s25  }
 0x192   : >> { %v1178_v14 = vpack.c.bf16 %v1172_v13, %v1171_v12  ;;  %v1179_v17 = vpack.c.bf16 %v1174_v16, %v1173_v15  ;;  %v1176_v19 = vld [vmem:[#allocation4 + $0x38] sm:$0xff]  ;;  %v1137_v21 = vld [vmem:[%s5969_s23] sm:$0xff]  ;;  %v1138_v22 = vld [vmem:[%s5969_s23 + $0x8] sm:$0xff]  ;;  %p1130_p11 = scmp.ge.s32.totalorder %s1133_s25, 2  }
 0x193   : >> { %v1180_v20 = vpack.c.bf16 %v1176_v19, %v1175_v18  ;;  %v1141_v24 = vld [vmem:[%s5969_s23 + $0x20] sm:$0xff]  ;;  %v1142_v35 = vld [vmem:[%s5969_s23 + $0x28] sm:$0xff]  ;;  %v1140_v32 = vld [vmem:[%s5969_s23 + $0x18] sm:$0xff]  ;;  %s6055_s28 = smov (%p1130_p11), 0  }
 0x194   : >> { %1380 = vmatpush1.bf16.msra.mxu0 %v4620_v52  ;;  %1453 = vmatpush1.bf16.msra.mxu1 %v4639_v59  ;;  %v1139_v43 = vld [vmem:[%s5969_s23 + $0x10] sm:$0xff]  ;;  %v1145_v47 = vld [vmem:[%s5969_s23 + $0x40] sm:$0xff]  ;;  %v1144_v49 = vld [vmem:[%s5969_s23 + $0x38] sm:$0xff] }
 0x195   : >> { %1381 = vmatprep.subr.bf16.mxu0 %v4622_v53  ;;  %1454 = vmatprep.subr.bf16.mxu1 %v4642_v60  ;;  %v1146_v51 = vld [vmem:[%s5969_s23 + $0x48] sm:$0xff]  ;;  %v1143_v53 = vld [vmem:[%s5969_s23 + $0x30] sm:$0xff]  ;;  %v1153_v16 = vld [vmem:[%s5969_s23 + $0x80] sm:$0xff] }
 0x198   : >> { %1382 = vmatpush1.bf16.msra.mxu0 %v4626_v57  ;;  %1455 = vmatpush1.bf16.msra.mxu1 %v4645_v63  ;;  %v1149_v57 = vld [vmem:[%s5969_s23 + $0x60] sm:$0xff] }
 0x199   : >> { %1383 = vmatprep.subr.bf16.mxu0 %v4628_v58  ;;  %1456 = vmatprep.subr.bf16.mxu1 %v4646_v0 }
 0x19c   : >> { %1384 = vmatpush1.bf16.msra.mxu0 %v4632_v61  ;;  %1457 = vmatpush1.bf16.msra.mxu1 %v4648_v3 }
 0x19d   : >> { %1385 = vmatprep.subr.bf16.mxu0 %v4634_v62  ;;  %1458 = vmatprep.subr.bf16.mxu1 %v4649_v4  ;;  %v1150_v62 = vld [vmem:[%s5969_s23 + $0x68] sm:$0xff] }
 0x1a0   : >> { %1386 = vmatpush1.bf16.msra.mxu0 %v4638_v1  ;;  %1459 = vmatpush1.bf16.msra.mxu1 %v4651_v8 }
 0x1a1   : >> { %1387 = vmatprep.subr.bf16.mxu0 %v4640_v2  ;;  %1460 = vmatprep.subr.bf16.mxu1 %v4652_v9 }
 0x1a4   : >> { %1388 = vmatpush1.bf16.msra.mxu0 %v4644_v5  ;;  %1461 = vmatpush1.bf16.msra.mxu1 %v4654_v11 }
 0x1a7   : >> { %1406 = vmatmul.mubr.bf16.vlgmr.msra.gmra.mrb[0].mxu0 %v1177_v10  ;;  %1479 = vmatmul.mubr.bf16.vlgmr.msra.gmra.mrb[0].mxu1 %v1177_v10 }
 0x1a8   : >> { %1415 = vmatprep.mubr.bf16.mxu0 %v5371_v34  ;;  %1488 = vmatprep.mubr.bf16.mxu1 %v5371_v34 }
 0x1af   : >> { %1416 = vmatmul.mubr.bf16.gmra.mrb[4].mxu0 %v1178_v14  ;;  %1489 = vmatmul.mubr.bf16.gmra.mrb[4].mxu1 %v1178_v14 }
 0x1b0   : >> { %1425 = vmatprep.mubr.bf16.mxu0 %v5371_v34  ;;  %1498 = vmatprep.mubr.bf16.mxu1 %v5371_v34 }
 0x1b7   : >> { %1426 = vmatmul.mubr.bf16.gmra.mrb[8].mxu0 %v1179_v17  ;;  %1499 = vmatmul.mubr.bf16.gmra.mrb[8].mxu1 %v1179_v17 }
 0x1b8   : >> { %1435 = vmatprep.mubr.bf16.mxu0 %v5371_v34  ;;  %1508 = vmatprep.mubr.bf16.mxu1 %v5371_v34 }
 0x1bf   : >> { %1436 = vmatmul.mubr.bf16.gmra.mrb[12].mxu0 %v1180_v20  ;;  %1509 = vmatmul.mubr.bf16.gmra.mrb[12].mxu1 %v1180_v20  ;;  %v1154_v20 = vld [vmem:[%s5969_s23 + $0x88] sm:$0xff] }
 0x27a   : >> { %v1407_v23 = vpop.f32.mrb[0].mxu0  ;;  %v1480_v44 = vpop.f32.mrb[0].mxu1 }
 0x27b   : >> { %v1519_v25 = vadd.f32 %v1407_v23, %v1137_v21  ;;  %v1409_v28 = vpop.f32.mrb[1].mxu0  ;;  %v1482_v48 = vpop.f32.mrb[1].mxu1  ;;  %v1521_v58 = vadd.f32 %v1480_v44, %v1139_v43 }
 0x27c   : >> { %v1520_v36 = vadd.f32 %v1409_v28, %v1138_v22  ;;  %v1411_v37 = vpop.f32.mrb[2].mxu0  ;;  %v1522_v52 = vadd.f32 %v1482_v48, %v1140_v32  ;;  %v1484_v54 = vpop.f32.mrb[2].mxu1  ;;  %v1148_v48 = vld [vmem:[%s5969_s23 + $0x58] sm:$0xff] }
 0x27d   : >> { %v1551_v38 = vsub.f32 0.0, %v1519_v25  ;;  %v1523_v39 = vadd.f32 %v1411_v37, %v1141_v24  ;;  %v1413_v40 = vpop.f32.mrb[3].mxu0  ;;  %v1486_v59 = vpop.f32.mrb[3].mxu1  ;;  %v1525_v3 = vadd.f32 %v1484_v54, %v1143_v53  ;;  %v1157_v24 = vld [vmem:[%s5969_s23 + $0xa0] sm:$0xff]  ;;  %v1158_v37 = vld [vmem:[%s5969_s23 + $0xa8] sm:$0xff] }
 0x27e   : >> { %v1591_v41 = vsub.f32 0.0, %v1520_v36  ;;  %v1524_v42 = vadd.f32 %v1413_v40, %v1142_v35  ;;  %v1639_v63 = vsub.f32 0.0, %v1522_v52  ;;  %v1526_v0 = vadd.f32 %v1486_v59, %v1144_v49 }
 0x27f   : >> { %v1559_v33 = vmul.f32 1.442695, %v1551_v38  ;;  %v1552_v34 = vsub.f32 0.0, %v1523_v39 }
 0x280   : >> { %v1599_v45 = vmul.f32 1.442695, %v1591_v41  ;;  %v1592_v46 = vsub.f32 0.0, %v1524_v42  ;;  %v1647_v7 = vmul.f32 1.442695, %v1639_v63  ;;  %v1640_v10 = vsub.f32 0.0, %v1526_v0 }
 0x281   : >> { %4655 = vpow2.f32 %v1559_v33  ;;  %v1561_v50 = vmul.f32 1.442695, %v1552_v34 }
 0x282   : >> { %4657 = vpow2.f32 %v1599_v45  ;;  %v1601_v55 = vmul.f32 1.442695, %v1592_v46  ;;  %v1417_v56 = vpop.f32.mrb[4].mxu0  ;;  %v5983_v13 = vpop.f32.mrb[4].mxu1  ;;  %v1649_v19 = vmul.f32 1.442695, %v1640_v10 }
 0x283   : >> { %4659 = vpow2.f32 %v1561_v50  ;;  %v1527_v60 = vadd.f32 %v1417_v56, %v1145_v47  ;;  %v1419_v61 = vpop.f32.mrb[5].mxu0  ;;  %v1492_v17 = vpop.f32.mrb[5].mxu1  ;;  %v1152_v10 = vld [vmem:[%s5969_s23 + $0x78] sm:$0xff] }
 0x284   : >> { %4661 = vpow2.f32 %v1601_v55  ;;  %v1528_v1 = vadd.f32 %v1419_v61, %v1146_v51  ;;  %v1421_v2 = vpop.f32.mrb[6].mxu0  ;;  %v5987_v21 = vpop.f32.mrb[6].mxu1 }
 0x285   : >> { %v1553_v4 = vsub.f32 0.0, %v1527_v60  ;;  %v1531_v5 = vadd.f32 %v1421_v2, %v1149_v57  ;;  %v1423_v6 = vpop.f32.mrb[7].mxu0  ;;  %4663 = vtanh.f32 %v1521_v58  ;;  %v5990_v25 = vpop.f32.mrb[7].mxu1  ;;  %v1530_v58 = vadd.f32 %v1492_v17, %v1148_v48 }
 0x286   : >> { %v1593_v8 = vsub.f32 0.0, %v1528_v1  ;;  %v1532_v9 = vadd.f32 %v1423_v6, %v1150_v62  ;;  %4665 = vpow2.f32 %v1647_v7 }
 0x287   : >> { %v1563_v11 = vmul.f32 1.442695, %v1553_v4  ;;  %v1554_v12 = vsub.f32 0.0, %v1531_v5  ;;  %4667 = vtanh.f32 %v1525_v3 }
 0x288   : >> { %v1603_v14 = vmul.f32 1.442695, %v1593_v8  ;;  %v1594_v15 = vsub.f32 0.0, %v1532_v9  ;;  %v1147_v8 = vld [vmem:[%s5969_s23 + $0x50] sm:$0xff]  ;;  %v1641_v9 = vsub.f32 0.0, %v1530_v58 }
 0x289   : >> { %4669 = vpow2.f32 %v1563_v11  ;;  %v1565_v18 = vmul.f32 1.442695, %v1554_v12 }
 0x28a   : >> { %4671 = vpow2.f32 %v1603_v14  ;;  %v1605_v22 = vmul.f32 1.442695, %v1594_v15  ;;  %v1427_v23 = vpop.f32.mrb[8].mxu0  ;;  %v5994_v52 = vpop.f32.mrb[8].mxu1  ;;  %v1161_v15 = vld [vmem:[%s5969_s23 + $0xc0] sm:$0xff] }
 0x28b   : >> { %v4656_v28 = vpop.eup %4655  ;;  %4673 = vpow2.f32 %v1565_v18  ;;  %v1535_v35 = vadd.f32 %v1427_v23, %v1153_v16  ;;  %v1429_v36 = vpop.f32.mrb[9].mxu0  ;;  %v1679_v18 = vld [vmem:[#allocation5] sm:$0xff] }
 0x28c   : >> { %v4658_v38 = vpop.eup %4657  ;;  %v1575_v39 = vadd.f32 1.0, %v4656_v28  ;;  %4675 = vpow2.f32 %v1605_v22  ;;  %v1536_v40 = vadd.f32 %v1429_v36, %v1154_v20  ;;  %v1431_v41 = vpop.f32.mrb[10].mxu0  ;;  %v1162_v20 = vld [vmem:[%s5969_s23 + $0xc8] sm:$0xff]  ;;  %v1529_v28 = vadd.f32 %v5983_v13, %v1147_v8  ;;  %v1165_v36 = vld [vmem:[%s5969_s23 + $0xe0] sm:$0xff] }
 0x28d   : >> { %v4660_v42 = vpop.eup %4659  ;;  %v1615_v32 = vadd.f32 1.0, %v4658_v38  ;;  %4677 = vpow2.f32 %v1649_v19  ;;  %v1555_v33 = vsub.f32 0.0, %v1535_v35  ;;  %v1539_v34 = vadd.f32 %v1431_v41, %v1157_v24  ;;  %v1433_v43 = vpop.f32.mrb[11].mxu0 }
 0x28e   : >> { %v4662_v44 = vpop.eup %4661  ;;  %4679 = vrcp.f32 %v1575_v39  ;;  %v1576_v45 = vadd.f32 1.0, %v4660_v42  ;;  %v1595_v46 = vsub.f32 0.0, %v1536_v40  ;;  %v1540_v47 = vadd.f32 %v1433_v43, %v1158_v37  ;;  %v5996_v55 = vpop.f32.mrb[9].mxu1  ;;  %v1680_v40 = vld [vmem:[#allocation5 + $0x8] sm:$0xff] }
 0x28f   : >> { %4681 = vrcp.f32 %v1615_v32  ;;  %v1616_v49 = vadd.f32 1.0, %v4662_v44  ;;  %v1567_v50 = vmul.f32 1.442695, %v1555_v33  ;;  %v1556_v51 = vsub.f32 0.0, %v1539_v34  ;;  %v4664_v53 = vpop.eup %4663  ;;  %v5998_v59 = vpop.f32.mrb[10].mxu1  ;;  %v1166_v44 = vld [vmem:[%s5969_s23 + $0xe8] sm:$0xff] }
 0x290   : >> { %4683 = vrcp.f32 %v1576_v45  ;;  %v1607_v54 = vmul.f32 1.442695, %v1595_v46  ;;  %v4666_v56 = vpop.eup %4665  ;;  %v6000_v63 = vpop.f32.mrb[11].mxu1  ;;  %v1596_v1 = vsub.f32 0.0, %v1540_v47  ;;  %v1534_v35 = vadd.f32 %v5990_v25, %v1152_v10 }
 0x291   : >> { %4685 = vrcp.f32 %v1616_v49  ;;  %v1569_v57 = vmul.f32 1.442695, %v1556_v51  ;;  %v4668_v60 = vpop.eup %4667  ;;  %v1663_v61 = vadd.f32 1.0, %v4666_v56  ;;  %v1651_v41 = vmul.f32 1.442695, %v1641_v9 }
 0x292   : >> { %4687 = vpow2.f32 %v1567_v50  ;;  %v1437_v62 = vpop.f32.mrb[12].mxu0  ;;  %v1609_v19 = vmul.f32 1.442695, %v1596_v1  ;;  %v6006_v22 = vpop.f32.mrb[12].mxu1  ;;  %v1151_v50 = vld [vmem:[%s5969_s23 + $0x70] sm:$0xff]  ;;  %v1642_v51 = vsub.f32 0.0, %v1534_v35 }
 0x293   : >> { %v4670_v0 = vpop.eup %4669  ;;  %4689 = vpow2.f32 %v1607_v54  ;;  %v1439_v2 = vpop.f32.mrb[13].mxu0  ;;  %v1543_v42 = vadd.f32 %v1437_v62, %v1161_v15 }
 0x294   : >> { %v4672_v3 = vpop.eup %4671  ;;  %v1577_v4 = vadd.f32 1.0, %v4670_v0  ;;  %4691 = vrcp.f32 %v1663_v61  ;;  %v1441_v5 = vpop.f32.mrb[14].mxu0  ;;  %v1544_v43 = vadd.f32 %v1439_v2, %v1162_v20  ;;  %v1156_v0 = vld [vmem:[%s5969_s23 + $0x98] sm:$0xff]  ;;  %v1533_v2 = vadd.f32 %v5987_v21, %v1151_v50 }
 0x295   : >> { %v4674_v6 = vpop.eup %4673  ;;  %v1617_v7 = vadd.f32 1.0, %v4672_v3  ;;  %4693 = vpow2.f32 %v1569_v57  ;;  %v1443_v11 = vpop.f32.mrb[15].mxu0  ;;  %v1547_v46 = vadd.f32 %v1441_v5, %v1165_v36  ;;  %v1557_v56 = vsub.f32 0.0, %v1543_v42 }
 0x296   : >> { %v4676_v12 = vpop.eup %4675  ;;  %4695 = vrcp.f32 %v1577_v4  ;;  %v1578_v14 = vadd.f32 1.0, %v4674_v6  ;;  %v6011_v37 = vpop.f32.mrb[13].mxu1  ;;  %v1548_v57 = vadd.f32 %v1443_v11, %v1166_v44  ;;  %v1597_v62 = vsub.f32 0.0, %v1544_v43 }
 0x297   : >> { %v4678_v16 = vpop.eup %4677  ;;  %4697 = vrcp.f32 %v1617_v7  ;;  %v1618_v17 = vadd.f32 1.0, %v4676_v12  ;;  %v6013_v32 = vpop.f32.mrb[14].mxu1  ;;  %v1558_v3 = vsub.f32 0.0, %v1547_v46  ;;  %v1653_v6 = vmul.f32 1.442695, %v1642_v51  ;;  %v1160_v7 = vld [vmem:[%s5969_s23 + $0xb8] sm:$0xff] }
 0x298   : >> { %v4680_v23 = vpop.eup %4679  ;;  %4699 = vrcp.f32 %v1578_v14  ;;  %v1664_v24 = vadd.f32 1.0, %v4678_v16  ;;  %v6016_v13 = vpop.f32.mrb[15].mxu1  ;;  %v1571_v9 = vmul.f32 1.442695, %v1557_v56  ;;  %v1598_v10 = vsub.f32 0.0, %v1548_v57  ;;  %v1681_v14 = vld [vmem:[#allocation5 + $0x10] sm:$0xff] }
 0x299   : >> { %v4682_v38 = vpop.eup %4681  ;;  %4701 = vrcp.f32 %v1618_v17  ;;  %v1695_v39 = vmul.f32 %v4680_v23, %v4664_v53  ;;  %v1538_v11 = vadd.f32 %v5996_v55, %v1156_v0  ;;  %v1611_v15 = vmul.f32 1.442695, %v1597_v62  ;;  %v1155_v55 = vld [vmem:[%s5969_s23 + $0x90] sm:$0xff] }
 0x29a   : >> { %v4684_v33 = vpop.eup %4683  ;;  %v1687_v34 = vmul.f32 %v4682_v38, %v1679_v18  ;;  %4703 = vrcp.f32 %v1664_v24  ;;  %v1573_v16 = vmul.f32 1.442695, %v1558_v3  ;;  %v1542_v17 = vadd.f32 %v6000_v63, %v1160_v7  ;;  %v1163_v46 = vld [vmem:[%s5969_s23 + $0xd0] sm:$0xff] }
 0x29b   : >> { %v4686_v25 = vpop.eup %4685  ;;  %v1696_v45 = vmul.f32 %v4684_v33, %v4668_v60  ;;  %4705 = vpow2.f32 %v1609_v19  ;;  %v1613_v23 = vmul.f32 1.442695, %v1598_v10  ;;  %v1643_v24 = vsub.f32 0.0, %v1538_v11  ;;  %v1164_v33 = vld [vmem:[%s5969_s23 + $0xd8] sm:$0xff] }
 0x29c   : >> { %v4688_v47 = vpop.eup %4687  ;;  %v1703_v48 = vadd.f32 %v1695_v39, %v1687_v34  ;;  %v1688_v49 = vmul.f32 %v4686_v25, %v1680_v40  ;;  %4707 = vtanh.f32 %v1529_v28  ;;  %v1159_v39 = vld [vmem:[%s5969_s23 + $0xb0] sm:$0xff]  ;;  %v1644_v63 = vsub.f32 0.0, %v1542_v17  ;;  %v1682_v25 = vld [vmem:[#allocation5 + $0x18] sm:$0xff] }
 0x29d   : >> { %v4690_v53 = vpop.eup %4689  ;;  %v1579_v54 = vadd.f32 1.0, %v4688_v47  ;;  %4709 = vpow2.f32 %v1651_v41  ;;  %v1537_v42 = vadd.f32 %v5994_v52, %v1155_v55 }
 0x29e   : >> { %v4692_v58 = vpop.eup %4691  ;;  %4711 = vtanh.f32 %v1703_v48  ;;  %1727 = vst [vmem:[#allocation5] sm:$0xff] %v1703_v48  ;;  %v1704_v61 = vadd.f32 %v1696_v45, %v1688_v49  ;;  %v1619_v60 = vadd.f32 1.0, %v4690_v53  ;;  %v1655_v45 = vmul.f32 1.442695, %v1643_v24  ;;  %v1168_v49 = vld [vmem:[%s5969_s23 + $0xf8] sm:$0xff] }
 0x29f   : >> { %v4694_v1 = vpop.eup %4693  ;;  %4713 = vrcp.f32 %v1579_v54  ;;  %v1541_v48 = vadd.f32 %v5998_v59, %v1159_v39  ;;  %v1657_v51 = vmul.f32 1.442695, %v1644_v63  ;;  %v1546_v53 = vadd.f32 %v6011_v37, %v1164_v33 }
 0x2a0   : >> { %v4696_v4 = vpop.eup %4695  ;;  %4715 = vtanh.f32 %v1704_v61  ;;  %1728 = vst [vmem:[#allocation5 + $0x8] sm:$0xff] %v1704_v61  ;;  %v1580_v5 = vadd.f32 1.0, %v4694_v1  ;;  %v1545_v59 = vadd.f32 %v6006_v22, %v1163_v46 }
 0x2a1   : >> { %v4698_v8 = vpop.eup %4697  ;;  %4717 = vrcp.f32 %v1619_v60  ;;  %v1645_v1 = vsub.f32 0.0, %v1546_v53 }
 0x2a2   : >> { %v4700_v12 = vpop.eup %4699  ;;  %4719 = vrcp.f32 %v1580_v5  ;;  %v1689_v20 = vmul.f32 %v4698_v8, %v1681_v14  ;;  %v1167_v5 = vld [vmem:[%s5969_s23 + $0xf0] sm:$0xff]  ;;  %v1683_v8 = vld [vmem:[#allocation5 + $0x20] sm:$0xff]  ;;  %v1684_v14 = vld [vmem:[#allocation5 + $0x28] sm:$0xff] }
 0x2a3   : >> { %v4702_v21 = vpop.eup %4701  ;;  %4721 = vtanh.f32 %v1533_v2  ;;  %v1659_v10 = vmul.f32 1.442695, %v1645_v1 }
 0x2a4   : >> { %v4704_v18 = vpop.eup %4703  ;;  %4723 = vpow2.f32 %v1653_v6  ;;  %v1690_v56 = vmul.f32 %v4702_v21, %v1682_v25  ;;  %v1686_v25 = vld [vmem:[#allocation5 + $0x38] sm:$0xff] }
 0x2a5   : >> { %v4706_v19 = vpop.eup %4705  ;;  %4725 = vpow2.f32 %v1571_v9 }
 0x2a6   : >> { %v4708_v28 = vpop.eup %4707  ;;  %v1620_v35 = vadd.f32 1.0, %v4706_v19  ;;  %4727 = vpow2.f32 %v1611_v15  ;;  %v1549_v15 = vadd.f32 %v6013_v32, %v1167_v5 }
 0x2a7   : >> { %v4710_v36 = vpop.eup %4709  ;;  %v1697_v38 = vmul.f32 %v4708_v28, %v4696_v4  ;;  %4729 = vpow2.f32 %v1573_v16 }
 0x2a8   : >> { %v4712_v40 = vpop.eup %4711  ;;  %4731 = vrcp.f32 %v1620_v35  ;;  %v1665_v41 = vadd.f32 1.0, %v4710_v36 }
 0x2a9   : >> { %v6029_v34 = vpop.eup %4713  ;;  %v1719_v43 = vmul.f32 %v4712_v40, %v4692_v58  ;;  %v1705_v44 = vadd.f32 %v1697_v38, %v1689_v20  ;;  %4733 = vpow2.f32 %v1613_v23  ;;  %v1550_v58 = vadd.f32 %v6016_v13, %v1168_v49 }
 0x2aa   : >> { %v4716_v47 = vpop.eup %4715  ;;  %4735 = vrcp.f32 %v1665_v41 }
 0x2ab   : >> { %v4718_v50 = vpop.eup %4717  ;;  %1735 = vst [vmem:[#allocation4] sm:$0xff] %v1719_v43  ;;  %1745 = vst [vmem:[%s6036_s13] sm:$0xff] %v1719_v43  ;;  %v1720_v52 = vmul.f32 %v4716_v47, %v4704_v18  ;;  %4737 = vtanh.f32 %v1705_v44  ;;  %v1646_v6 = vsub.f32 0.0, %v1550_v58 }
 0x2ac   : >> { %1729 = vst [vmem:[#allocation5 + $0x10] sm:$0xff] %v1705_v44  ;;  %v4720_v54 = vpop.eup %4719  ;;  %4739 = vtanh.f32 %v1537_v42  ;;  %v1691_v16 = vmul.f32 %v4718_v50, %v1683_v8  ;;  %v1685_v42 = vld [vmem:[#allocation5 + $0x30] sm:$0xff] }
 0x2ad   : >> { %v4722_v57 = vpop.eup %4721  ;;  %1736 = vst [vmem:[#allocation4 + $0x8] sm:$0xff] %v1720_v52  ;;  %1746 = vst [vmem:[%s6036_s13 + $0x8] sm:$0xff] %v1720_v52  ;;  %4741 = vpow2.f32 %v1655_v45  ;;  %v1661_v17 = vmul.f32 1.442695, %v1646_v6 }
 0x2ae   : >> { %v4724_v61 = vpop.eup %4723  ;;  %v1698_v60 = vmul.f32 %v4722_v57, %v4700_v12  ;;  %4743 = vtanh.f32 %v1541_v48 }
 0x2af   : >> { %v4726_v62 = vpop.eup %4725  ;;  %v1666_v0 = vadd.f32 1.0, %v4724_v61  ;;  %4745 = vpow2.f32 %v1657_v51 }
 0x2b0   : >> { %v4728_v37 = vpop.eup %4727  ;;  %v1706_v2 = vadd.f32 %v1698_v60, %v1690_v56  ;;  %v1581_v3 = vadd.f32 1.0, %v4726_v62  ;;  %4747 = vtanh.f32 %v1545_v59 }
 0x2b1   : >> { %v4730_v4 = vpop.eup %4729  ;;  %4749 = vrcp.f32 %v1666_v0  ;;  %v1621_v22 = vadd.f32 1.0, %v4728_v37 }
 0x2b2   : >> { %v4732_v7 = vpop.eup %4731  ;;  %4751 = vtanh.f32 %v1706_v2  ;;  %1730 = vst [vmem:[#allocation5 + $0x18] sm:$0xff] %v1706_v2  ;;  %v1582_v13 = vadd.f32 1.0, %v4730_v4 }
 0x2b3   : >> { %v4734_v9 = vpop.eup %4733  ;;  %4753 = vrcp.f32 %v1581_v3  ;;  %v1692_v55 = vmul.f32 %v4732_v7, %v1684_v14 }
 0x2b4   : >> { %v4736_v11 = vpop.eup %4735  ;;  %4755 = vrcp.f32 %v1621_v22  ;;  %v1622_v12 = vadd.f32 1.0, %v4734_v9 }
 0x2b5   : >> { %v4738_v21 = vpop.eup %4737  ;;  %4757 = vrcp.f32 %v1582_v13 }
 0x2b6   : >> { %v4740_v18 = vpop.eup %4739  ;;  %v1721_v19 = vmul.f32 %v4738_v21, %v4736_v11  ;;  %4759 = vrcp.f32 %v1622_v12 }
 0x2b7   : >> { %v4742_v20 = vpop.eup %4741  ;;  %v1699_v23 = vmul.f32 %v4740_v18, %v6029_v34  ;;  %4761 = vpow2.f32 %v1659_v10 }
 0x2b8   : >> { %v4744_v24 = vpop.eup %4743  ;;  %1737 = vst [vmem:[#allocation4 + $0x10] sm:$0xff] %v1721_v19  ;;  %1747 = vst [vmem:[%s6036_s13 + $0x10] sm:$0xff] %v1721_v19  ;;  %v1667_v28 = vadd.f32 1.0, %v4742_v20  ;;  %4763 = vtanh.f32 %v1549_v15 }
 0x2b9   : >> { %v4746_v35 = vpop.eup %4745  ;;  %v1707_v36 = vadd.f32 %v1699_v23, %v1691_v16  ;;  %v1700_v32 = vmul.f32 %v4744_v24, %v4720_v54  ;;  %4765 = vpow2.f32 %v1661_v17 }
 0x2ba   : >> { %v4748_v38 = vpop.eup %4747  ;;  %4767 = vrcp.f32 %v1667_v28  ;;  %v1668_v39 = vadd.f32 1.0, %v4746_v35 }
 0x2bb   : >> { %v4750_v63 = vpop.eup %4749  ;;  %4769 = vtanh.f32 %v1707_v36  ;;  %1731 = vst [vmem:[#allocation5 + $0x20] sm:$0xff] %v1707_v36  ;;  %v1708_v40 = vadd.f32 %v1700_v32, %v1692_v55 }
 0x2bc   : >> { %v4752_v41 = vpop.eup %4751  ;;  %4771 = vrcp.f32 %v1668_v39 }
 0x2bd   : >> { %v4754_v33 = vpop.eup %4753  ;;  %v1722_v34 = vmul.f32 %v4752_v41, %v4750_v63  ;;  %4773 = vtanh.f32 %v1708_v40  ;;  %1732 = vst [vmem:[#allocation5 + $0x28] sm:$0xff] %v1708_v40 }
 0x2be   : >> { %v4756_v43 = vpop.eup %4755  ;;  %v1701_v44 = vmul.f32 %v4754_v33, %v4748_v38 }
 0x2bf   : >> { %v4758_v45 = vpop.eup %4757  ;;  %1738 = vst [vmem:[#allocation4 + $0x18] sm:$0xff] %v1722_v34  ;;  %1748 = vst [vmem:[%s6036_s13 + $0x18] sm:$0xff] %v1722_v34  ;;  %v1693_v46 = vmul.f32 %v4756_v43, %v1685_v42 }
 0x2c0   : >> { %v4760_v47 = vpop.eup %4759 }
 0x2c1   : >> { %v4762_v48 = vpop.eup %4761  ;;  %v1709_v49 = vadd.f32 %v1701_v44, %v1693_v46  ;;  %v1694_v50 = vmul.f32 %v4760_v47, %v1686_v25 }
 0x2c2   : >> { %v4764_v52 = vpop.eup %4763  ;;  %v1669_v51 = vadd.f32 1.0, %v4762_v48 }
 0x2c3   : >> { %v4766_v53 = vpop.eup %4765  ;;  %4775 = vtanh.f32 %v1709_v49  ;;  %1733 = vst [vmem:[#allocation5 + $0x30] sm:$0xff] %v1709_v49  ;;  %v1702_v54 = vmul.f32 %v4764_v52, %v4758_v45 }
 0x2c4   : >> { %v4768_v56 = vpop.eup %4767  ;;  %4777 = vrcp.f32 %v1669_v51  ;;  %v1670_v59 = vadd.f32 1.0, %v4766_v53 }
 0x2c5   : >> { %v4770_v57 = vpop.eup %4769  ;;  %v1710_v58 = vadd.f32 %v1702_v54, %v1694_v50 }
 0x2c6   : >> { %v4772_v61 = vpop.eup %4771  ;;  %v1723_v60 = vmul.f32 %v4770_v57, %v4768_v56  ;;  %4779 = vrcp.f32 %v1670_v59 }
 0x2c7   : >> { %v4774_v62 = vpop.eup %4773  ;;  %4781 = vtanh.f32 %v1710_v58  ;;  %1734 = vst [vmem:[#allocation5 + $0x38] sm:$0xff] %v1710_v58 }
 0x2c8   : >> { %1739 = vst [vmem:[#allocation4 + $0x20] sm:$0xff] %v1723_v60  ;;  %1749 = vst [vmem:[%s6036_s13 + $0x20] sm:$0xff] %v1723_v60  ;;  %v1724_v0 = vmul.f32 %v4774_v62, %v4772_v61 }
 0x2ca   : >> { %1740 = vst [vmem:[#allocation4 + $0x28] sm:$0xff] %v1724_v0  ;;  %1750 = vst [vmem:[%s6036_s13 + $0x28] sm:$0xff] %v1724_v0 }
 0x2cd   : >> { %v4776_v1 = vpop.eup %4775 }
 0x2ce   : >> { %v4778_v37 = vpop.eup %4777  ;;  %1132 = sbr.rel (!%p1130_p11) target bundleno = 389 (0x185), region = 241 }
 0x2cf   : >> { %v1725_v2 = vmul.f32 %v4778_v37, %v4776_v1 }
 0x2d0   : >> { %v4780_v3 = vpop.eup %4779 }
 0x2d1   : >> { %v4782_v4 = vpop.eup %4781  ;;  %1741 = vst [vmem:[#allocation4 + $0x30] sm:$0xff] %v1725_v2  ;;  %1751 = vst [vmem:[%s6036_s13 + $0x30] sm:$0xff] %v1725_v2 }
 0x2d2   : >> { %v1726_v22 = vmul.f32 %v4782_v4, %v4780_v3 }
 0x2d4   : >> { %1742 = vst [vmem:[#allocation4 + $0x38] sm:$0xff] %v1726_v22  ;;  %1752 = vst [vmem:[%s6036_s13 + $0x38] sm:$0xff] %v1726_v22 }
 0x2d5 LB: >> { %v4783_v5 = vld [vmem:[%s6808_s4 + $0x4] ss:$16 sps:$4 sm:$0xff]   ;;  %v4785_v6 = vld [vmem:[%s6808_s4 + $0xc] ss:$16 sps:$4 sm:$0xff]   ;;  %v5372_v7 = vmov 0   ;;  %s4253_s15 = sshll.u32 %s5353_s28, 6  ;;  %s5353_s28 = sphi %s6055_s28, %s1758_s28  }
 0x2d6   : >> { %2019 = vmatprep.mubr.bf16.mxu0 %v5372_v7  ;;  %2092 = vmatprep.mubr.bf16.mxu1 %v5372_v7  ;;  %v4787_v13 = vld [vmem:[%s6808_s4] ss:$16 sps:$4 sm:$0xff]   ;;  %v4788_v8 = vld [vmem:[%s6808_s4 + $0x8] ss:$16 sps:$4 sm:$0xff]   ;;  %v4789_v9 = vld [vmem:[%s6808_s4 + $0x24] ss:$16 sps:$4 sm:$0xff]  }
 0x2d7   : >> { %1987 = vmatprep.subr.bf16.mxu0 %v4783_v5  ;;  %2060 = vmatprep.subr.bf16.mxu1 %v4785_v6  ;;  %v4791_v10 = vld [vmem:[%s6808_s4 + $0x2c] ss:$16 sps:$4 sm:$0xff]   ;;  %v4793_v11 = vld [vmem:[%s6808_s4 + $0x20] ss:$16 sps:$4 sm:$0xff]   ;;  %v4794_v12 = vld [vmem:[%s6808_s4 + $0x28] ss:$16 sps:$4 sm:$0xff]  }
 0x2d8   : >> { %1988 = vmatpush1.bf16.msra.mxu0 %v4787_v13  ;;  %2061 = vmatpush1.bf16.msra.mxu1 %v4788_v8  ;;  %v4795_v14 = vld [vmem:[%s6808_s4 + $0x44] ss:$16 sps:$4 sm:$0xff]   ;;  %v4797_v15 = vld [vmem:[%s6808_s4 + $0x4c] ss:$16 sps:$4 sm:$0xff]   ;;  %v4799_v21 = vld [vmem:[%s6808_s4 + $0x40] ss:$16 sps:$4 sm:$0xff]  }
 0x2d9   : >> { %1989 = vmatprep.subr.bf16.mxu0 %v4789_v9  ;;  %2062 = vmatprep.subr.bf16.mxu1 %v4791_v10  ;;  %v4800_v16 = vld [vmem:[%s6808_s4 + $0x48] ss:$16 sps:$4 sm:$0xff]   ;;  %v4801_v17 = vld [vmem:[%s6808_s4 + $0x64] ss:$16 sps:$4 sm:$0xff]   ;;  %v4803_v18 = vld [vmem:[%s6808_s4 + $0x6c] ss:$16 sps:$4 sm:$0xff]  }
 0x2da   : >> { %v4805_v19 = vld [vmem:[%s6808_s4 + $0x60] ss:$16 sps:$4 sm:$0xff]   ;;  %v4806_v20 = vld [vmem:[%s6808_s4 + $0x68] ss:$16 sps:$4 sm:$0xff]   ;;  %v4807_v23 = vld [vmem:[%s6808_s4 + $0x84] ss:$16 sps:$4 sm:$0xff]  }
 0x2db   : >> { %v4809_v55 = vld [vmem:[%s6808_s4 + $0x8c] ss:$16 sps:$4 sm:$0xff]   ;;  %v4811_v24 = vld [vmem:[%s6808_s4 + $0x80] ss:$16 sps:$4 sm:$0xff]   ;;  %v4812_v28 = vld [vmem:[%s6808_s4 + $0x88] ss:$16 sps:$4 sm:$0xff]  }
 0x2dc   : >> { %1990 = vmatpush1.bf16.msra.mxu0 %v4793_v11  ;;  %2063 = vmatpush1.bf16.msra.mxu1 %v4794_v12  ;;  %v4813_v35 = vld [vmem:[%s6808_s4 + $0xa4] ss:$16 sps:$4 sm:$0xff]   ;;  %v4815_v36 = vld [vmem:[%s6808_s4 + $0xac] ss:$16 sps:$4 sm:$0xff]   ;;  %v4817_v32 = vld [vmem:[%s6808_s4 + $0xa0] ss:$16 sps:$4 sm:$0xff]  }
 0x2dd   : >> { %1991 = vmatprep.subr.bf16.mxu0 %v4795_v14  ;;  %2064 = vmatprep.subr.bf16.mxu1 %v4797_v15  ;;  %v4818_v38 = vld [vmem:[%s6808_s4 + $0xa8] ss:$16 sps:$4 sm:$0xff]   ;;  %v4819_v39 = vld [vmem:[%s6808_s4 + $0xc4] ss:$16 sps:$4 sm:$0xff]   ;;  %v4821_v63 = vld [vmem:[%s6808_s4 + $0xcc] ss:$16 sps:$4 sm:$0xff]  }
 0x2de   : >> { %v4823_v40 = vld [vmem:[%s6808_s4 + $0xc0] ss:$16 sps:$4 sm:$0xff]   ;;  %v4824_v41 = vld [vmem:[%s6808_s4 + $0xc8] ss:$16 sps:$4 sm:$0xff]   ;;  %v4825_v42 = vld [vmem:[%s6808_s4 + $0xe4] ss:$16 sps:$4 sm:$0xff]  }
 0x2df   : >> { %v4827_v33 = vld [vmem:[%s6808_s4 + $0xec] ss:$16 sps:$4 sm:$0xff]   ;;  %v4829_v34 = vld [vmem:[%s6808_s4 + $0xe0] ss:$16 sps:$4 sm:$0xff]   ;;  %v4830_v43 = vld [vmem:[%s6808_s4 + $0xe8] ss:$16 sps:$4 sm:$0xff]  }
 0x2e0   : >> { %1992 = vmatpush1.bf16.msra.mxu0 %v4799_v21  ;;  %2065 = vmatpush1.bf16.msra.mxu1 %v4800_v16  ;;  %s1760_s21 = scalar_lea.vmem [#allocation2], %s4253_s15  ;;  %v1805_v56 = vld [vmem:[%s6810_s6] sm:$0xf]  ;;  %s4403_s27 = sshll.u32 %s5353_s28, 8 }
 0x2e1   : >> { %1993 = vmatprep.subr.bf16.mxu0 %v4801_v17  ;;  %2066 = vmatprep.subr.bf16.mxu1 %v4803_v18  ;;  %v1761_v44 = vld [vmem:[%s1760_s21] sm:$0xff]  ;;  %v1762_v25 = vld [vmem:[%s1760_s21 + $0x8] sm:$0xff]  ;;  %v1763_v46 = vld [vmem:[%s1760_s21 + $0x10] sm:$0xff]  ;;  %v6170_v59 = vrot.slane %v1805_v56, %v5750_v26  ;;  %v6173_v57 = vrot.slane %v1805_v56, %v5752_v27  ;;  %v6176_v58 = vrot.slane %v1805_v56, %v5757_v29  ;;  %s6185_s13 = scalar_lea.vmem [#allocation3], %s4403_s27  ;;  %s1758_s28 = sadd.s32 1, %s5353_s28  }
 0x2e2   : >> { %v1769_v45 = vpack.c.bf16 %v1762_v25, %v1761_v44  ;;  %v1764_v47 = vld [vmem:[%s1760_s21 + $0x18] sm:$0xff]  ;;  %v1765_v49 = vld [vmem:[%s1760_s21 + $0x20] sm:$0xff]  ;;  %v1766_v50 = vld [vmem:[%s1760_s21 + $0x28] sm:$0xff]  ;;  %v6179_v61 = vrot.slane %v1805_v56, %v5759_v30  ;;  %p1755_p13 = scmp.ge.s32.totalorder %s1758_s28, 2  }
 0x2e3   : >> { %v1770_v48 = vpack.c.bf16 %v1764_v47, %v1763_v46  ;;  %v1771_v52 = vpack.c.bf16 %v1766_v50, %v1765_v49  ;;  %v1767_v51 = vld [vmem:[%s1760_s21 + $0x30] sm:$0xff]  ;;  %v1768_v53 = vld [vmem:[%s1760_s21 + $0x38] sm:$0xff]  ;;  %2168 = vst [vmem:[#allocation4] sm:$0xff] (%p1755_p13), %v5370_v31  ;;  %2169 = vst [vmem:[#allocation4 + $0x8] sm:$0xff] (%p1755_p13), %v5370_v31  ;;  %s6266_s28 = smov (%p1755_p13), 0  }
 0x2e4   : >> { %1994 = vmatpush1.bf16.msra.mxu0 %v4805_v19  ;;  %2067 = vmatpush1.bf16.msra.mxu1 %v4806_v20  ;;  %v1772_v54 = vpack.c.bf16 %v1768_v53, %v1767_v51  ;;  %2170 = vst [vmem:[#allocation4 + $0x10] sm:$0xff] (%p1755_p13), %v5370_v31  ;;  %2171 = vst [vmem:[#allocation4 + $0x18] sm:$0xff] (%p1755_p13), %v5370_v31 }
 0x2e5   : >> { %1995 = vmatprep.subr.bf16.mxu0 %v4807_v23  ;;  %2068 = vmatprep.subr.bf16.mxu1 %v4809_v55  ;;  %2172 = vst [vmem:[#allocation4 + $0x20] sm:$0xff] (%p1755_p13), %v5370_v31  ;;  %2173 = vst [vmem:[#allocation4 + $0x28] sm:$0xff] (%p1755_p13), %v5370_v31 }
 0x2e6   : > { %2174 = vst [vmem:[#allocation4 + $0x30] sm:$0xff] (%p1755_p13), %v5370_v31  ;;  %2175 = vst [vmem:[#allocation4 + $0x38] sm:$0xff] (%p1755_p13), %v5370_v31 }
 0x2e7   : > { %2176 = vst [vmem:[#allocation5] sm:$0xff] (%p1755_p13), %v5370_v31  ;;  %2177 = vst [vmem:[#allocation5 + $0x8] sm:$0xff] (%p1755_p13), %v5370_v31 }
 0x2e8   : >> { %1996 = vmatpush1.bf16.msra.mxu0 %v4811_v24  ;;  %2069 = vmatpush1.bf16.msra.mxu1 %v4812_v28  ;;  %2178 = vst [vmem:[#allocation5 + $0x10] sm:$0xff] (%p1755_p13), %v5370_v31  ;;  %2179 = vst [vmem:[#allocation5 + $0x18] sm:$0xff] (%p1755_p13), %v5370_v31 }
 0x2e9   : >> { %1997 = vmatprep.subr.bf16.mxu0 %v4813_v35  ;;  %2070 = vmatprep.subr.bf16.mxu1 %v4815_v36  ;;  %2180 = vst [vmem:[#allocation5 + $0x20] sm:$0xff] (%p1755_p13), %v5370_v31  ;;  %2181 = vst [vmem:[#allocation5 + $0x28] sm:$0xff] (%p1755_p13), %v5370_v31 }
 0x2ea   : > { %2182 = vst [vmem:[#allocation5 + $0x30] sm:$0xff] (%p1755_p13), %v5370_v31  ;;  %2183 = vst [vmem:[#allocation5 + $0x38] sm:$0xff] (%p1755_p13), %v5370_v31 }
 0x2ec   : >> { %1998 = vmatpush1.bf16.msra.mxu0 %v4817_v32  ;;  %2071 = vmatpush1.bf16.msra.mxu1 %v4818_v38 }
 0x2ed   : >> { %1999 = vmatprep.subr.bf16.mxu0 %v4819_v39  ;;  %2072 = vmatprep.subr.bf16.mxu1 %v4821_v63 }
 0x2f0   : >> { %2000 = vmatpush1.bf16.msra.mxu0 %v4823_v40  ;;  %2073 = vmatpush1.bf16.msra.mxu1 %v4824_v41 }
 0x2f1   : >> { %2001 = vmatprep.subr.bf16.mxu0 %v4825_v42  ;;  %2074 = vmatprep.subr.bf16.mxu1 %v4827_v33 }
 0x2f4   : >> { %2002 = vmatpush1.bf16.msra.mxu0 %v4829_v34  ;;  %2075 = vmatpush1.bf16.msra.mxu1 %v4830_v43 }
 0x2f7   : >> { %2020 = vmatmul.mubr.bf16.vlgmr.msra.gmra.mrb[0].mxu0 %v1769_v45  ;;  %2093 = vmatmul.mubr.bf16.vlgmr.msra.gmra.mrb[0].mxu1 %v1769_v45 }
 0x2f8   : >> { %2029 = vmatprep.mubr.bf16.mxu0 %v5372_v7  ;;  %2102 = vmatprep.mubr.bf16.mxu1 %v5372_v7 }
 0x2ff   : >> { %2030 = vmatmul.mubr.bf16.gmra.mrb[4].mxu0 %v1770_v48  ;;  %2103 = vmatmul.mubr.bf16.gmra.mrb[4].mxu1 %v1770_v48 }
 0x300   : >> { %2039 = vmatprep.mubr.bf16.mxu0 %v5372_v7  ;;  %2112 = vmatprep.mubr.bf16.mxu1 %v5372_v7 }
 0x307   : >> { %2040 = vmatmul.mubr.bf16.gmra.mrb[8].mxu0 %v1771_v52  ;;  %2113 = vmatmul.mubr.bf16.gmra.mrb[8].mxu1 %v1771_v52 }
 0x308   : >> { %2049 = vmatprep.mubr.bf16.mxu0 %v5372_v7  ;;  %2122 = vmatprep.mubr.bf16.mxu1 %v5372_v7 }
 0x30f   : >> { %2050 = vmatmul.mubr.bf16.gmra.mrb[12].mxu0 %v1772_v54  ;;  %2123 = vmatmul.mubr.bf16.gmra.mrb[12].mxu1 %v1772_v54 }
 0x3ca   : >> { %v2021_v60 = vpop.f32.mrb[0].mxu0  ;;  %v2094_v62 = vpop.f32.mrb[0].mxu1 }
 0x3cb   : >> { %v2022_v0 = vadd.f32 %v2021_v60, %v6170_v59  ;;  %v2095_v1 = vadd.f32 %v2094_v62, %v6173_v57  ;;  %v2023_v37 = vpop.f32.mrb[1].mxu0  ;;  %v2096_v2 = vpop.f32.mrb[1].mxu1 }
 0x3cc   : >> { %v2024_v3 = vadd.f32 %v2023_v37, %v6176_v58  ;;  %v2097_v4 = vadd.f32 %v2096_v2, %v6179_v61  ;;  %v2025_v22 = vpop.f32.mrb[2].mxu0  ;;  %v2098_v5 = vpop.f32.mrb[2].mxu1 }
 0x3cd   : >> { %2136 = vst [vmem:[%s6185_s13] sm:$0xff] %v2022_v0  ;;  %2138 = vst [vmem:[%s6185_s13 + $0x10] sm:$0xff] %v2095_v1  ;;  %v2026_v6 = vadd.f32 %v2025_v22, %v6170_v59  ;;  %v2099_v7 = vadd.f32 %v2098_v5, %v6173_v57  ;;  %v2027_v13 = vpop.f32.mrb[3].mxu0  ;;  %v2100_v8 = vpop.f32.mrb[3].mxu1 }
 0x3ce   : >> { %2137 = vst [vmem:[%s6185_s13 + $0x8] sm:$0xff] %v2024_v3  ;;  %2139 = vst [vmem:[%s6185_s13 + $0x18] sm:$0xff] %v2097_v4  ;;  %v2028_v9 = vadd.f32 %v2027_v13, %v6176_v58  ;;  %v2101_v10 = vadd.f32 %v2100_v8, %v6179_v61 }
 0x3cf   : >> { %2140 = vst [vmem:[%s6185_s13 + $0x20] sm:$0xff] %v2026_v6  ;;  %2142 = vst [vmem:[%s6185_s13 + $0x30] sm:$0xff] %v2099_v7 }
 0x3d0   : >> { %2141 = vst [vmem:[%s6185_s13 + $0x28] sm:$0xff] %v2028_v9  ;;  %2143 = vst [vmem:[%s6185_s13 + $0x38] sm:$0xff] %v2101_v10 }
 0x3d2   : >> { %v2031_v11 = vpop.f32.mrb[4].mxu0  ;;  %v2104_v12 = vpop.f32.mrb[4].mxu1 }
 0x3d3   : >> { %v2032_v14 = vadd.f32 %v2031_v11, %v6170_v59  ;;  %v2105_v15 = vadd.f32 %v2104_v12, %v6173_v57  ;;  %v2033_v21 = vpop.f32.mrb[5].mxu0  ;;  %v2106_v16 = vpop.f32.mrb[5].mxu1 }
 0x3d4   : >> { %v2034_v17 = vadd.f32 %v2033_v21, %v6176_v58  ;;  %v2107_v18 = vadd.f32 %v2106_v16, %v6179_v61  ;;  %v2035_v19 = vpop.f32.mrb[6].mxu0  ;;  %v2108_v20 = vpop.f32.mrb[6].mxu1 }
 0x3d5   : >> { %2144 = vst [vmem:[%s6185_s13 + $0x40] sm:$0xff] %v2032_v14  ;;  %2146 = vst [vmem:[%s6185_s13 + $0x50] sm:$0xff] %v2105_v15  ;;  %v2036_v23 = vadd.f32 %v2035_v19, %v6170_v59  ;;  %v2109_v55 = vadd.f32 %v2108_v20, %v6173_v57  ;;  %v2037_v24 = vpop.f32.mrb[7].mxu0  ;;  %v2110_v28 = vpop.f32.mrb[7].mxu1 }
 0x3d6   : >> { %2145 = vst [vmem:[%s6185_s13 + $0x48] sm:$0xff] %v2034_v17  ;;  %2147 = vst [vmem:[%s6185_s13 + $0x58] sm:$0xff] %v2107_v18  ;;  %v2038_v35 = vadd.f32 %v2037_v24, %v6176_v58  ;;  %v2111_v36 = vadd.f32 %v2110_v28, %v6179_v61 }
 0x3d7   : >> { %2148 = vst [vmem:[%s6185_s13 + $0x60] sm:$0xff] %v2036_v23  ;;  %2150 = vst [vmem:[%s6185_s13 + $0x70] sm:$0xff] %v2109_v55 }
 0x3d8   : >> { %2149 = vst [vmem:[%s6185_s13 + $0x68] sm:$0xff] %v2038_v35  ;;  %2151 = vst [vmem:[%s6185_s13 + $0x78] sm:$0xff] %v2111_v36 }
 0x3da   : >> { %v2041_v32 = vpop.f32.mrb[8].mxu0  ;;  %v2114_v38 = vpop.f32.mrb[8].mxu1 }
 0x3db   : >> { %v2042_v39 = vadd.f32 %v2041_v32, %v6170_v59  ;;  %v2115_v63 = vadd.f32 %v2114_v38, %v6173_v57  ;;  %v2043_v40 = vpop.f32.mrb[9].mxu0  ;;  %v2116_v41 = vpop.f32.mrb[9].mxu1 }
 0x3dc   : >> { %v2044_v42 = vadd.f32 %v2043_v40, %v6176_v58  ;;  %v2117_v33 = vadd.f32 %v2116_v41, %v6179_v61  ;;  %v2045_v34 = vpop.f32.mrb[10].mxu0  ;;  %v2118_v43 = vpop.f32.mrb[10].mxu1 }
 0x3dd   : >> { %2152 = vst [vmem:[%s6185_s13 + $0x80] sm:$0xff] %v2042_v39  ;;  %2154 = vst [vmem:[%s6185_s13 + $0x90] sm:$0xff] %v2115_v63  ;;  %v2046_v44 = vadd.f32 %v2045_v34, %v6170_v59  ;;  %v2119_v25 = vadd.f32 %v2118_v43, %v6173_v57  ;;  %v2047_v45 = vpop.f32.mrb[11].mxu0  ;;  %v2120_v46 = vpop.f32.mrb[11].mxu1 }
 0x3de   : >> { %2153 = vst [vmem:[%s6185_s13 + $0x88] sm:$0xff] %v2044_v42  ;;  %2155 = vst [vmem:[%s6185_s13 + $0x98] sm:$0xff] %v2117_v33  ;;  %v2048_v47 = vadd.f32 %v2047_v45, %v6176_v58  ;;  %v2121_v48 = vadd.f32 %v2120_v46, %v6179_v61 }
 0x3df   : >> { %2156 = vst [vmem:[%s6185_s13 + $0xa0] sm:$0xff] %v2046_v44  ;;  %2158 = vst [vmem:[%s6185_s13 + $0xb0] sm:$0xff] %v2119_v25 }
 0x3e0   : >> { %2157 = vst [vmem:[%s6185_s13 + $0xa8] sm:$0xff] %v2048_v47  ;;  %2159 = vst [vmem:[%s6185_s13 + $0xb8] sm:$0xff] %v2121_v48 }
 0x3e2   : >> { %v2051_v49 = vpop.f32.mrb[12].mxu0  ;;  %v2124_v50 = vpop.f32.mrb[12].mxu1  ;;  %1757 = sbr.rel (!%p1755_p13) target bundleno = 725 (0x2d5), region = 252 }
 0x3e3   : >> { %v2052_v52 = vadd.f32 %v2051_v49, %v6170_v59  ;;  %v2125_v51 = vadd.f32 %v2124_v50, %v6173_v57  ;;  %v2053_v53 = vpop.f32.mrb[13].mxu0  ;;  %v2126_v54 = vpop.f32.mrb[13].mxu1 }
 0x3e4   : >> { %v2054_v56 = vadd.f32 %v2053_v53, %v6176_v58  ;;  %v2127_v60 = vadd.f32 %v2126_v54, %v6179_v61  ;;  %v2055_v62 = vpop.f32.mrb[14].mxu0  ;;  %v2128_v0 = vpop.f32.mrb[14].mxu1 }
 0x3e5   : >> { %2160 = vst [vmem:[%s6185_s13 + $0xc0] sm:$0xff] %v2052_v52  ;;  %2162 = vst [vmem:[%s6185_s13 + $0xd0] sm:$0xff] %v2125_v51  ;;  %v2056_v1 = vadd.f32 %v2055_v62, %v6170_v59  ;;  %v2129_v37 = vadd.f32 %v2128_v0, %v6173_v57  ;;  %v2057_v2 = vpop.f32.mrb[15].mxu0  ;;  %v2130_v3 = vpop.f32.mrb[15].mxu1 }
 0x3e6   : >> { %2161 = vst [vmem:[%s6185_s13 + $0xc8] sm:$0xff] %v2054_v56  ;;  %2163 = vst [vmem:[%s6185_s13 + $0xd8] sm:$0xff] %v2127_v60  ;;  %v2058_v4 = vadd.f32 %v2057_v2, %v6176_v58  ;;  %v2131_v22 = vadd.f32 %v2130_v3, %v6179_v61 }
 0x3e7   : >> { %2164 = vst [vmem:[%s6185_s13 + $0xe0] sm:$0xff] %v2056_v1  ;;  %2166 = vst [vmem:[%s6185_s13 + $0xf0] sm:$0xff] %v2129_v37 }
 0x3e8   : >> { %2165 = vst [vmem:[%s6185_s13 + $0xe8] sm:$0xff] %v2058_v4  ;;  %2167 = vst [vmem:[%s6185_s13 + $0xf8] sm:$0xff] %v2131_v22 }
 0x3e9 LB: >> { %v4831_v59 = vld [vmem:[%s6809_s5 + $0x4] ss:$16 sps:$4 sm:$0xff]   ;;  %v4833_v57 = vld [vmem:[%s6809_s5] ss:$16 sps:$4 sm:$0xff]   ;;  %v5373_v58 = vmov 0   ;;  %v2226_v40 = vld [vmem:[#allocation4 + $0x8] sm:$0xff]  ;;  %s5357_s28 = sphi %s6266_s28, %s2189_s28  }
 0x3ea   : >> { %2461 = vmatprep.mubr.bf16.mxu0 %v5373_v58  ;;  %2534 = vmatprep.mubr.bf16.mxu1 %v5373_v58  ;;  %v4834_v61 = vld [vmem:[%s6809_s5 + $0x24] ss:$16 sps:$4 sm:$0xff]   ;;  %v4836_v5 = vld [vmem:[%s6809_s5 + $0x20] ss:$16 sps:$4 sm:$0xff]   ;;  %v4842_v7 = vld [vmem:[%s6809_s5 + $0xc] ss:$16 sps:$4 sm:$0xff]  }
 0x3eb   : >> { %2429 = vmatprep.subr.bf16.mxu0 %v4831_v59  ;;  %v4837_v6 = vld [vmem:[%s6809_s5 + $0x44] ss:$16 sps:$4 sm:$0xff]   ;;  %v4845_v13 = vld [vmem:[%s6809_s5 + $0x8] ss:$16 sps:$4 sm:$0xff]   ;;  %v4839_v8 = vld [vmem:[%s6809_s5 + $0x40] ss:$16 sps:$4 sm:$0xff]   ;;  %2502 = vmatprep.subr.bf16.mxu1 %v4842_v7 }
 0x3ec   : >> { %2430 = vmatpush1.bf16.msra.mxu0 %v4833_v57  ;;  %v4840_v9 = vld [vmem:[%s6809_s5 + $0x64] ss:$16 sps:$4 sm:$0xff]   ;;  %2503 = vmatpush1.bf16.msra.mxu1 %v4845_v13  ;;  %v4848_v10 = vld [vmem:[%s6809_s5 + $0x2c] ss:$16 sps:$4 sm:$0xff]   ;;  %v4851_v11 = vld [vmem:[%s6809_s5 + $0x28] ss:$16 sps:$4 sm:$0xff]  }
 0x3ed   : >> { %2431 = vmatprep.subr.bf16.mxu0 %v4834_v61  ;;  %2504 = vmatprep.subr.bf16.mxu1 %v4848_v10  ;;  %v4844_v12 = vld [vmem:[%s6809_s5 + $0x60] ss:$16 sps:$4 sm:$0xff]   ;;  %v4846_v14 = vld [vmem:[%s6809_s5 + $0x84] ss:$16 sps:$4 sm:$0xff]   ;;  %v4854_v15 = vld [vmem:[%s6809_s5 + $0x4c] ss:$16 sps:$4 sm:$0xff]  }
 0x3ee   : >> { %v4857_v21 = vld [vmem:[%s6809_s5 + $0x48] ss:$16 sps:$4 sm:$0xff]   ;;  %v4860_v16 = vld [vmem:[%s6809_s5 + $0x6c] ss:$16 sps:$4 sm:$0xff]   ;;  %v4850_v17 = vld [vmem:[%s6809_s5 + $0x80] ss:$16 sps:$4 sm:$0xff]  }
 0x3ef   : >> { %v4852_v18 = vld [vmem:[%s6809_s5 + $0xa4] ss:$16 sps:$4 sm:$0xff]   ;;  %v4863_v19 = vld [vmem:[%s6809_s5 + $0x68] ss:$16 sps:$4 sm:$0xff]   ;;  %v4866_v20 = vld [vmem:[%s6809_s5 + $0x8c] ss:$16 sps:$4 sm:$0xff]  }
 0x3f0   : >> { %2432 = vmatpush1.bf16.msra.mxu0 %v4836_v5  ;;  %2505 = vmatpush1.bf16.msra.mxu1 %v4851_v11  ;;  %v4856_v23 = vld [vmem:[%s6809_s5 + $0xa0] ss:$16 sps:$4 sm:$0xff]   ;;  %v4858_v55 = vld [vmem:[%s6809_s5 + $0xc4] ss:$16 sps:$4 sm:$0xff]   ;;  %v4869_v24 = vld [vmem:[%s6809_s5 + $0x88] ss:$16 sps:$4 sm:$0xff]  }
 0x3f1   : >> { %2433 = vmatprep.subr.bf16.mxu0 %v4837_v6  ;;  %2506 = vmatprep.subr.bf16.mxu1 %v4854_v15  ;;  %v4870_v28 = vld [vmem:[%s6809_s5 + $0xac] ss:$16 sps:$4 sm:$0xff]   ;;  %v4862_v35 = vld [vmem:[%s6809_s5 + $0xc0] ss:$16 sps:$4 sm:$0xff]   ;;  %v4864_v36 = vld [vmem:[%s6809_s5 + $0xe4] ss:$16 sps:$4 sm:$0xff]  }
 0x3f2   : >> { %v4872_v32 = vld [vmem:[%s6809_s5 + $0xa8] ss:$16 sps:$4 sm:$0xff]   ;;  %v4873_v38 = vld [vmem:[%s6809_s5 + $0xcc] ss:$16 sps:$4 sm:$0xff]   ;;  %v4868_v39 = vld [vmem:[%s6809_s5 + $0xe0] ss:$16 sps:$4 sm:$0xff]  }
 0x3f3   : >> { %v2225_v63 = vld [vmem:[#allocation4] sm:$0xff]  ;;  %v4875_v41 = vld [vmem:[%s6809_s5 + $0xc8] ss:$16 sps:$4 sm:$0xff]   ;;  %v4876_v42 = vld [vmem:[%s6809_s5 + $0xec] ss:$16 sps:$4 sm:$0xff]   ;;  %s4404_s19 = sshll.u32 %s5357_s28, 8 }
 0x3f4   : >> { %2434 = vmatpush1.bf16.msra.mxu0 %v4839_v8  ;;  %2507 = vmatpush1.bf16.msra.mxu1 %v4857_v21  ;;  %v2233_v33 = vpack.c.bf16 %v2226_v40, %v2225_v63  ;;  %v4878_v34 = vld [vmem:[%s6809_s5 + $0xe8] ss:$16 sps:$4 sm:$0xff]   ;;  %v2227_v43 = vld [vmem:[#allocation4 + $0x10] sm:$0xff]  ;;  %v2229_v45 = vld [vmem:[#allocation4 + $0x20] sm:$0xff]  ;;  %s6376_s21 = scalar_lea.vmem [#allocation3], %s4404_s19  ;;  %s4322_s15 = sshll.u32 %s5357_s28, 6 }
 0x3f5   : >> { %2435 = vmatprep.subr.bf16.mxu0 %v4840_v9  ;;  %2508 = vmatprep.subr.bf16.mxu1 %v4860_v16  ;;  %v2228_v44 = vld [vmem:[#allocation4 + $0x18] sm:$0xff]  ;;  %v2230_v46 = vld [vmem:[#allocation4 + $0x28] sm:$0xff]  ;;  %v2231_v48 = vld [vmem:[#allocation4 + $0x30] sm:$0xff]  ;;  %s6443_s23 = scalar_lea.vmem [#allocation2], %s4322_s15  ;;  %s2189_s28 = sadd.s32 1, %s5357_s28  }
 0x3f6   : >> { %v2234_v25 = vpack.c.bf16 %v2228_v44, %v2227_v43  ;;  %v2235_v47 = vpack.c.bf16 %v2230_v46, %v2229_v45  ;;  %v2232_v49 = vld [vmem:[#allocation4 + $0x38] sm:$0xff]  ;;  %v2193_v52 = vld [vmem:[%s6376_s21] sm:$0xff]  ;;  %v2194_v51 = vld [vmem:[%s6376_s21 + $0x8] sm:$0xff]  ;;  %p2186_p1 = scmp.ge.s32.totalorder %s2189_s28, 2  }
 0x3f7   : >> { %v2236_v50 = vpack.c.bf16 %v2232_v49, %v2231_v48  ;;  %v2197_v54 = vld [vmem:[%s6376_s21 + $0x20] sm:$0xff]  ;;  %v2198_v62 = vld [vmem:[%s6376_s21 + $0x28] sm:$0xff]  ;;  %v2196_v59 = vld [vmem:[%s6376_s21 + $0x18] sm:$0xff]  ;;  %s6462_s27 = smov (%p2186_p1), 0  }
 0x3f8   : >> { %2436 = vmatpush1.bf16.msra.mxu0 %v4844_v12  ;;  %2509 = vmatpush1.bf16.msra.mxu1 %v4863_v19  ;;  %v2195_v61 = vld [vmem:[%s6376_s21 + $0x10] sm:$0xff]  ;;  %v2201_v13 = vld [vmem:[%s6376_s21 + $0x40] sm:$0xff]  ;;  %v2200_v9 = vld [vmem:[%s6376_s21 + $0x38] sm:$0xff] }
 0x3f9   : >> { %2437 = vmatprep.subr.bf16.mxu0 %v4846_v14  ;;  %2510 = vmatprep.subr.bf16.mxu1 %v4866_v20  ;;  %v2202_v11 = vld [vmem:[%s6376_s21 + $0x48] sm:$0xff]  ;;  %v2199_v14 = vld [vmem:[%s6376_s21 + $0x30] sm:$0xff]  ;;  %v2209_v46 = vld [vmem:[%s6376_s21 + $0x80] sm:$0xff] }
 0x3fc   : >> { %2438 = vmatpush1.bf16.msra.mxu0 %v4850_v17  ;;  %2511 = vmatpush1.bf16.msra.mxu1 %v4869_v24  ;;  %v2205_v17 = vld [vmem:[%s6376_s21 + $0x60] sm:$0xff] }
 0x3fd   : >> { %2439 = vmatprep.subr.bf16.mxu0 %v4852_v18  ;;  %2512 = vmatprep.subr.bf16.mxu1 %v4870_v28 }
 0x400   : >> { %2440 = vmatpush1.bf16.msra.mxu0 %v4856_v23  ;;  %2513 = vmatpush1.bf16.msra.mxu1 %v4872_v32 }
 0x401   : >> { %2441 = vmatprep.subr.bf16.mxu0 %v4858_v55  ;;  %2514 = vmatprep.subr.bf16.mxu1 %v4873_v38  ;;  %v2206_v55 = vld [vmem:[%s6376_s21 + $0x68] sm:$0xff] }
 0x404   : >> { %2442 = vmatpush1.bf16.msra.mxu0 %v4862_v35  ;;  %2515 = vmatpush1.bf16.msra.mxu1 %v4875_v41 }
 0x405   : >> { %2443 = vmatprep.subr.bf16.mxu0 %v4864_v36  ;;  %2516 = vmatprep.subr.bf16.mxu1 %v4876_v42 }
 0x408   : >> { %2444 = vmatpush1.bf16.msra.mxu0 %v4868_v39  ;;  %2517 = vmatpush1.bf16.msra.mxu1 %v4878_v34 }
 0x40b   : >> { %2462 = vmatmul.mubr.bf16.vlgmr.msra.gmra.mrb[0].mxu0 %v2233_v33  ;;  %2535 = vmatmul.mubr.bf16.vlgmr.msra.gmra.mrb[0].mxu1 %v2233_v33 }
 0x40c   : >> { %2471 = vmatprep.mubr.bf16.mxu0 %v5373_v58  ;;  %2544 = vmatprep.mubr.bf16.mxu1 %v5373_v58 }
 0x413   : >> { %2472 = vmatmul.mubr.bf16.gmra.mrb[4].mxu0 %v2234_v25  ;;  %2545 = vmatmul.mubr.bf16.gmra.mrb[4].mxu1 %v2234_v25 }
 0x414   : >> { %2481 = vmatprep.mubr.bf16.mxu0 %v5373_v58  ;;  %2554 = vmatprep.mubr.bf16.mxu1 %v5373_v58 }
 0x41b   : >> { %2482 = vmatmul.mubr.bf16.gmra.mrb[8].mxu0 %v2235_v47  ;;  %2555 = vmatmul.mubr.bf16.gmra.mrb[8].mxu1 %v2235_v47 }
 0x41c   : >> { %2491 = vmatprep.mubr.bf16.mxu0 %v5373_v58  ;;  %2564 = vmatprep.mubr.bf16.mxu1 %v5373_v58 }
 0x423   : >> { %2492 = vmatmul.mubr.bf16.gmra.mrb[12].mxu0 %v2236_v50  ;;  %2565 = vmatmul.mubr.bf16.gmra.mrb[12].mxu1 %v2236_v50  ;;  %v2210_v50 = vld [vmem:[%s6376_s21 + $0x88] sm:$0xff] }
 0x4de   : >> { %v2463_v53 = vpop.f32.mrb[0].mxu0  ;;  %v2536_v5 = vpop.f32.mrb[0].mxu1 }
 0x4df   : >> { %v2575_v56 = vadd.f32 %v2463_v53, %v2193_v52  ;;  %v2465_v60 = vpop.f32.mrb[1].mxu0  ;;  %v2538_v8 = vpop.f32.mrb[1].mxu1  ;;  %v2577_v18 = vadd.f32 %v2536_v5, %v2195_v61 }
 0x4e0   : >> { %v2576_v0 = vadd.f32 %v2465_v60, %v2194_v51  ;;  %v2467_v1 = vpop.f32.mrb[2].mxu0  ;;  %v2578_v12 = vadd.f32 %v2538_v8, %v2196_v59  ;;  %v2540_v15 = vpop.f32.mrb[2].mxu1  ;;  %v2204_v8 = vld [vmem:[%s6376_s21 + $0x58] sm:$0xff] }
 0x4e1   : >> { %v2607_v37 = vsub.f32 0.0, %v2575_v56  ;;  %v2579_v2 = vadd.f32 %v2467_v1, %v2197_v54  ;;  %v2469_v3 = vpop.f32.mrb[3].mxu0  ;;  %v2542_v19 = vpop.f32.mrb[3].mxu1  ;;  %v2581_v32 = vadd.f32 %v2540_v15, %v2199_v14  ;;  %v2213_v54 = vld [vmem:[%s6376_s21 + $0xa0] sm:$0xff]  ;;  %v2214_v1 = vld [vmem:[%s6376_s21 + $0xa8] sm:$0xff] }
 0x4e2   : >> { %v2647_v4 = vsub.f32 0.0, %v2576_v0  ;;  %v2580_v22 = vadd.f32 %v2469_v3, %v2198_v62  ;;  %v2695_v24 = vsub.f32 0.0, %v2578_v12  ;;  %v2582_v28 = vadd.f32 %v2542_v19, %v2200_v9 }
 0x4e3   : >> { %v2615_v57 = vmul.f32 1.442695, %v2607_v37  ;;  %v2608_v58 = vsub.f32 0.0, %v2579_v2 }
 0x4e4   : >> { %v2655_v6 = vmul.f32 1.442695, %v2647_v4  ;;  %v2648_v7 = vsub.f32 0.0, %v2580_v22  ;;  %v2703_v40 = vmul.f32 1.442695, %v2695_v24  ;;  %v2696_v33 = vsub.f32 0.0, %v2582_v28 }
 0x4e5   : >> { %4879 = vpow2.f32 %v2615_v57  ;;  %v2617_v10 = vmul.f32 1.442695, %v2608_v58 }
 0x4e6   : >> { %4881 = vpow2.f32 %v2655_v6  ;;  %v2657_v21 = vmul.f32 1.442695, %v2648_v7  ;;  %v2473_v16 = vpop.f32.mrb[4].mxu0  ;;  %v6390_v44 = vpop.f32.mrb[4].mxu1  ;;  %v2705_v49 = vmul.f32 1.442695, %v2696_v33 }
 0x4e7   : >> { %4883 = vpow2.f32 %v2617_v10  ;;  %v2583_v20 = vadd.f32 %v2473_v16, %v2201_v13  ;;  %v2475_v23 = vpop.f32.mrb[5].mxu0  ;;  %v2548_v47 = vpop.f32.mrb[5].mxu1  ;;  %v2208_v33 = vld [vmem:[%s6376_s21 + $0x78] sm:$0xff] }
 0x4e8   : >> { %4885 = vpow2.f32 %v2657_v21  ;;  %v2584_v35 = vadd.f32 %v2475_v23, %v2202_v11  ;;  %v2477_v36 = vpop.f32.mrb[6].mxu0  ;;  %v6394_v52 = vpop.f32.mrb[6].mxu1 }
 0x4e9   : >> { %v2609_v38 = vsub.f32 0.0, %v2583_v20  ;;  %v2587_v39 = vadd.f32 %v2477_v36, %v2205_v17  ;;  %v2479_v63 = vpop.f32.mrb[7].mxu0  ;;  %4887 = vtanh.f32 %v2577_v18  ;;  %v6397_v56 = vpop.f32.mrb[7].mxu1  ;;  %v2586_v18 = vadd.f32 %v2548_v47, %v2204_v8 }
 0x4ea   : >> { %v2649_v41 = vsub.f32 0.0, %v2584_v35  ;;  %v2588_v42 = vadd.f32 %v2479_v63, %v2206_v55  ;;  %4889 = vpow2.f32 %v2703_v40 }
 0x4eb   : >> { %v2619_v34 = vmul.f32 1.442695, %v2609_v38  ;;  %v2610_v43 = vsub.f32 0.0, %v2587_v39  ;;  %4891 = vtanh.f32 %v2581_v32 }
 0x4ec   : >> { %v2659_v25 = vmul.f32 1.442695, %v2649_v41  ;;  %v2650_v45 = vsub.f32 0.0, %v2588_v42  ;;  %v2203_v41 = vld [vmem:[%s6376_s21 + $0x50] sm:$0xff]  ;;  %v2697_v42 = vsub.f32 0.0, %v2586_v18 }
 0x4ed   : >> { %4893 = vpow2.f32 %v2619_v34  ;;  %v2621_v48 = vmul.f32 1.442695, %v2610_v43 }
 0x4ee   : >> { %4895 = vpow2.f32 %v2659_v25  ;;  %v2661_v51 = vmul.f32 1.442695, %v2650_v45  ;;  %v2483_v53 = vpop.f32.mrb[8].mxu0  ;;  %v6401_v12 = vpop.f32.mrb[8].mxu1  ;;  %v2217_v45 = vld [vmem:[%s6376_s21 + $0xc0] sm:$0xff] }
 0x4ef   : >> { %v4880_v60 = vpop.eup %4879  ;;  %4897 = vpow2.f32 %v2621_v48  ;;  %v2591_v62 = vadd.f32 %v2483_v53, %v2209_v46  ;;  %v2485_v0 = vpop.f32.mrb[9].mxu0  ;;  %v2735_v48 = vld [vmem:[#allocation5] sm:$0xff] }
 0x4f0   : >> { %v4882_v37 = vpop.eup %4881  ;;  %v2631_v2 = vadd.f32 1.0, %v4880_v60  ;;  %4899 = vpow2.f32 %v2661_v51  ;;  %v2592_v3 = vadd.f32 %v2485_v0, %v2210_v50  ;;  %v2487_v4 = vpop.f32.mrb[10].mxu0  ;;  %v2218_v50 = vld [vmem:[%s6376_s21 + $0xc8] sm:$0xff]  ;;  %v2585_v60 = vadd.f32 %v6390_v44, %v2203_v41  ;;  %v2221_v0 = vld [vmem:[%s6376_s21 + $0xe0] sm:$0xff] }
 0x4f1   : >> { %v4884_v22 = vpop.eup %4883  ;;  %v2671_v59 = vadd.f32 1.0, %v4882_v37  ;;  %4901 = vpow2.f32 %v2705_v49  ;;  %v2611_v57 = vsub.f32 0.0, %v2591_v62  ;;  %v2595_v58 = vadd.f32 %v2487_v4, %v2213_v54  ;;  %v2489_v61 = vpop.f32.mrb[11].mxu0 }
 0x4f2   : >> { %v4886_v5 = vpop.eup %4885  ;;  %4903 = vrcp.f32 %v2631_v2  ;;  %v2632_v6 = vadd.f32 1.0, %v4884_v22  ;;  %v2651_v7 = vsub.f32 0.0, %v2592_v3  ;;  %v2596_v13 = vadd.f32 %v2489_v61, %v2214_v1  ;;  %v6403_v21 = vpop.f32.mrb[9].mxu1  ;;  %v2736_v3 = vld [vmem:[#allocation5 + $0x8] sm:$0xff] }
 0x4f3   : >> { %4905 = vrcp.f32 %v2671_v59  ;;  %v2672_v9 = vadd.f32 1.0, %v4886_v5  ;;  %v2623_v10 = vmul.f32 1.442695, %v2611_v57  ;;  %v2612_v11 = vsub.f32 0.0, %v2595_v58  ;;  %v4888_v14 = vpop.eup %4887  ;;  %v6405_v19 = vpop.f32.mrb[10].mxu1  ;;  %v2222_v5 = vld [vmem:[%s6376_s21 + $0xe8] sm:$0xff] }
 0x4f4   : >> { %4907 = vrcp.f32 %v2632_v6  ;;  %v2663_v15 = vmul.f32 1.442695, %v2651_v7  ;;  %v4890_v16 = vpop.eup %4889  ;;  %v6407_v24 = vpop.f32.mrb[11].mxu1  ;;  %v2652_v35 = vsub.f32 0.0, %v2596_v13  ;;  %v2590_v62 = vadd.f32 %v6397_v56, %v2208_v33 }
 0x4f5   : >> { %4909 = vrcp.f32 %v2672_v9  ;;  %v2625_v17 = vmul.f32 1.442695, %v2612_v11  ;;  %v4892_v20 = vpop.eup %4891  ;;  %v2719_v23 = vadd.f32 1.0, %v4890_v16  ;;  %v2707_v4 = vmul.f32 1.442695, %v2697_v42 }
 0x4f6   : >> { %4911 = vpow2.f32 %v2623_v10  ;;  %v2493_v55 = vpop.f32.mrb[12].mxu0  ;;  %v2665_v49 = vmul.f32 1.442695, %v2652_v35  ;;  %v6413_v51 = vpop.f32.mrb[12].mxu1  ;;  %v2207_v10 = vld [vmem:[%s6376_s21 + $0x70] sm:$0xff]  ;;  %v2698_v11 = vsub.f32 0.0, %v2590_v62 }
 0x4f7   : >> { %v4894_v28 = vpop.eup %4893  ;;  %4913 = vpow2.f32 %v2663_v15  ;;  %v2495_v36 = vpop.f32.mrb[13].mxu0  ;;  %v2599_v22 = vadd.f32 %v2493_v55, %v2217_v45 }
 0x4f8   : >> { %v4896_v32 = vpop.eup %4895  ;;  %v2633_v38 = vadd.f32 1.0, %v4894_v28  ;;  %4915 = vrcp.f32 %v2719_v23  ;;  %v2497_v39 = vpop.f32.mrb[14].mxu0  ;;  %v2600_v61 = vadd.f32 %v2495_v36, %v2218_v50  ;;  %v2212_v28 = vld [vmem:[%s6376_s21 + $0x98] sm:$0xff]  ;;  %v2589_v36 = vadd.f32 %v6394_v52, %v2207_v10 }
 0x4f9   : >> { %v4898_v63 = vpop.eup %4897  ;;  %v2673_v40 = vadd.f32 1.0, %v4896_v32  ;;  %4917 = vpow2.f32 %v2625_v17  ;;  %v2499_v34 = vpop.f32.mrb[15].mxu0  ;;  %v2603_v7 = vadd.f32 %v2497_v39, %v2221_v0  ;;  %v2613_v16 = vsub.f32 0.0, %v2599_v22 }
 0x4fa   : >> { %v4900_v43 = vpop.eup %4899  ;;  %4919 = vrcp.f32 %v2633_v38  ;;  %v2634_v25 = vadd.f32 1.0, %v4898_v63  ;;  %v6418_v1 = vpop.f32.mrb[13].mxu1  ;;  %v2604_v17 = vadd.f32 %v2499_v34, %v2222_v5  ;;  %v2653_v55 = vsub.f32 0.0, %v2600_v61 }
 0x4fb   : >> { %v4902_v46 = vpop.eup %4901  ;;  %4921 = vrcp.f32 %v2673_v40  ;;  %v2674_v47 = vadd.f32 1.0, %v4900_v43  ;;  %v6420_v59 = vpop.f32.mrb[14].mxu1  ;;  %v2614_v32 = vsub.f32 0.0, %v2603_v7  ;;  %v2709_v63 = vmul.f32 1.442695, %v2698_v11  ;;  %v2216_v40 = vld [vmem:[%s6376_s21 + $0xb8] sm:$0xff] }
 0x4fc   : >> { %v4904_v53 = vpop.eup %4903  ;;  %4923 = vrcp.f32 %v2634_v25  ;;  %v2720_v54 = vadd.f32 1.0, %v4902_v46  ;;  %v6423_v44 = vpop.f32.mrb[15].mxu1  ;;  %v2627_v42 = vmul.f32 1.442695, %v2613_v16  ;;  %v2654_v33 = vsub.f32 0.0, %v2604_v17  ;;  %v2737_v25 = vld [vmem:[#allocation5 + $0x10] sm:$0xff] }
 0x4fd   : >> { %v4906_v37 = vpop.eup %4905  ;;  %4925 = vrcp.f32 %v2674_v47  ;;  %v2751_v2 = vmul.f32 %v4904_v53, %v4888_v14  ;;  %v2594_v34 = vadd.f32 %v6403_v21, %v2212_v28  ;;  %v2667_v45 = vmul.f32 1.442695, %v2653_v55  ;;  %v2211_v21 = vld [vmem:[%s6376_s21 + $0x90] sm:$0xff] }
 0x4fe   : >> { %v4908_v57 = vpop.eup %4907  ;;  %v2743_v58 = vmul.f32 %v4906_v37, %v2735_v48  ;;  %4927 = vrcp.f32 %v2720_v54  ;;  %v2629_v46 = vmul.f32 1.442695, %v2614_v32  ;;  %v2598_v47 = vadd.f32 %v6407_v24, %v2216_v40  ;;  %v2219_v7 = vld [vmem:[%s6376_s21 + $0xd0] sm:$0xff] }
 0x4ff   : >> { %v4910_v56 = vpop.eup %4909  ;;  %v2752_v6 = vmul.f32 %v4908_v57, %v4892_v20  ;;  %4929 = vpow2.f32 %v2665_v49  ;;  %v2669_v53 = vmul.f32 1.442695, %v2654_v33  ;;  %v2699_v54 = vsub.f32 0.0, %v2594_v34  ;;  %v2220_v57 = vld [vmem:[%s6376_s21 + $0xd8] sm:$0xff] }
 0x500   : >> { %v4912_v13 = vpop.eup %4911  ;;  %v2759_v8 = vadd.f32 %v2751_v2, %v2743_v58  ;;  %v2744_v9 = vmul.f32 %v4910_v56, %v2736_v3  ;;  %4931 = vtanh.f32 %v2585_v60  ;;  %v2215_v2 = vld [vmem:[%s6376_s21 + $0xb0] sm:$0xff]  ;;  %v2700_v24 = vsub.f32 0.0, %v2598_v47  ;;  %v2738_v56 = vld [vmem:[#allocation5 + $0x18] sm:$0xff] }
 0x501   : >> { %v4914_v14 = vpop.eup %4913  ;;  %v2635_v15 = vadd.f32 1.0, %v4912_v13  ;;  %4933 = vpow2.f32 %v2707_v4  ;;  %v2593_v22 = vadd.f32 %v6401_v12, %v2211_v21 }
 0x502   : >> { %v4916_v18 = vpop.eup %4915  ;;  %4935 = vtanh.f32 %v2759_v8  ;;  %2783 = vst [vmem:[#allocation5] sm:$0xff] %v2759_v8  ;;  %v2760_v23 = vadd.f32 %v2752_v6, %v2744_v9  ;;  %v2675_v20 = vadd.f32 1.0, %v4914_v14  ;;  %v2711_v6 = vmul.f32 1.442695, %v2699_v54  ;;  %v2224_v9 = vld [vmem:[%s6376_s21 + $0xf8] sm:$0xff] }
 0x503   : >> { %v4918_v35 = vpop.eup %4917  ;;  %4937 = vrcp.f32 %v2635_v15  ;;  %v2597_v8 = vadd.f32 %v6405_v19, %v2215_v2  ;;  %v2713_v11 = vmul.f32 1.442695, %v2700_v24  ;;  %v2602_v14 = vadd.f32 %v6418_v1, %v2220_v57 }
 0x504   : >> { %v4920_v38 = vpop.eup %4919  ;;  %4939 = vtanh.f32 %v2760_v23  ;;  %2784 = vst [vmem:[#allocation5 + $0x8] sm:$0xff] %v2760_v23  ;;  %v2636_v39 = vadd.f32 1.0, %v4918_v35  ;;  %v2601_v19 = vadd.f32 %v6413_v51, %v2219_v7 }
 0x505   : >> { %v4922_v41 = vpop.eup %4921  ;;  %4941 = vrcp.f32 %v2675_v20  ;;  %v2701_v35 = vsub.f32 0.0, %v2602_v14 }
 0x506   : >> { %v4924_v43 = vpop.eup %4923  ;;  %4943 = vrcp.f32 %v2636_v39  ;;  %v2745_v50 = vmul.f32 %v4922_v41, %v2737_v25  ;;  %v2223_v39 = vld [vmem:[%s6376_s21 + $0xf0] sm:$0xff]  ;;  %v2739_v41 = vld [vmem:[#allocation5 + $0x20] sm:$0xff]  ;;  %v2740_v25 = vld [vmem:[#allocation5 + $0x28] sm:$0xff] }
 0x507   : >> { %v4926_v52 = vpop.eup %4925  ;;  %4945 = vtanh.f32 %v2589_v36  ;;  %v2715_v33 = vmul.f32 1.442695, %v2701_v35 }
 0x508   : >> { %v4928_v48 = vpop.eup %4927  ;;  %4947 = vpow2.f32 %v2709_v63  ;;  %v2746_v16 = vmul.f32 %v4926_v52, %v2738_v56  ;;  %v2742_v56 = vld [vmem:[#allocation5 + $0x38] sm:$0xff] }
 0x509   : >> { %v4930_v49 = vpop.eup %4929  ;;  %4949 = vpow2.f32 %v2627_v42 }
 0x50a   : >> { %v4932_v60 = vpop.eup %4931  ;;  %v2676_v62 = vadd.f32 1.0, %v4930_v49  ;;  %4951 = vpow2.f32 %v2667_v45  ;;  %v2605_v45 = vadd.f32 %v6420_v59, %v2223_v39 }
 0x50b   : >> { %v4934_v0 = vpop.eup %4933  ;;  %v2753_v37 = vmul.f32 %v4932_v60, %v4920_v38  ;;  %4953 = vpow2.f32 %v2629_v46 }
 0x50c   : >> { %v4936_v3 = vpop.eup %4935  ;;  %4955 = vrcp.f32 %v2676_v62  ;;  %v2721_v4 = vadd.f32 1.0, %v4934_v0 }
 0x50d   : >> { %v6436_v58 = vpop.eup %4937  ;;  %v2775_v61 = vmul.f32 %v4936_v3, %v4916_v18  ;;  %v2761_v5 = vadd.f32 %v2753_v37, %v2745_v50  ;;  %4957 = vpow2.f32 %v2669_v53  ;;  %v2606_v18 = vadd.f32 %v6423_v44, %v2224_v9 }
 0x50e   : >> { %v4940_v13 = vpop.eup %4939  ;;  %4959 = vrcp.f32 %v2721_v4 }
 0x50f   : >> { %v4942_v10 = vpop.eup %4941  ;;  %2791 = vst [vmem:[#allocation4] sm:$0xff] %v2775_v61  ;;  %2801 = vst [vmem:[%s6443_s23] sm:$0xff] %v2775_v61  ;;  %v2776_v12 = vmul.f32 %v4940_v13, %v4928_v48  ;;  %4961 = vtanh.f32 %v2761_v5  ;;  %v2702_v63 = vsub.f32 0.0, %v2606_v18 }
 0x510   : >> { %2785 = vst [vmem:[#allocation5 + $0x10] sm:$0xff] %v2761_v5  ;;  %v4944_v15 = vpop.eup %4943  ;;  %4963 = vtanh.f32 %v2593_v22  ;;  %v2747_v46 = vmul.f32 %v4942_v10, %v2739_v41  ;;  %v2741_v22 = vld [vmem:[#allocation5 + $0x30] sm:$0xff] }
 0x511   : >> { %v4946_v17 = vpop.eup %4945  ;;  %2792 = vst [vmem:[#allocation4 + $0x8] sm:$0xff] %v2776_v12  ;;  %2802 = vst [vmem:[%s6443_s23 + $0x8] sm:$0xff] %v2776_v12  ;;  %4965 = vpow2.f32 %v2711_v6  ;;  %v2717_v47 = vmul.f32 1.442695, %v2702_v63 }
 0x512   : >> { %v4948_v23 = vpop.eup %4947  ;;  %v2754_v20 = vmul.f32 %v4946_v17, %v4924_v43  ;;  %4967 = vtanh.f32 %v2597_v8 }
 0x513   : >> { %v4950_v55 = vpop.eup %4949  ;;  %v2722_v28 = vadd.f32 1.0, %v4948_v23  ;;  %4969 = vpow2.f32 %v2713_v11 }
 0x514   : >> { %v4952_v1 = vpop.eup %4951  ;;  %v2762_v36 = vadd.f32 %v2754_v20, %v2746_v16  ;;  %v2637_v32 = vadd.f32 1.0, %v4950_v55  ;;  %4971 = vtanh.f32 %v2601_v19 }
 0x515   : >> { %v4954_v38 = vpop.eup %4953  ;;  %4973 = vrcp.f32 %v2722_v28  ;;  %v2677_v51 = vadd.f32 1.0, %v4952_v1 }
 0x516   : >> { %v4956_v40 = vpop.eup %4955  ;;  %4975 = vtanh.f32 %v2762_v36  ;;  %2786 = vst [vmem:[#allocation5 + $0x18] sm:$0xff] %v2762_v36  ;;  %v2638_v44 = vadd.f32 1.0, %v4954_v38 }
 0x517   : >> { %v4958_v42 = vpop.eup %4957  ;;  %4977 = vrcp.f32 %v2637_v32  ;;  %v2748_v21 = vmul.f32 %v4956_v40, %v2740_v25 }
 0x518   : >> { %v4960_v34 = vpop.eup %4959  ;;  %4979 = vrcp.f32 %v2677_v51  ;;  %v2678_v43 = vadd.f32 1.0, %v4958_v42 }
 0x519   : >> { %v4962_v52 = vpop.eup %4961  ;;  %4981 = vrcp.f32 %v2638_v44 }
 0x51a   : >> { %v4964_v48 = vpop.eup %4963  ;;  %v2777_v49 = vmul.f32 %v4962_v52, %v4960_v34  ;;  %4983 = vrcp.f32 %v2678_v43 }
 0x51b   : >> { %v4966_v50 = vpop.eup %4965  ;;  %v2755_v53 = vmul.f32 %v4964_v48, %v6436_v58  ;;  %4985 = vpow2.f32 %v2715_v33 }
 0x51c   : >> { %v4968_v54 = vpop.eup %4967  ;;  %2793 = vst [vmem:[#allocation4 + $0x10] sm:$0xff] %v2777_v49  ;;  %2803 = vst [vmem:[%s6443_s23 + $0x10] sm:$0xff] %v2777_v49  ;;  %v2723_v60 = vadd.f32 1.0, %v4966_v50  ;;  %4987 = vtanh.f32 %v2605_v45 }
 0x51d   : >> { %v4970_v62 = vpop.eup %4969  ;;  %v2763_v0 = vadd.f32 %v2755_v53, %v2747_v46  ;;  %v2756_v59 = vmul.f32 %v4968_v54, %v4944_v15  ;;  %4989 = vpow2.f32 %v2717_v47 }
 0x51e   : >> { %v4972_v37 = vpop.eup %4971  ;;  %4991 = vrcp.f32 %v2723_v60  ;;  %v2724_v2 = vadd.f32 1.0, %v4970_v62 }
 0x51f   : >> { %v4974_v24 = vpop.eup %4973  ;;  %4993 = vtanh.f32 %v2763_v0  ;;  %2787 = vst [vmem:[#allocation5 + $0x20] sm:$0xff] %v2763_v0  ;;  %v2764_v3 = vadd.f32 %v2756_v59, %v2748_v21 }
 0x520   : >> { %v4976_v4 = vpop.eup %4975  ;;  %4995 = vrcp.f32 %v2724_v2 }
 0x521   : >> { %v4978_v57 = vpop.eup %4977  ;;  %v2778_v58 = vmul.f32 %v4976_v4, %v4974_v24  ;;  %4997 = vtanh.f32 %v2764_v3  ;;  %2788 = vst [vmem:[#allocation5 + $0x28] sm:$0xff] %v2764_v3 }
 0x522   : >> { %v4980_v61 = vpop.eup %4979  ;;  %v2757_v5 = vmul.f32 %v4978_v57, %v4972_v37 }
 0x523   : >> { %v4982_v6 = vpop.eup %4981  ;;  %2794 = vst [vmem:[#allocation4 + $0x18] sm:$0xff] %v2778_v58  ;;  %2804 = vst [vmem:[%s6443_s23 + $0x18] sm:$0xff] %v2778_v58  ;;  %v2749_v7 = vmul.f32 %v4980_v61, %v2741_v22 }
 0x524   : >> { %v4984_v13 = vpop.eup %4983 }
 0x525   : >> { %v4986_v8 = vpop.eup %4985  ;;  %v2765_v9 = vadd.f32 %v2757_v5, %v2749_v7  ;;  %v2750_v10 = vmul.f32 %v4984_v13, %v2742_v56 }
 0x526   : >> { %v4988_v12 = vpop.eup %4987  ;;  %v2725_v11 = vadd.f32 1.0, %v4986_v8 }
 0x527   : >> { %v4990_v14 = vpop.eup %4989  ;;  %4999 = vtanh.f32 %v2765_v9  ;;  %2789 = vst [vmem:[#allocation5 + $0x30] sm:$0xff] %v2765_v9  ;;  %v2758_v15 = vmul.f32 %v4988_v12, %v4982_v6 }
 0x528   : >> { %v4992_v16 = vpop.eup %4991  ;;  %5001 = vrcp.f32 %v2725_v11  ;;  %v2726_v19 = vadd.f32 1.0, %v4990_v14 }
 0x529   : >> { %v4994_v17 = vpop.eup %4993  ;;  %v2766_v18 = vadd.f32 %v2758_v15, %v2750_v10 }
 0x52a   : >> { %v4996_v23 = vpop.eup %4995  ;;  %v2779_v20 = vmul.f32 %v4994_v17, %v4992_v16  ;;  %5003 = vrcp.f32 %v2726_v19 }
 0x52b   : >> { %v4998_v55 = vpop.eup %4997  ;;  %5005 = vtanh.f32 %v2766_v18  ;;  %2790 = vst [vmem:[#allocation5 + $0x38] sm:$0xff] %v2766_v18 }
 0x52c   : >> { %2795 = vst [vmem:[#allocation4 + $0x20] sm:$0xff] %v2779_v20  ;;  %2805 = vst [vmem:[%s6443_s23 + $0x20] sm:$0xff] %v2779_v20  ;;  %v2780_v28 = vmul.f32 %v4998_v55, %v4996_v23 }
 0x52e   : >> { %2796 = vst [vmem:[#allocation4 + $0x28] sm:$0xff] %v2780_v28  ;;  %2806 = vst [vmem:[%s6443_s23 + $0x28] sm:$0xff] %v2780_v28 }
 0x531   : >> { %v5000_v35 = vpop.eup %4999 }
 0x532   : >> { %v5002_v1 = vpop.eup %5001  ;;  %2188 = sbr.rel (!%p2186_p1) target bundleno = 1001 (0x3e9), region = 263 }
 0x533   : >> { %v2781_v36 = vmul.f32 %v5002_v1, %v5000_v35 }
 0x534   : >> { %v5004_v32 = vpop.eup %5003 }
 0x535   : >> { %v5006_v38 = vpop.eup %5005  ;;  %2797 = vst [vmem:[#allocation4 + $0x30] sm:$0xff] %v2781_v36  ;;  %2807 = vst [vmem:[%s6443_s23 + $0x30] sm:$0xff] %v2781_v36 }
 0x536   : >> { %v2782_v51 = vmul.f32 %v5006_v38, %v5004_v32 }
 0x538   : >> { %2798 = vst [vmem:[#allocation4 + $0x38] sm:$0xff] %v2782_v51  ;;  %2808 = vst [vmem:[%s6443_s23 + $0x38] sm:$0xff] %v2782_v51 }
 0x539 LB: >> { %v5007_v39 = vld [vmem:[%s6811_s7 + $0x4] ss:$16 sps:$4 sm:$0xff]   ;;  %v5009_v63 = vld [vmem:[%s6811_s7 + $0xc] ss:$16 sps:$4 sm:$0xff]   ;;  %v5374_v40 = vmov 0   ;;  %s4323_s19 = sshll.u32 %s5361_s27, 6  ;;  %s5361_s27 = sphi %s6462_s27, %s2814_s27  }
 0x53a   : >> { %3075 = vmatprep.mubr.bf16.mxu0 %v5374_v40  ;;  %3148 = vmatprep.mubr.bf16.mxu1 %v5374_v40  ;;  %v5011_v44 = vld [vmem:[%s6811_s7] ss:$16 sps:$4 sm:$0xff]   ;;  %v5012_v41 = vld [vmem:[%s6811_s7 + $0x8] ss:$16 sps:$4 sm:$0xff]   ;;  %v5013_v42 = vld [vmem:[%s6811_s7 + $0x24] ss:$16 sps:$4 sm:$0xff]  }
 0x53b   : >> { %3043 = vmatprep.subr.bf16.mxu0 %v5007_v39  ;;  %3116 = vmatprep.subr.bf16.mxu1 %v5009_v63  ;;  %v5015_v33 = vld [vmem:[%s6811_s7 + $0x2c] ss:$16 sps:$4 sm:$0xff]   ;;  %v5017_v34 = vld [vmem:[%s6811_s7 + $0x20] ss:$16 sps:$4 sm:$0xff]   ;;  %v5018_v43 = vld [vmem:[%s6811_s7 + $0x28] ss:$16 sps:$4 sm:$0xff]  }
 0x53c   : >> { %3044 = vmatpush1.bf16.msra.mxu0 %v5011_v44  ;;  %3117 = vmatpush1.bf16.msra.mxu1 %v5012_v41  ;;  %v5019_v25 = vld [vmem:[%s6811_s7 + $0x44] ss:$16 sps:$4 sm:$0xff]   ;;  %v5021_v45 = vld [vmem:[%s6811_s7 + $0x4c] ss:$16 sps:$4 sm:$0xff]   ;;  %v5023_v52 = vld [vmem:[%s6811_s7 + $0x40] ss:$16 sps:$4 sm:$0xff]  }
 0x53d   : >> { %3045 = vmatprep.subr.bf16.mxu0 %v5013_v42  ;;  %3118 = vmatprep.subr.bf16.mxu1 %v5015_v33  ;;  %v5024_v46 = vld [vmem:[%s6811_s7 + $0x48] ss:$16 sps:$4 sm:$0xff]   ;;  %v5025_v47 = vld [vmem:[%s6811_s7 + $0x64] ss:$16 sps:$4 sm:$0xff]   ;;  %v5027_v48 = vld [vmem:[%s6811_s7 + $0x6c] ss:$16 sps:$4 sm:$0xff]  }
 0x53e   : >> { %v5029_v49 = vld [vmem:[%s6811_s7 + $0x60] ss:$16 sps:$4 sm:$0xff]   ;;  %v5030_v50 = vld [vmem:[%s6811_s7 + $0x68] ss:$16 sps:$4 sm:$0xff]   ;;  %v5031_v53 = vld [vmem:[%s6811_s7 + $0x84] ss:$16 sps:$4 sm:$0xff]  }
 0x53f   : >> { %v5033_v21 = vld [vmem:[%s6811_s7 + $0x8c] ss:$16 sps:$4 sm:$0xff]   ;;  %v5035_v54 = vld [vmem:[%s6811_s7 + $0x80] ss:$16 sps:$4 sm:$0xff]   ;;  %v5036_v60 = vld [vmem:[%s6811_s7 + $0x88] ss:$16 sps:$4 sm:$0xff]  }
 0x540   : >> { %3046 = vmatpush1.bf16.msra.mxu0 %v5017_v34  ;;  %3119 = vmatpush1.bf16.msra.mxu1 %v5018_v43  ;;  %v5037_v62 = vld [vmem:[%s6811_s7 + $0xa4] ss:$16 sps:$4 sm:$0xff]   ;;  %v5039_v0 = vld [vmem:[%s6811_s7 + $0xac] ss:$16 sps:$4 sm:$0xff]   ;;  %v5041_v59 = vld [vmem:[%s6811_s7 + $0xa0] ss:$16 sps:$4 sm:$0xff]  }
 0x541   : >> { %3047 = vmatprep.subr.bf16.mxu0 %v5019_v25  ;;  %3120 = vmatprep.subr.bf16.mxu1 %v5021_v45  ;;  %v5042_v37 = vld [vmem:[%s6811_s7 + $0xa8] ss:$16 sps:$4 sm:$0xff]   ;;  %v5043_v2 = vld [vmem:[%s6811_s7 + $0xc4] ss:$16 sps:$4 sm:$0xff]   ;;  %v5045_v24 = vld [vmem:[%s6811_s7 + $0xcc] ss:$16 sps:$4 sm:$0xff]  }
 0x542   : >> { %v5047_v3 = vld [vmem:[%s6811_s7 + $0xc0] ss:$16 sps:$4 sm:$0xff]   ;;  %v5048_v4 = vld [vmem:[%s6811_s7 + $0xc8] ss:$16 sps:$4 sm:$0xff]   ;;  %v5049_v22 = vld [vmem:[%s6811_s7 + $0xe4] ss:$16 sps:$4 sm:$0xff]  }
 0x543   : >> { %v5051_v57 = vld [vmem:[%s6811_s7 + $0xec] ss:$16 sps:$4 sm:$0xff]   ;;  %v5053_v58 = vld [vmem:[%s6811_s7 + $0xe0] ss:$16 sps:$4 sm:$0xff]   ;;  %v5054_v61 = vld [vmem:[%s6811_s7 + $0xe8] ss:$16 sps:$4 sm:$0xff]  }
 0x544   : >> { %3048 = vmatpush1.bf16.msra.mxu0 %v5023_v52  ;;  %3121 = vmatpush1.bf16.msra.mxu1 %v5024_v46  ;;  %s2816_s18 = scalar_lea.vmem [#allocation2], %s4323_s19  ;;  %v2861_v16 = vld [vmem:[%s6813_s9] sm:$0xf]  ;;  %s4405_s15 = sshll.u32 %s5361_s27, 8 }
 0x545   : >> { %3049 = vmatprep.subr.bf16.mxu0 %v5025_v47  ;;  %3122 = vmatprep.subr.bf16.mxu1 %v5027_v48  ;;  %v2817_v5 = vld [vmem:[%s2816_s18] sm:$0xff]  ;;  %v2818_v56 = vld [vmem:[%s2816_s18 + $0x8] sm:$0xff]  ;;  %v2819_v7 = vld [vmem:[%s2816_s18 + $0x10] sm:$0xff]  ;;  %v6577_v19 = vrot.slane %v2861_v16, %v5750_v26  ;;  %v6580_v17 = vrot.slane %v2861_v16, %v5752_v27  ;;  %v6583_v18 = vrot.slane %v2861_v16, %v5757_v29  ;;  %s6592_s23 = scalar_lea.vmem [#allocation3], %s4405_s15  ;;  %s2814_s27 = sadd.s32 1, %s5361_s27  }
 0x546   : >> { %v2825_v6 = vpack.c.bf16 %v2818_v56, %v2817_v5  ;;  %v2820_v13 = vld [vmem:[%s2816_s18 + $0x18] sm:$0xff]  ;;  %v2821_v9 = vld [vmem:[%s2816_s18 + $0x20] sm:$0xff]  ;;  %v2822_v10 = vld [vmem:[%s2816_s18 + $0x28] sm:$0xff]  ;;  %v6586_v23 = vrot.slane %v2861_v16, %v5759_v30  ;;  %p2811_p2 = scmp.ge.s32.totalorder %s2814_s27, 2  }
 0x547   : >> { %v2826_v8 = vpack.c.bf16 %v2820_v13, %v2819_v7  ;;  %v2827_v12 = vpack.c.bf16 %v2822_v10, %v2821_v9  ;;  %v2823_v11 = vld [vmem:[%s2816_s18 + $0x30] sm:$0xff]  ;;  %v2824_v14 = vld [vmem:[%s2816_s18 + $0x38] sm:$0xff]  ;;  %3224 = vst [vmem:[#allocation4] sm:$0xff] (%p2811_p2), %v5370_v31  ;;  %3225 = vst [vmem:[#allocation4 + $0x8] sm:$0xff] (%p2811_p2), %v5370_v31  ;;  %s6673_s27 = smov (%p2811_p2), 0  }
 0x548   : >> { %3050 = vmatpush1.bf16.msra.mxu0 %v5029_v49  ;;  %3123 = vmatpush1.bf16.msra.mxu1 %v5030_v50  ;;  %v2828_v15 = vpack.c.bf16 %v2824_v14, %v2823_v11  ;;  %3226 = vst [vmem:[#allocation4 + $0x10] sm:$0xff] (%p2811_p2), %v5370_v31  ;;  %3227 = vst [vmem:[#allocation4 + $0x18] sm:$0xff] (%p2811_p2), %v5370_v31 }
 0x549   : >> { %3051 = vmatprep.subr.bf16.mxu0 %v5031_v53  ;;  %3124 = vmatprep.subr.bf16.mxu1 %v5033_v21  ;;  %3228 = vst [vmem:[#allocation4 + $0x20] sm:$0xff] (%p2811_p2), %v5370_v31  ;;  %3229 = vst [vmem:[#allocation4 + $0x28] sm:$0xff] (%p2811_p2), %v5370_v31 }
 0x54a   : > { %3230 = vst [vmem:[#allocation4 + $0x30] sm:$0xff] (%p2811_p2), %v5370_v31  ;;  %3231 = vst [vmem:[#allocation4 + $0x38] sm:$0xff] (%p2811_p2), %v5370_v31 }
 0x54b   : > { %3232 = vst [vmem:[#allocation5] sm:$0xff] (%p2811_p2), %v5370_v31  ;;  %3233 = vst [vmem:[#allocation5 + $0x8] sm:$0xff] (%p2811_p2), %v5370_v31 }
 0x54c   : >> { %3052 = vmatpush1.bf16.msra.mxu0 %v5035_v54  ;;  %3125 = vmatpush1.bf16.msra.mxu1 %v5036_v60  ;;  %3234 = vst [vmem:[#allocation5 + $0x10] sm:$0xff] (%p2811_p2), %v5370_v31  ;;  %3235 = vst [vmem:[#allocation5 + $0x18] sm:$0xff] (%p2811_p2), %v5370_v31 }
 0x54d   : >> { %3053 = vmatprep.subr.bf16.mxu0 %v5037_v62  ;;  %3126 = vmatprep.subr.bf16.mxu1 %v5039_v0  ;;  %3236 = vst [vmem:[#allocation5 + $0x20] sm:$0xff] (%p2811_p2), %v5370_v31  ;;  %3237 = vst [vmem:[#allocation5 + $0x28] sm:$0xff] (%p2811_p2), %v5370_v31 }
 0x54e   : > { %3238 = vst [vmem:[#allocation5 + $0x30] sm:$0xff] (%p2811_p2), %v5370_v31  ;;  %3239 = vst [vmem:[#allocation5 + $0x38] sm:$0xff] (%p2811_p2), %v5370_v31 }
 0x550   : >> { %3054 = vmatpush1.bf16.msra.mxu0 %v5041_v59  ;;  %3127 = vmatpush1.bf16.msra.mxu1 %v5042_v37 }
 0x551   : >> { %3055 = vmatprep.subr.bf16.mxu0 %v5043_v2  ;;  %3128 = vmatprep.subr.bf16.mxu1 %v5045_v24 }
 0x554   : >> { %3056 = vmatpush1.bf16.msra.mxu0 %v5047_v3  ;;  %3129 = vmatpush1.bf16.msra.mxu1 %v5048_v4 }
 0x555   : >> { %3057 = vmatprep.subr.bf16.mxu0 %v5049_v22  ;;  %3130 = vmatprep.subr.bf16.mxu1 %v5051_v57 }
 0x558   : >> { %3058 = vmatpush1.bf16.msra.mxu0 %v5053_v58  ;;  %3131 = vmatpush1.bf16.msra.mxu1 %v5054_v61 }
 0x55b   : >> { %3076 = vmatmul.mubr.bf16.vlgmr.msra.gmra.mrb[0].mxu0 %v2825_v6  ;;  %3149 = vmatmul.mubr.bf16.vlgmr.msra.gmra.mrb[0].mxu1 %v2825_v6 }
 0x55c   : >> { %3085 = vmatprep.mubr.bf16.mxu0 %v5374_v40  ;;  %3158 = vmatprep.mubr.bf16.mxu1 %v5374_v40 }
 0x563   : >> { %3086 = vmatmul.mubr.bf16.gmra.mrb[4].mxu0 %v2826_v8  ;;  %3159 = vmatmul.mubr.bf16.gmra.mrb[4].mxu1 %v2826_v8 }
 0x564   : >> { %3095 = vmatprep.mubr.bf16.mxu0 %v5374_v40  ;;  %3168 = vmatprep.mubr.bf16.mxu1 %v5374_v40 }
 0x56b   : >> { %3096 = vmatmul.mubr.bf16.gmra.mrb[8].mxu0 %v2827_v12  ;;  %3169 = vmatmul.mubr.bf16.gmra.mrb[8].mxu1 %v2827_v12 }
 0x56c   : >> { %3105 = vmatprep.mubr.bf16.mxu0 %v5374_v40  ;;  %3178 = vmatprep.mubr.bf16.mxu1 %v5374_v40 }
 0x573   : >> { %3106 = vmatmul.mubr.bf16.gmra.mrb[12].mxu0 %v2828_v15  ;;  %3179 = vmatmul.mubr.bf16.gmra.mrb[12].mxu1 %v2828_v15 }
 0x62e   : >> { %v3077_v20 = vpop.f32.mrb[0].mxu0  ;;  %v3150_v55 = vpop.f32.mrb[0].mxu1 }
 0x62f   : >> { %v3078_v28 = vadd.f32 %v3077_v20, %v6577_v19  ;;  %v3151_v35 = vadd.f32 %v3150_v55, %v6580_v17  ;;  %v3079_v1 = vpop.f32.mrb[1].mxu0  ;;  %v3152_v36 = vpop.f32.mrb[1].mxu1 }
 0x630   : >> { %v3080_v32 = vadd.f32 %v3079_v1, %v6583_v18  ;;  %v3153_v38 = vadd.f32 %v3152_v36, %v6586_v23  ;;  %v3081_v51 = vpop.f32.mrb[2].mxu0  ;;  %v3154_v39 = vpop.f32.mrb[2].mxu1 }
 0x631   : >> { %3192 = vst [vmem:[%s6592_s23] sm:$0xff] %v3078_v28  ;;  %3194 = vst [vmem:[%s6592_s23 + $0x10] sm:$0xff] %v3151_v35  ;;  %v3082_v63 = vadd.f32 %v3081_v51, %v6577_v19  ;;  %v3155_v40 = vadd.f32 %v3154_v39, %v6580_v17  ;;  %v3083_v44 = vpop.f32.mrb[3].mxu0  ;;  %v3156_v41 = vpop.f32.mrb[3].mxu1 }
 0x632   : >> { %3193 = vst [vmem:[%s6592_s23 + $0x8] sm:$0xff] %v3080_v32  ;;  %3195 = vst [vmem:[%s6592_s23 + $0x18] sm:$0xff] %v3153_v38  ;;  %v3084_v42 = vadd.f32 %v3083_v44, %v6583_v18  ;;  %v3157_v33 = vadd.f32 %v3156_v41, %v6586_v23 }
 0x633   : >> { %3196 = vst [vmem:[%s6592_s23 + $0x20] sm:$0xff] %v3082_v63  ;;  %3198 = vst [vmem:[%s6592_s23 + $0x30] sm:$0xff] %v3155_v40 }
 0x634   : >> { %3197 = vst [vmem:[%s6592_s23 + $0x28] sm:$0xff] %v3084_v42  ;;  %3199 = vst [vmem:[%s6592_s23 + $0x38] sm:$0xff] %v3157_v33 }
 0x636   : >> { %v3087_v34 = vpop.f32.mrb[4].mxu0  ;;  %v3160_v43 = vpop.f32.mrb[4].mxu1 }
 0x637   : >> { %v3088_v25 = vadd.f32 %v3087_v34, %v6577_v19  ;;  %v3161_v45 = vadd.f32 %v3160_v43, %v6580_v17  ;;  %v3089_v52 = vpop.f32.mrb[5].mxu0  ;;  %v3162_v46 = vpop.f32.mrb[5].mxu1 }
 0x638   : >> { %v3090_v47 = vadd.f32 %v3089_v52, %v6583_v18  ;;  %v3163_v48 = vadd.f32 %v3162_v46, %v6586_v23  ;;  %v3091_v49 = vpop.f32.mrb[6].mxu0  ;;  %v3164_v50 = vpop.f32.mrb[6].mxu1 }
 0x639   : >> { %3200 = vst [vmem:[%s6592_s23 + $0x40] sm:$0xff] %v3088_v25  ;;  %3202 = vst [vmem:[%s6592_s23 + $0x50] sm:$0xff] %v3161_v45  ;;  %v3092_v53 = vadd.f32 %v3091_v49, %v6577_v19  ;;  %v3165_v21 = vadd.f32 %v3164_v50, %v6580_v17  ;;  %v3093_v54 = vpop.f32.mrb[7].mxu0  ;;  %v3166_v60 = vpop.f32.mrb[7].mxu1 }
 0x63a   : >> { %3201 = vst [vmem:[%s6592_s23 + $0x48] sm:$0xff] %v3090_v47  ;;  %3203 = vst [vmem:[%s6592_s23 + $0x58] sm:$0xff] %v3163_v48  ;;  %v3094_v62 = vadd.f32 %v3093_v54, %v6583_v18  ;;  %v3167_v0 = vadd.f32 %v3166_v60, %v6586_v23 }
 0x63b   : >> { %3204 = vst [vmem:[%s6592_s23 + $0x60] sm:$0xff] %v3092_v53  ;;  %3206 = vst [vmem:[%s6592_s23 + $0x70] sm:$0xff] %v3165_v21 }
 0x63c   : >> { %3205 = vst [vmem:[%s6592_s23 + $0x68] sm:$0xff] %v3094_v62  ;;  %3207 = vst [vmem:[%s6592_s23 + $0x78] sm:$0xff] %v3167_v0 }
 0x63e   : >> { %v3097_v59 = vpop.f32.mrb[8].mxu0  ;;  %v3170_v37 = vpop.f32.mrb[8].mxu1 }
 0x63f   : >> { %v3098_v2 = vadd.f32 %v3097_v59, %v6577_v19  ;;  %v3171_v24 = vadd.f32 %v3170_v37, %v6580_v17  ;;  %v3099_v3 = vpop.f32.mrb[9].mxu0  ;;  %v3172_v4 = vpop.f32.mrb[9].mxu1 }
 0x640   : >> { %v3100_v22 = vadd.f32 %v3099_v3, %v6583_v18  ;;  %v3173_v57 = vadd.f32 %v3172_v4, %v6586_v23  ;;  %v3101_v58 = vpop.f32.mrb[10].mxu0  ;;  %v3174_v61 = vpop.f32.mrb[10].mxu1 }
 0x641   : >> { %3208 = vst [vmem:[%s6592_s23 + $0x80] sm:$0xff] %v3098_v2  ;;  %3210 = vst [vmem:[%s6592_s23 + $0x90] sm:$0xff] %v3171_v24  ;;  %v3102_v5 = vadd.f32 %v3101_v58, %v6577_v19  ;;  %v3175_v56 = vadd.f32 %v3174_v61, %v6580_v17  ;;  %v3103_v6 = vpop.f32.mrb[11].mxu0  ;;  %v3176_v7 = vpop.f32.mrb[11].mxu1 }
 0x642   : >> { %3209 = vst [vmem:[%s6592_s23 + $0x88] sm:$0xff] %v3100_v22  ;;  %3211 = vst [vmem:[%s6592_s23 + $0x98] sm:$0xff] %v3173_v57  ;;  %v3104_v13 = vadd.f32 %v3103_v6, %v6583_v18  ;;  %v3177_v8 = vadd.f32 %v3176_v7, %v6586_v23 }
 0x643   : >> { %3212 = vst [vmem:[%s6592_s23 + $0xa0] sm:$0xff] %v3102_v5  ;;  %3214 = vst [vmem:[%s6592_s23 + $0xb0] sm:$0xff] %v3175_v56 }
 0x644   : >> { %3213 = vst [vmem:[%s6592_s23 + $0xa8] sm:$0xff] %v3104_v13  ;;  %3215 = vst [vmem:[%s6592_s23 + $0xb8] sm:$0xff] %v3177_v8 }
 0x646   : >> { %v3107_v9 = vpop.f32.mrb[12].mxu0  ;;  %v3180_v10 = vpop.f32.mrb[12].mxu1  ;;  %2813 = sbr.rel (!%p2811_p2) target bundleno = 1337 (0x539), region = 274 }
 0x647   : >> { %v3108_v12 = vadd.f32 %v3107_v9, %v6577_v19  ;;  %v3181_v11 = vadd.f32 %v3180_v10, %v6580_v17  ;;  %v3109_v14 = vpop.f32.mrb[13].mxu0  ;;  %v3182_v15 = vpop.f32.mrb[13].mxu1 }
 0x648   : >> { %v3110_v16 = vadd.f32 %v3109_v14, %v6583_v18  ;;  %v3183_v20 = vadd.f32 %v3182_v15, %v6586_v23  ;;  %v3111_v55 = vpop.f32.mrb[14].mxu0  ;;  %v3184_v28 = vpop.f32.mrb[14].mxu1 }
 0x649   : >> { %3216 = vst [vmem:[%s6592_s23 + $0xc0] sm:$0xff] %v3108_v12  ;;  %3218 = vst [vmem:[%s6592_s23 + $0xd0] sm:$0xff] %v3181_v11  ;;  %v3112_v35 = vadd.f32 %v3111_v55, %v6577_v19  ;;  %v3185_v1 = vadd.f32 %v3184_v28, %v6580_v17  ;;  %v3113_v36 = vpop.f32.mrb[15].mxu0  ;;  %v3186_v32 = vpop.f32.mrb[15].mxu1 }
 0x64a   : >> { %3217 = vst [vmem:[%s6592_s23 + $0xc8] sm:$0xff] %v3110_v16  ;;  %3219 = vst [vmem:[%s6592_s23 + $0xd8] sm:$0xff] %v3183_v20  ;;  %v3114_v38 = vadd.f32 %v3113_v36, %v6583_v18  ;;  %v3187_v51 = vadd.f32 %v3186_v32, %v6586_v23 }
 0x64b   : >> { %3220 = vst [vmem:[%s6592_s23 + $0xe0] sm:$0xff] %v3112_v35  ;;  %3222 = vst [vmem:[%s6592_s23 + $0xf0] sm:$0xff] %v3185_v1 }
 0x64c   : >> { %3221 = vst [vmem:[%s6592_s23 + $0xe8] sm:$0xff] %v3114_v38  ;;  %3223 = vst [vmem:[%s6592_s23 + $0xf8] sm:$0xff] %v3187_v51 }
 0x64d LB: >> { %v5055_v26 = vld [vmem:[#allocation7 + $0x4] ss:$16 sps:$4 sm:$0xff]   ;;  %v5057_v27 = vld [vmem:[#allocation7] ss:$16 sps:$4 sm:$0xff]   ;;  %v5375_v29 = vmov 0   ;;  %v3282_v0 = vld [vmem:[#allocation4 + $0x8] sm:$0xff]  ;;  %s5365_s27 = sphi %s6673_s27, %s3245_s27  }
 0x64e   : >> { %3517 = vmatprep.mubr.bf16.mxu0 %v5375_v29  ;;  %3590 = vmatprep.mubr.bf16.mxu1 %v5375_v29  ;;  %v5058_v30 = vld [vmem:[#allocation7 + $0x24] ss:$16 sps:$4 sm:$0xff]   ;;  %v5060_v19 = vld [vmem:[#allocation7 + $0x20] ss:$16 sps:$4 sm:$0xff]   ;;  %v5066_v17 = vld [vmem:[#allocation7 + $0xc] ss:$16 sps:$4 sm:$0xff]  }
 0x64f   : >> { %3485 = vmatprep.subr.bf16.mxu0 %v5055_v26  ;;  %v5061_v31 = vld [vmem:[#allocation7 + $0x44] ss:$16 sps:$4 sm:$0xff]   ;;  %v5069_v18 = vld [vmem:[#allocation7 + $0x8] ss:$16 sps:$4 sm:$0xff]   ;;  %v5063_v23 = vld [vmem:[#allocation7 + $0x40] ss:$16 sps:$4 sm:$0xff]   ;;  %3558 = vmatprep.subr.bf16.mxu1 %v5066_v17 }
 0x650   : >> { %3486 = vmatpush1.bf16.msra.mxu0 %v5057_v27  ;;  %v5064_v39 = vld [vmem:[#allocation7 + $0x64] ss:$16 sps:$4 sm:$0xff]   ;;  %3559 = vmatpush1.bf16.msra.mxu1 %v5069_v18  ;;  %v5072_v63 = vld [vmem:[#allocation7 + $0x2c] ss:$16 sps:$4 sm:$0xff]   ;;  %v5075_v40 = vld [vmem:[#allocation7 + $0x28] ss:$16 sps:$4 sm:$0xff]  }
 0x651   : >> { %3487 = vmatprep.subr.bf16.mxu0 %v5058_v30  ;;  %3560 = vmatprep.subr.bf16.mxu1 %v5072_v63  ;;  %v5068_v44 = vld [vmem:[#allocation7 + $0x60] ss:$16 sps:$4 sm:$0xff]   ;;  %v5070_v41 = vld [vmem:[#allocation7 + $0x84] ss:$16 sps:$4 sm:$0xff]   ;;  %v5078_v42 = vld [vmem:[#allocation7 + $0x4c] ss:$16 sps:$4 sm:$0xff]  }
 0x652   : >> { %v5081_v33 = vld [vmem:[#allocation7 + $0x48] ss:$16 sps:$4 sm:$0xff]   ;;  %v5084_v34 = vld [vmem:[#allocation7 + $0x6c] ss:$16 sps:$4 sm:$0xff]   ;;  %v5074_v43 = vld [vmem:[#allocation7 + $0x80] ss:$16 sps:$4 sm:$0xff]  }
 0x653   : >> { %v5076_v25 = vld [vmem:[#allocation7 + $0xa4] ss:$16 sps:$4 sm:$0xff]   ;;  %v5087_v45 = vld [vmem:[#allocation7 + $0x68] ss:$16 sps:$4 sm:$0xff]   ;;  %v5090_v52 = vld [vmem:[#allocation7 + $0x8c] ss:$16 sps:$4 sm:$0xff]  }
 0x654   : >> { %3488 = vmatpush1.bf16.msra.mxu0 %v5060_v19  ;;  %3561 = vmatpush1.bf16.msra.mxu1 %v5075_v40  ;;  %v5080_v46 = vld [vmem:[#allocation7 + $0xa0] ss:$16 sps:$4 sm:$0xff]   ;;  %v5082_v47 = vld [vmem:[#allocation7 + $0xc4] ss:$16 sps:$4 sm:$0xff]   ;;  %v5093_v48 = vld [vmem:[#allocation7 + $0x88] ss:$16 sps:$4 sm:$0xff]  }
 0x655   : >> { %3489 = vmatprep.subr.bf16.mxu0 %v5061_v31  ;;  %3562 = vmatprep.subr.bf16.mxu1 %v5078_v42  ;;  %v5094_v49 = vld [vmem:[#allocation7 + $0xac] ss:$16 sps:$4 sm:$0xff]   ;;  %v5086_v50 = vld [vmem:[#allocation7 + $0xc0] ss:$16 sps:$4 sm:$0xff]   ;;  %v5088_v53 = vld [vmem:[#allocation7 + $0xe4] ss:$16 sps:$4 sm:$0xff]  }
 0x656   : >> { %v5096_v21 = vld [vmem:[#allocation7 + $0xa8] ss:$16 sps:$4 sm:$0xff]   ;;  %v5097_v54 = vld [vmem:[#allocation7 + $0xcc] ss:$16 sps:$4 sm:$0xff]   ;;  %v5092_v60 = vld [vmem:[#allocation7 + $0xe0] ss:$16 sps:$4 sm:$0xff]  }
 0x657   : >> { %v3281_v62 = vld [vmem:[#allocation4] sm:$0xff]  ;;  %v5099_v59 = vld [vmem:[#allocation7 + $0xc8] ss:$16 sps:$4 sm:$0xff]   ;;  %v5100_v37 = vld [vmem:[#allocation7 + $0xec] ss:$16 sps:$4 sm:$0xff]   ;;  %s4406_s13 = sshll.u32 %s5365_s27, 8 }
 0x658   : >> { %3490 = vmatpush1.bf16.msra.mxu0 %v5063_v23  ;;  %3563 = vmatpush1.bf16.msra.mxu1 %v5081_v33  ;;  %v3289_v2 = vpack.c.bf16 %v3282_v0, %v3281_v62  ;;  %v5102_v24 = vld [vmem:[#allocation7 + $0xe8] ss:$16 sps:$4 sm:$0xff]   ;;  %v3283_v3 = vld [vmem:[#allocation4 + $0x10] sm:$0xff]  ;;  %v3285_v57 = vld [vmem:[#allocation4 + $0x20] sm:$0xff]  ;;  %s6687_s12 = scalar_lea.vmem [#allocation3], %s4406_s13  ;;  %s4392_s26 = sshll.u32 %s5365_s27, 6 }
 0x659   : >> { %3491 = vmatprep.subr.bf16.mxu0 %v5064_v39  ;;  %3564 = vmatprep.subr.bf16.mxu1 %v5084_v34  ;;  %v3284_v4 = vld [vmem:[#allocation4 + $0x18] sm:$0xff]  ;;  %v3286_v58 = vld [vmem:[#allocation4 + $0x28] sm:$0xff]  ;;  %v3287_v5 = vld [vmem:[#allocation4 + $0x30] sm:$0xff]  ;;  %s6759_s24 = scalar_lea.vmem %s5538_s20, %s4392_s26 [#allocation9]  ;;  %s3245_s27 = sadd.s32 1, %s5365_s27  }
 0x65a   : >> { %v3290_v22 = vpack.c.bf16 %v3284_v4, %v3283_v3  ;;  %v3291_v61 = vpack.c.bf16 %v3286_v58, %v3285_v57  ;;  %v3288_v56 = vld [vmem:[#allocation4 + $0x38] sm:$0xff]  ;;  %v3249_v7 = vld [vmem:[%s6687_s12] sm:$0xff]  ;;  %v3250_v13 = vld [vmem:[%s6687_s12 + $0x8] sm:$0xff]  ;;  %p3242_p3 = scmp.ge.s32.totalorder %s3245_s27, 2  }
 0x65b   : >> { %v3292_v6 = vpack.c.bf16 %v3288_v56, %v3287_v5  ;;  %v3253_v9 = vld [vmem:[%s6687_s12 + $0x20] sm:$0xff]  ;;  %v3254_v11 = vld [vmem:[%s6687_s12 + $0x28] sm:$0xff]  ;;  %v3252_v1 = vld [vmem:[%s6687_s12 + $0x18] sm:$0xff]  ;;  %p6826_p6 = scmp.ne.s32.totalorder (%p3242_p3), %s6819_s22, 0 }
 0x65c   : >> { %3492 = vmatpush1.bf16.msra.mxu0 %v5068_v44  ;;  %3565 = vmatpush1.bf16.msra.mxu1 %v5087_v45  ;;  %v3251_v38 = vld [vmem:[%s6687_s12 + $0x10] sm:$0xff]  ;;  %v3256_v19 = vld [vmem:[%s6687_s12 + $0x38] sm:$0xff]  ;;  %v3258_v17 = vld [vmem:[%s6687_s12 + $0x48] sm:$0xff] }
 0x65d   : >> { %3493 = vmatprep.subr.bf16.mxu0 %v5070_v41  ;;  %3566 = vmatprep.subr.bf16.mxu1 %v5090_v52  ;;  %v3255_v23 = vld [vmem:[%s6687_s12 + $0x30] sm:$0xff]  ;;  %v3261_v44 = vld [vmem:[%s6687_s12 + $0x60] sm:$0xff]  ;;  %v3266_v57 = vld [vmem:[%s6687_s12 + $0x88] sm:$0xff] }
 0x65e   : >> { %v3269_v56 = vld [vmem:[%s6687_s12 + $0xa0] sm:$0xff] }
 0x660   : >> { %3494 = vmatpush1.bf16.msra.mxu0 %v5074_v43  ;;  %3567 = vmatpush1.bf16.msra.mxu1 %v5093_v48  ;;  %v3262_v43 = vld [vmem:[%s6687_s12 + $0x68] sm:$0xff] }
 0x661   : >> { %3495 = vmatprep.subr.bf16.mxu0 %v5076_v25  ;;  %3568 = vmatprep.subr.bf16.mxu1 %v5094_v49 }
 0x664   : >> { %3496 = vmatpush1.bf16.msra.mxu0 %v5080_v46  ;;  %3569 = vmatpush1.bf16.msra.mxu1 %v5096_v21 }
 0x665   : >> { %3497 = vmatprep.subr.bf16.mxu0 %v5082_v47  ;;  %3570 = vmatprep.subr.bf16.mxu1 %v5097_v54 }
 0x668   : >> { %3498 = vmatpush1.bf16.msra.mxu0 %v5086_v50  ;;  %3571 = vmatpush1.bf16.msra.mxu1 %v5099_v59 }
 0x669   : >> { %3499 = vmatprep.subr.bf16.mxu0 %v5088_v53  ;;  %3572 = vmatprep.subr.bf16.mxu1 %v5100_v37 }
 0x66c   : >> { %3500 = vmatpush1.bf16.msra.mxu0 %v5092_v60  ;;  %3573 = vmatpush1.bf16.msra.mxu1 %v5102_v24  ;;  %v3265_v24 = vld [vmem:[%s6687_s12 + $0x80] sm:$0xff] }
 0x66f   : >> { %3518 = vmatmul.mubr.bf16.vlgmr.msra.gmra.mrb[0].mxu0 %v3289_v2  ;;  %3591 = vmatmul.mubr.bf16.vlgmr.msra.gmra.mrb[0].mxu1 %v3289_v2 }
 0x670   : >> { %3527 = vmatprep.mubr.bf16.mxu0 %v5375_v29  ;;  %3600 = vmatprep.mubr.bf16.mxu1 %v5375_v29 }
 0x677   : >> { %3528 = vmatmul.mubr.bf16.gmra.mrb[4].mxu0 %v3290_v22  ;;  %3601 = vmatmul.mubr.bf16.gmra.mrb[4].mxu1 %v3290_v22 }
 0x678   : >> { %3537 = vmatprep.mubr.bf16.mxu0 %v5375_v29  ;;  %3610 = vmatprep.mubr.bf16.mxu1 %v5375_v29 }
 0x67f   : >> { %3538 = vmatmul.mubr.bf16.gmra.mrb[8].mxu0 %v3291_v61  ;;  %3611 = vmatmul.mubr.bf16.gmra.mrb[8].mxu1 %v3291_v61 }
 0x680   : >> { %3547 = vmatprep.mubr.bf16.mxu0 %v5375_v29  ;;  %3620 = vmatprep.mubr.bf16.mxu1 %v5375_v29  ;;  %v3257_v29 = vld [vmem:[%s6687_s12 + $0x40] sm:$0xff] }
 0x687   : >> { %3548 = vmatmul.mubr.bf16.gmra.mrb[12].mxu0 %v3292_v6  ;;  %3621 = vmatmul.mubr.bf16.gmra.mrb[12].mxu1 %v3292_v6 }
 0x742   : >> { %v3519_v8 = vpop.f32.mrb[0].mxu0  ;;  %v3592_v51 = vpop.f32.mrb[0].mxu1 }
 0x743   : >> { %v3631_v10 = vadd.f32 %v3519_v8, %v3249_v7  ;;  %v3521_v12 = vpop.f32.mrb[1].mxu0  ;;  %v3594_v30 = vpop.f32.mrb[1].mxu1  ;;  %v3633_v41 = vadd.f32 %v3592_v51, %v3251_v38  ;;  %v3260_v38 = vld [vmem:[%s6687_s12 + $0x58] sm:$0xff] }
 0x744   : >> { %v3632_v14 = vadd.f32 %v3521_v12, %v3250_v13  ;;  %v3523_v15 = vpop.f32.mrb[2].mxu0  ;;  %v3634_v18 = vadd.f32 %v3594_v30, %v3252_v1  ;;  %v3596_v39 = vpop.f32.mrb[2].mxu1 }
 0x745   : >> { %v3663_v16 = vsub.f32 0.0, %v3631_v10  ;;  %v3635_v20 = vadd.f32 %v3523_v15, %v3253_v9  ;;  %v3525_v55 = vpop.f32.mrb[3].mxu0  ;;  %v3598_v42 = vpop.f32.mrb[3].mxu1  ;;  %v3637_v47 = vadd.f32 %v3596_v39, %v3255_v23  ;;  %v3270_v9 = vld [vmem:[%s6687_s12 + $0xa8] sm:$0xff] }
 0x746   : >> { %v3703_v28 = vsub.f32 0.0, %v3632_v14  ;;  %v3636_v35 = vadd.f32 %v3525_v55, %v3254_v11  ;;  %v3751_v25 = vsub.f32 0.0, %v3634_v18  ;;  %v3638_v45 = vadd.f32 %v3598_v42, %v3256_v19 }
 0x747   : >> { %v3671_v36 = vmul.f32 1.442695, %v3663_v16  ;;  %v3664_v32 = vsub.f32 0.0, %v3635_v20 }
 0x748   : >> { %v3711_v26 = vmul.f32 1.442695, %v3703_v28  ;;  %v3704_v27 = vsub.f32 0.0, %v3636_v35  ;;  %v3759_v53 = vmul.f32 1.442695, %v3751_v25  ;;  %v3752_v60 = vsub.f32 0.0, %v3638_v45 }
 0x749   : >> { %5103 = vpow2.f32 %v3671_v36  ;;  %v3673_v31 = vmul.f32 1.442695, %v3664_v32 }
 0x74a   : >> { %5105 = vpow2.f32 %v3711_v26  ;;  %v3713_v63 = vmul.f32 1.442695, %v3704_v27  ;;  %v3529_v40 = vpop.f32.mrb[4].mxu0  ;;  %v6701_v59 = vpop.f32.mrb[4].mxu1  ;;  %v3761_v22 = vmul.f32 1.442695, %v3752_v60 }
 0x74b   : >> { %5107 = vpow2.f32 %v3673_v31  ;;  %v3639_v33 = vadd.f32 %v3529_v40, %v3257_v29  ;;  %v3531_v34 = vpop.f32.mrb[5].mxu0  ;;  %v3604_v3 = vpop.f32.mrb[5].mxu1 }
 0x74c   : >> { %5109 = vpow2.f32 %v3713_v63  ;;  %v3640_v52 = vadd.f32 %v3531_v34, %v3258_v17  ;;  %v3533_v46 = vpop.f32.mrb[6].mxu0  ;;  %v6705_v58 = vpop.f32.mrb[6].mxu1  ;;  %v3642_v23 = vadd.f32 %v3604_v3, %v3260_v38 }
 0x74d   : >> { %v3665_v48 = vsub.f32 0.0, %v3639_v33  ;;  %v3643_v49 = vadd.f32 %v3533_v46, %v3261_v44  ;;  %v3535_v50 = vpop.f32.mrb[7].mxu0  ;;  %5111 = vtanh.f32 %v3633_v41  ;;  %v6708_v6 = vpop.f32.mrb[7].mxu1 }
 0x74e   : >> { %v3705_v21 = vsub.f32 0.0, %v3640_v52  ;;  %v3644_v54 = vadd.f32 %v3535_v50, %v3262_v43  ;;  %5113 = vpow2.f32 %v3759_v53 }
 0x74f   : >> { %v3675_v62 = vmul.f32 1.442695, %v3665_v48  ;;  %v3666_v0 = vsub.f32 0.0, %v3643_v49  ;;  %5115 = vtanh.f32 %v3637_v47  ;;  %v3259_v47 = vld [vmem:[%s6687_s12 + $0x50] sm:$0xff]  ;;  %v3753_v48 = vsub.f32 0.0, %v3642_v23  ;;  %v3264_v49 = vld [vmem:[%s6687_s12 + $0x78] sm:$0xff] }
 0x750   : >> { %v3715_v37 = vmul.f32 1.442695, %v3705_v21  ;;  %v3706_v2 = vsub.f32 0.0, %v3644_v54  ;;  %v3273_v54 = vld [vmem:[%s6687_s12 + $0xc0] sm:$0xff] }
 0x751   : >> { %5117 = vpow2.f32 %v3675_v62  ;;  %v3677_v4 = vmul.f32 1.442695, %v3666_v0  ;;  %v3791_v0 = vld [vmem:[#allocation5] sm:$0xff] }
 0x752   : >> { %5119 = vpow2.f32 %v3715_v37  ;;  %v3717_v61 = vmul.f32 1.442695, %v3706_v2  ;;  %v3539_v5 = vpop.f32.mrb[8].mxu0  ;;  %v6712_v29 = vpop.f32.mrb[8].mxu1  ;;  %v3274_v2 = vld [vmem:[%s6687_s12 + $0xc8] sm:$0xff] }
 0x753   : >> { %v5104_v7 = vpop.eup %5103  ;;  %5121 = vpow2.f32 %v3677_v4  ;;  %v3647_v13 = vadd.f32 %v3539_v5, %v3265_v24  ;;  %v3541_v8 = vpop.f32.mrb[9].mxu0 }
 0x754   : >> { %v5106_v10 = vpop.eup %5105  ;;  %v3687_v12 = vadd.f32 1.0, %v5104_v7  ;;  %5123 = vpow2.f32 %v3717_v61  ;;  %v3648_v11 = vadd.f32 %v3541_v8, %v3266_v57  ;;  %v3543_v14 = vpop.f32.mrb[10].mxu0  ;;  %v3646_v57 = vadd.f32 %v6708_v6, %v3264_v49  ;;  %v3277_v61 = vld [vmem:[%s6687_s12 + $0xe0] sm:$0xff] }
 0x755   : >> { %v5108_v15 = vpop.eup %5107  ;;  %v3727_v16 = vadd.f32 1.0, %v5106_v10  ;;  %5125 = vpow2.f32 %v3761_v22  ;;  %v3667_v20 = vsub.f32 0.0, %v3647_v13  ;;  %v3651_v55 = vadd.f32 %v3543_v14, %v3269_v56  ;;  %v3545_v28 = vpop.f32.mrb[11].mxu0  ;;  %v3792_v13 = vld [vmem:[#allocation5 + $0x8] sm:$0xff] }
 0x756   : >> { %v5110_v35 = vpop.eup %5109  ;;  %5127 = vrcp.f32 %v3687_v12  ;;  %v3688_v1 = vadd.f32 1.0, %v5108_v15  ;;  %v3707_v36 = vsub.f32 0.0, %v3648_v11  ;;  %v3652_v32 = vadd.f32 %v3545_v28, %v3270_v9  ;;  %v6714_v31 = vpop.f32.mrb[9].mxu1  ;;  %v3278_v15 = vld [vmem:[%s6687_s12 + $0xe8] sm:$0xff] }
 0x757   : >> { %5129 = vrcp.f32 %v3727_v16  ;;  %v3728_v51 = vadd.f32 1.0, %v5110_v35  ;;  %v3679_v26 = vmul.f32 1.442695, %v3667_v20  ;;  %v3668_v27 = vsub.f32 0.0, %v3651_v55  ;;  %v5112_v30 = vpop.eup %5111  ;;  %v6716_v39 = vpop.f32.mrb[10].mxu1 }
 0x758   : >> { %5131 = vrcp.f32 %v3688_v1  ;;  %v3719_v19 = vmul.f32 1.442695, %v3707_v36  ;;  %v5114_v17 = vpop.eup %5113  ;;  %v6718_v41 = vpop.f32.mrb[11].mxu1  ;;  %v3708_v33 = vsub.f32 0.0, %v3652_v32  ;;  %v3641_v22 = vadd.f32 %v6701_v59, %v3259_v47  ;;  %v3263_v1 = vld [vmem:[%s6687_s12 + $0x70] sm:$0xff] }
 0x759   : >> { %5133 = vrcp.f32 %v3728_v51  ;;  %v3681_v18 = vmul.f32 1.442695, %v3668_v27  ;;  %v5116_v63 = vpop.eup %5115  ;;  %v3775_v40 = vadd.f32 1.0, %v5114_v17  ;;  %v3763_v8 = vmul.f32 1.442695, %v3753_v48  ;;  %v3793_v47 = vld [vmem:[#allocation5 + $0x10] sm:$0xff] }
 0x75a   : >> { %5135 = vpow2.f32 %v3679_v26  ;;  %v3549_v44 = vpop.f32.mrb[12].mxu0  ;;  %v3721_v37 = vmul.f32 1.442695, %v3708_v33  ;;  %v6724_v24 = vpop.f32.mrb[12].mxu1  ;;  %v3754_v36 = vsub.f32 0.0, %v3646_v57 }
 0x75b   : >> { %v5118_v42 = vpop.eup %5117  ;;  %5137 = vpow2.f32 %v3719_v19  ;;  %v3551_v34 = vpop.f32.mrb[13].mxu0  ;;  %v3655_v9 = vadd.f32 %v3549_v44, %v3273_v54 }
 0x75c   : >> { %v5120_v43 = vpop.eup %5119  ;;  %v3689_v25 = vadd.f32 1.0, %v5118_v42  ;;  %5139 = vrcp.f32 %v3775_v40  ;;  %v3553_v45 = vpop.f32.mrb[14].mxu0  ;;  %v3656_v14 = vadd.f32 %v3551_v34, %v3274_v2  ;;  %v3765_v33 = vmul.f32 1.442695, %v3754_v36 }
 0x75d   : >> { %v5122_v52 = vpop.eup %5121  ;;  %v3729_v46 = vadd.f32 1.0, %v5120_v43  ;;  %5141 = vpow2.f32 %v3681_v18  ;;  %v3555_v50 = vpop.f32.mrb[15].mxu0  ;;  %v3659_v20 = vadd.f32 %v3553_v45, %v3277_v61  ;;  %v3669_v51 = vsub.f32 0.0, %v3655_v9  ;;  %v3268_v18 = vld [vmem:[%s6687_s12 + $0x98] sm:$0xff] }
 0x75e   : >> { %v5124_v53 = vpop.eup %5123  ;;  %5143 = vrcp.f32 %v3689_v25  ;;  %v3690_v21 = vadd.f32 1.0, %v5122_v52  ;;  %v6729_v5 = vpop.f32.mrb[13].mxu1  ;;  %v3660_v26 = vadd.f32 %v3555_v50, %v3278_v15  ;;  %v3709_v17 = vsub.f32 0.0, %v3656_v14  ;;  %v3272_v52 = vld [vmem:[%s6687_s12 + $0xb8] sm:$0xff] }
 0x75f   : >> { %v5126_v60 = vpop.eup %5125  ;;  %5145 = vrcp.f32 %v3729_v46  ;;  %v3730_v62 = vadd.f32 1.0, %v5124_v53  ;;  %v6731_v10 = vpop.f32.mrb[14].mxu1  ;;  %v3670_v40 = vsub.f32 0.0, %v3659_v20  ;;  %v3683_v43 = vmul.f32 1.442695, %v3669_v51  ;;  %v3276_v14 = vld [vmem:[%s6687_s12 + $0xd8] sm:$0xff] }
 0x760   : >> { %v5128_v3 = vpop.eup %5127  ;;  %5147 = vrcp.f32 %v3690_v21  ;;  %v3776_v4 = vadd.f32 1.0, %v5126_v60  ;;  %v6734_v59 = vpop.f32.mrb[15].mxu1  ;;  %v3710_v25 = vsub.f32 0.0, %v3660_v26  ;;  %v3650_v45 = vadd.f32 %v6714_v31, %v3268_v18 }
 0x761   : >> { %v5130_v56 = vpop.eup %5129  ;;  %5149 = vrcp.f32 %v3730_v62  ;;  %v3807_v7 = vmul.f32 %v5128_v3, %v5112_v30  ;;  %v3723_v48 = vmul.f32 1.442695, %v3709_v17  ;;  %v3654_v53 = vadd.f32 %v6718_v41, %v3272_v52  ;;  %v3267_v62 = vld [vmem:[%s6687_s12 + $0x90] sm:$0xff] }
 0x762   : >> { %v5132_v12 = vpop.eup %5131  ;;  %v3799_v11 = vmul.f32 %v5130_v56, %v3791_v0  ;;  %5151 = vrcp.f32 %v3776_v4  ;;  %v3725_v60 = vmul.f32 1.442695, %v3710_v25  ;;  %v3755_v31 = vsub.f32 0.0, %v3650_v45  ;;  %v3271_v4 = vld [vmem:[%s6687_s12 + $0xb0] sm:$0xff]  ;;  %v3796_v25 = vld [vmem:[#allocation5 + $0x28] sm:$0xff] }
 0x763   : >> { %v5134_v6 = vpop.eup %5133  ;;  %v3808_v16 = vmul.f32 %v5132_v12, %v5116_v63  ;;  %5153 = vpow2.f32 %v3721_v37  ;;  %v3645_v63 = vadd.f32 %v6705_v58, %v3263_v1  ;;  %v3685_v58 = vmul.f32 1.442695, %v3670_v40 }
 0x764   : >> { %v5136_v55 = vpop.eup %5135  ;;  %v3815_v28 = vadd.f32 %v3807_v7, %v3799_v11  ;;  %v3800_v35 = vmul.f32 %v5134_v6, %v3792_v13  ;;  %5155 = vtanh.f32 %v3641_v22  ;;  %v3649_v61 = vadd.f32 %v6712_v29, %v3267_v62 }
 0x765   : >> { %v5138_v32 = vpop.eup %5137  ;;  %v3691_v38 = vadd.f32 1.0, %v5136_v55  ;;  %5157 = vpow2.f32 %v3763_v8  ;;  %v3756_v41 = vsub.f32 0.0, %v3654_v53  ;;  %v3794_v8 = vld [vmem:[#allocation5 + $0x18] sm:$0xff]  ;;  %v3767_v9 = vmul.f32 1.442695, %v3755_v31 }
 0x766   : >> { %v5140_v27 = vpop.eup %5139  ;;  %5159 = vtanh.f32 %v3815_v28  ;;  %3839 = vst [vmem:[#allocation5] sm:$0xff] %v3815_v28  ;;  %v3816_v30 = vadd.f32 %v3808_v16, %v3800_v35  ;;  %v3731_v19 = vadd.f32 1.0, %v5138_v32  ;;  %v3653_v11 = vadd.f32 %v6716_v39, %v3271_v4 }
 0x767   : >> { %v5142_v23 = vpop.eup %5141  ;;  %5161 = vrcp.f32 %v3691_v38  ;;  %v3769_v55 = vmul.f32 1.442695, %v3756_v41  ;;  %v3658_v36 = vadd.f32 %v6729_v5, %v3276_v14 }
 0x768   : >> { %v5144_v44 = vpop.eup %5143  ;;  %5163 = vtanh.f32 %v3816_v30  ;;  %3840 = vst [vmem:[#allocation5 + $0x8] sm:$0xff] %v3816_v30  ;;  %v3692_v42 = vadd.f32 1.0, %v5142_v23  ;;  %v3275_v23 = vld [vmem:[%s6687_s12 + $0xd0] sm:$0xff] }
 0x769   : >> { %v5146_v34 = vpop.eup %5145  ;;  %5165 = vrcp.f32 %v3731_v19  ;;  %v3657_v45 = vadd.f32 %v6724_v24, %v3275_v23 }
 0x76a   : >> { %v5148_v46 = vpop.eup %5147  ;;  %5167 = vrcp.f32 %v3692_v42  ;;  %v3801_v54 = vmul.f32 %v5146_v34, %v3793_v47 }
 0x76b   : >> { %v5150_v49 = vpop.eup %5149  ;;  %5169 = vtanh.f32 %v3645_v63  ;;  %v3757_v63 = vsub.f32 0.0, %v3658_v36 }
 0x76c   : >> { %v5152_v50 = vpop.eup %5151  ;;  %5171 = vpow2.f32 %v3765_v33  ;;  %v3802_v20 = vmul.f32 %v5150_v49, %v3794_v8  ;;  %v3280_v33 = vld [vmem:[%s6687_s12 + $0xf8] sm:$0xff] }
 0x76d   : >> { %v5154_v21 = vpop.eup %5153  ;;  %5173 = vpow2.f32 %v3683_v43  ;;  %v3771_v47 = vmul.f32 1.442695, %v3757_v63 }
 0x76e   : >> { %v5156_v0 = vpop.eup %5155  ;;  %v3732_v37 = vadd.f32 1.0, %v5154_v21  ;;  %5175 = vpow2.f32 %v3723_v48 }
 0x76f   : >> { %v5158_v2 = vpop.eup %5157  ;;  %v3809_v3 = vmul.f32 %v5156_v0, %v5144_v44  ;;  %5177 = vpow2.f32 %v3685_v58  ;;  %v3795_v44 = vld [vmem:[#allocation5 + $0x20] sm:$0xff]  ;;  %v3662_v58 = vadd.f32 %v6734_v59, %v3280_v33  ;;  %v3279_v59 = vld [vmem:[%s6687_s12 + $0xf0] sm:$0xff] }
 0x770   : >> { %v5160_v22 = vpop.eup %5159  ;;  %5179 = vrcp.f32 %v3732_v37  ;;  %v3777_v57 = vadd.f32 1.0, %v5158_v2 }
 0x771   : >> { %v6745_v56 = vpop.eup %5161  ;;  %v3831_v7 = vmul.f32 %v5160_v22, %v5140_v27  ;;  %v3817_v13 = vadd.f32 %v3809_v3, %v3801_v54  ;;  %5181 = vpow2.f32 %v3725_v60  ;;  %v3758_v4 = vsub.f32 0.0, %v3662_v58 }
 0x772   : >> { %v5164_v12 = vpop.eup %5163  ;;  %5183 = vrcp.f32 %v3777_v57 }
 0x773   : >> { %v5166_v15 = vpop.eup %5165  ;;  %3847 = vst [vmem:[#allocation4] sm:$0xff] %v3831_v7  ;;  %v3855_v6 = vsub.f32 0.0, %v3831_v7  ;;  %v3832_v16 = vmul.f32 %v5164_v12, %v5152_v50  ;;  %5185 = vtanh.f32 %v3817_v13  ;;  %3841 = vst [vmem:[#allocation5 + $0x10] sm:$0xff] %v3817_v13  ;;  %v3661_v13 = vadd.f32 %v6731_v10, %v3279_v59  ;;  %v3797_v12 = vld [vmem:[#allocation5 + $0x30] sm:$0xff] }
 0x774   : >> { %v5168_v29 = vpop.eup %5167  ;;  %5187 = vtanh.f32 %v3649_v61 }
 0x775   : >> { %v5170_v28 = vpop.eup %5169  ;;  %v3863_v35 = vmul.f32 1.442695, %v3855_v6  ;;  %3848 = vst [vmem:[#allocation4 + $0x8] sm:$0xff] %v3832_v16  ;;  %v3856_v1 = vsub.f32 0.0, %v3832_v16  ;;  %5189 = vpow2.f32 %v3767_v9 }
 0x776   : >> { %v5172_v39 = vpop.eup %5171  ;;  %v3810_v32 = vmul.f32 %v5170_v28, %v5148_v46  ;;  %5191 = vtanh.f32 %v3653_v11  ;;  %v3803_v46 = vmul.f32 %v5166_v15, %v3795_v44  ;;  %v3773_v11 = vmul.f32 1.442695, %v3758_v4 }
 0x777   : >> { %v5174_v38 = vpop.eup %5173  ;;  %5193 = vpow2.f32 %v3863_v35  ;;  %v3865_v51 = vmul.f32 1.442695, %v3856_v1  ;;  %v3778_v26 = vadd.f32 1.0, %v5172_v39 }
 0x778   : >> { %v5176_v27 = vpop.eup %5175  ;;  %v3818_v30 = vadd.f32 %v3810_v32, %v3802_v20  ;;  %v3693_v19 = vadd.f32 1.0, %v5174_v38  ;;  %5195 = vpow2.f32 %v3769_v55 }
 0x779   : >> { %v5178_v17 = vpop.eup %5177  ;;  %5197 = vpow2.f32 %v3865_v51  ;;  %v3733_v18 = vadd.f32 1.0, %v5176_v27 }
 0x77a   : >> { %v5180_v40 = vpop.eup %5179  ;;  %5199 = vtanh.f32 %v3818_v30  ;;  %3842 = vst [vmem:[#allocation5 + $0x18] sm:$0xff] %v3818_v30  ;;  %v3694_v5 = vadd.f32 1.0, %v5178_v17 }
 0x77b   : >> { %v5182_v42 = vpop.eup %5181  ;;  %5201 = vrcp.f32 %v3778_v26  ;;  %v3804_v21 = vmul.f32 %v5180_v40, %v3796_v25  ;;  %v3798_v26 = vld [vmem:[#allocation5 + $0x38] sm:$0xff] }
 0x77c   : >> { %v5184_v34 = vpop.eup %5183  ;;  %5203 = vrcp.f32 %v3693_v19  ;;  %v3734_v43 = vadd.f32 1.0, %v5182_v42 }
 0x77d   : >> { %v5186_v52 = vpop.eup %5185  ;;  %5205 = vrcp.f32 %v3733_v18 }
 0x77e   : >> { %v5188_v48 = vpop.eup %5187  ;;  %v3833_v49 = vmul.f32 %v5186_v52, %v5184_v34  ;;  %5207 = vrcp.f32 %v3694_v5 }
 0x77f   : >> { %v5190_v50 = vpop.eup %5189  ;;  %5209 = vrcp.f32 %v3734_v43  ;;  %v3811_v53 = vmul.f32 %v5188_v48, %v6745_v56 }
 0x780   : >> { %v5192_v54 = vpop.eup %5191  ;;  %3849 = vst [vmem:[#allocation4 + $0x10] sm:$0xff] %v3833_v49  ;;  %v3857_v60 = vsub.f32 0.0, %v3833_v49  ;;  %v3779_v62 = vadd.f32 1.0, %v5190_v50  ;;  %5211 = vtanh.f32 %v3657_v45 }
 0x781   : >> { %v5194_v24 = vpop.eup %5193  ;;  %v3819_v31 = vadd.f32 %v3811_v53, %v3803_v46  ;;  %v3812_v0 = vmul.f32 %v5192_v54, %v5168_v29  ;;  %5213 = vpow2.f32 %v3771_v47 }
 0x782   : >> { %v5196_v37 = vpop.eup %5195  ;;  %v3879_v2 = vadd.f32 1.0, %v5194_v24  ;;  %v3867_v3 = vmul.f32 1.442695, %v3857_v60  ;;  %5215 = vrcp.f32 %v3779_v62 }
 0x783   : >> { %v5198_v22 = vpop.eup %5197  ;;  %5217 = vtanh.f32 %v3819_v31  ;;  %3843 = vst [vmem:[#allocation5 + $0x20] sm:$0xff] %v3819_v31  ;;  %v3820_v57 = vadd.f32 %v3812_v0, %v3804_v21  ;;  %v3780_v56 = vadd.f32 1.0, %v5196_v37 }
 0x784   : >> { %v5200_v61 = vpop.eup %5199  ;;  %5219 = vrcp.f32 %v3879_v2  ;;  %v3880_v41 = vadd.f32 1.0, %v5198_v22 }
 0x785   : >> { %v5202_v7 = vpop.eup %5201  ;;  %5221 = vpow2.f32 %v3867_v3  ;;  %3844 = vst [vmem:[#allocation5 + $0x28] sm:$0xff] %v3820_v57 }
 0x786   : >> { %v5204_v8 = vpop.eup %5203  ;;  %5223 = vrcp.f32 %v3880_v41  ;;  %v3834_v9 = vmul.f32 %v5202_v7, %v5200_v61 }
 0x787   : >> { %v5206_v14 = vpop.eup %5205  ;;  %5225 = vtanh.f32 %v3820_v57 }
 0x788   : >> { %v5208_v15 = vpop.eup %5207  ;;  %3850 = vst [vmem:[#allocation4 + $0x18] sm:$0xff] %v3834_v9  ;;  %v3858_v6 = vsub.f32 0.0, %v3834_v9  ;;  %5227 = vrcp.f32 %v3780_v56  ;;  %v3805_v29 = vmul.f32 %v5206_v14, %v3797_v12 }
 0x789   : >> { %v5210_v16 = vpop.eup %5209  ;;  %5229 = vtanh.f32 %v3661_v13 }
 0x78a   : >> { %v5212_v20 = vpop.eup %5211  ;;  %v3869_v55 = vmul.f32 1.442695, %v3858_v6  ;;  %5231 = vpow2.f32 %v3773_v11  ;;  %v3806_v63 = vmul.f32 %v5210_v16, %v3798_v26 }
 0x78b   : >> { %v5214_v10 = vpop.eup %5213  ;;  %v3813_v28 = vmul.f32 %v5212_v20, %v5204_v8 }
 0x78c   : >> { %v5216_v35 = vpop.eup %5215  ;;  %5233 = vpow2.f32 %v3869_v55  ;;  %v3781_v1 = vadd.f32 1.0, %v5214_v10 }
 0x78d   : >> { %v5218_v36 = vpop.eup %5217  ;;  %v3821_v39 = vadd.f32 %v3813_v28, %v3805_v29 }
 0x78e   : >> { %v5220_v32 = vpop.eup %5219  ;;  %v3835_v38 = vmul.f32 %v5218_v36, %v5216_v35  ;;  %5235 = vrcp.f32 %v3781_v1 }
 0x78f   : >> { %v5222_v51 = vpop.eup %5221  ;;  %3897 = vst [vmem:[%s6759_s24] sm:$0xff] %v5220_v32  ;;  %5237 = vtanh.f32 %v3821_v39  ;;  %3845 = vst [vmem:[#allocation5 + $0x30] sm:$0xff] %v3821_v39 }
 0x790   : >> { %v5224_v27 = vpop.eup %5223  ;;  %v3881_v30 = vadd.f32 1.0, %v5222_v51  ;;  %3851 = vst [vmem:[#allocation4 + $0x20] sm:$0xff] %v3835_v38  ;;  %v3859_v19 = vsub.f32 0.0, %v3835_v38 }
 0x791   : >> { %v5226_v17 = vpop.eup %5225  ;;  %3898 = vst [vmem:[%s6759_s24 + $0x8] sm:$0xff] %v5224_v27 }
 0x792   : >> { %v5228_v18 = vpop.eup %5227  ;;  %5239 = vrcp.f32 %v3881_v30  ;;  %v3871_v23 = vmul.f32 1.442695, %v3859_v19 }
 0x793   : >> { %v5230_v40 = vpop.eup %5229  ;;  %v3836_v5 = vmul.f32 %v5228_v18, %v5226_v17 }
 0x794   : >> { %v5232_v44 = vpop.eup %5231  ;;  %5241 = vpow2.f32 %v3871_v23  ;;  %v3814_v42 = vmul.f32 %v5230_v40, %v5208_v15 }
 0x795   : >> { %3852 = vst [vmem:[#allocation4 + $0x28] sm:$0xff] %v3836_v5  ;;  %v3860_v33 = vsub.f32 0.0, %v3836_v5  ;;  %v3782_v34 = vadd.f32 1.0, %v5232_v44 }
 0x796   : >> { %v5234_v43 = vpop.eup %5233  ;;  %v3822_v25 = vadd.f32 %v3814_v42, %v3806_v63 }
 0x797   : >> { %v3882_v45 = vadd.f32 1.0, %v5234_v43  ;;  %v3873_v52 = vmul.f32 1.442695, %v3860_v33  ;;  %5243 = vrcp.f32 %v3782_v34 }
 0x798   : >> { %v5236_v46 = vpop.eup %5235  ;;  %5245 = vtanh.f32 %v3822_v25  ;;  %3846 = vst [vmem:[#allocation5 + $0x38] sm:$0xff] %v3822_v25 }
 0x799   : >> { %v5238_v47 = vpop.eup %5237  ;;  %5247 = vrcp.f32 %v3882_v45 }
 0x79a   : >> { %5249 = vpow2.f32 %v3873_v52  ;;  %v3837_v48 = vmul.f32 %v5238_v47, %v5236_v46 }
 0x79c   : >> { %v5240_v49 = vpop.eup %5239  ;;  %3853 = vst [vmem:[#allocation4 + $0x30] sm:$0xff] %v3837_v48  ;;  %v3861_v58 = vsub.f32 0.0, %v3837_v48 }
 0x79d   : >> { %3899 = vst [vmem:[%s6759_s24 + $0x10] sm:$0xff] %v5240_v49 }
 0x79e   : >> { %v5242_v50 = vpop.eup %5241  ;;  %v3875_v53 = vmul.f32 1.442695, %v3861_v58 }
 0x79f   : >> { %v3883_v21 = vadd.f32 1.0, %v5242_v50 }
 0x7a0   : >> { %5251 = vpow2.f32 %v3875_v53 }
 0x7a1   : >> { %v5244_v54 = vpop.eup %5243  ;;  %5253 = vrcp.f32 %v3883_v21 }
 0x7a2   : >> { %v5246_v60 = vpop.eup %5245 }
 0x7a3   : >> { %v5248_v62 = vpop.eup %5247  ;;  %v3838_v24 = vmul.f32 %v5246_v60, %v5244_v54 }
 0x7a4   : >> { %v5250_v31 = vpop.eup %5249  ;;  %3900 = vst [vmem:[%s6759_s24 + $0x18] sm:$0xff] %v5248_v62 }
 0x7a5   : >> { %v3884_v0 = vadd.f32 1.0, %v5250_v31  ;;  %3854 = vst [vmem:[#allocation4 + $0x38] sm:$0xff] %v3838_v24  ;;  %v3862_v37 = vsub.f32 0.0, %v3838_v24 }
 0x7a7   : >> { %5255 = vrcp.f32 %v3884_v0  ;;  %v3877_v2 = vmul.f32 1.442695, %v3862_v37 }
 0x7a9   : >> { %5257 = vpow2.f32 %v3877_v2 }
 0x7aa   : >> { %v5252_v3 = vpop.eup %5251 }
 0x7ab   : >> { %v5254_v59 = vpop.eup %5253  ;;  %v3885_v4 = vadd.f32 1.0, %v5252_v3 }
 0x7ac   : >> { %3901 = vst [vmem:[%s6759_s24 + $0x20] sm:$0xff] %v5254_v59 }
 0x7ad   : >> { %5259 = vrcp.f32 %v3885_v4 }
 0x7b1   : >> { %v5256_v22 = vpop.eup %5255 }
 0x7b2   : >> { %3902 = vst [vmem:[%s6759_s24 + $0x28] sm:$0xff] %v5256_v22 }
 0x7b3   : >> { %v5258_v57 = vpop.eup %5257 }
 0x7b4   : >> { %v3886_v61 = vadd.f32 1.0, %v5258_v57 }
 0x7b6   : >> { %5261 = vrcp.f32 %v3886_v61 }
 0x7b7   : >> { %v5260_v41 = vpop.eup %5259 }
 0x7b8   : >> { %3903 = vst [vmem:[%s6759_s24 + $0x30] sm:$0xff] %v5260_v41 }
 0x7bb   : > { %3244 = sbr.rel (!%p3242_p3) target bundleno = 1613 (0x64d), region = 285 }
 0x7c0   : >> { %v5262_v56 = vpop.eup %5261 }
 0x7c1   : >> { %3904 = vst [vmem:[%s6759_s24 + $0x38] sm:$0xff] %v5262_v56 }
 0x7c2   : > { %3911 = sbr.rel (!%p6826_p6) target bundleno = 2002 (0x7d2), region = 148  ;;  %s4407_s28 = sshll.u32 (%p6826_p6), %s5447_s16, 6 }
 0x7c3   : > { %s3914_s29 = scalar_lea.vmem (%p6826_p6), %s6814_s10, %s4407_s28 }
 0x7c8   : > { %v3972_v7 = vld [vmem:[%s5538_s20] sm:$0xff] (%p6826_p6)  ;;  %v3974_v13 = vld [vmem:[%s5538_s20 + $0x8] sm:$0xff] (%p6826_p6)  ;;  %v3976_v8 = vld [vmem:[%s5538_s20 + $0x10] sm:$0xff] (%p6826_p6) }
 0x7c9   : > { %v3978_v9 = vld [vmem:[%s5538_s20 + $0x18] sm:$0xff]  ;;  %v3980_v12 = vld [vmem:[%s5538_s20 + $0x20] sm:$0xff]  ;;  %v3982_v11 = vld [vmem:[%s5538_s20 + $0x28] sm:$0xff]  ;;  %3973 = vst [vmem:[%s3914_s29] sm:$0xff] %v3972_v7 }
 0x7ca   : > { %3975 = vst [vmem:[%s3914_s29 + $0x8] sm:$0xff] %v3974_v13  ;;  %3977 = vst [vmem:[%s3914_s29 + $0x10] sm:$0xff] %v3976_v8  ;;  %v3984_v14 = vld [vmem:[%s5538_s20 + $0x30] sm:$0xff]  ;;  %v3986_v15 = vld [vmem:[%s5538_s20 + $0x38] sm:$0xff] }
 0x7cb   : > { %3979 = vst [vmem:[%s3914_s29 + $0x18] sm:$0xff] %v3978_v9  ;;  %3981 = vst [vmem:[%s3914_s29 + $0x20] sm:$0xff] %v3980_v12  ;;  %v3988_v6 = vld [vmem:[%s5538_s20 + $0x40] sm:$0xff]  ;;  %v3990_v16 = vld [vmem:[%s5538_s20 + $0x48] sm:$0xff] }
 0x7cc   : > { %3983 = vst [vmem:[%s3914_s29 + $0x28] sm:$0xff] %v3982_v11  ;;  %3985 = vst [vmem:[%s3914_s29 + $0x30] sm:$0xff] %v3984_v14  ;;  %v3992_v29 = vld [vmem:[%s5538_s20 + $0x50] sm:$0xff]  ;;  %v3994_v20 = vld [vmem:[%s5538_s20 + $0x58] sm:$0xff] }
 0x7cd   : > { %3987 = vst [vmem:[%s3914_s29 + $0x38] sm:$0xff] %v3986_v15  ;;  %3989 = vst [vmem:[%s3914_s29 + $0x80] sm:$0xff] %v3988_v6  ;;  %v3996_v55 = vld [vmem:[%s5538_s20 + $0x60] sm:$0xff]  ;;  %v3998_v10 = vld [vmem:[%s5538_s20 + $0x68] sm:$0xff] }
 0x7ce   : > { %3991 = vst [vmem:[%s3914_s29 + $0x88] sm:$0xff] %v3990_v16  ;;  %3993 = vst [vmem:[%s3914_s29 + $0x90] sm:$0xff] %v3992_v29  ;;  %v4000_v28 = vld [vmem:[%s5538_s20 + $0x70] sm:$0xff]  ;;  %v4002_v35 = vld [vmem:[%s5538_s20 + $0x78] sm:$0xff] }
 0x7cf   : > { %3995 = vst [vmem:[%s3914_s29 + $0x98] sm:$0xff] %v3994_v20  ;;  %3997 = vst [vmem:[%s3914_s29 + $0xa0] sm:$0xff] %v3996_v55 }
 0x7d0   : > { %3999 = vst [vmem:[%s3914_s29 + $0xa8] sm:$0xff] %v3998_v10  ;;  %4001 = vst [vmem:[%s3914_s29 + $0xb0] sm:$0xff] %v4000_v28 }
 0x7d1   : > { %4003 = vst [vmem:[%s3914_s29 + $0xb8] sm:$0xff] %v4002_v35 }
 0x7d2 PF: > { %s6827_s16 = sld [smem:[#allocation11_spill]]  ;;  %p18_p7 = scmp.ge.s32.totalorder %s5450_s17, 4  }
 0x7d3   : > { %s6828_s13 = smov %s5337_s14  ;;  %s6830_s15 = smov %s5450_s17 }
 0x7d4   :  { %20 = sbr.rel (!%p18_p7) target bundleno = 2 (0x2), region = 296 }
 0x7d8   : > { %s6829_s14 = smov %s6827_s16 }
 0x7db   :  { %4019 = vsyncpa [#allocation8], 1 }
 0x7dc   :  { %4021 = vsyncpa [#allocation8 + $0x1], 1 }

</bundles_post_ra>
